<compile_context>
chip_gen: v7x
topology: tpu7x:2x2x1
jax: 0.10.0
libtpu: 0.0.40
codegen_flags: <defaults>
</compile_context>

<pallas_src>
import jax
import jax.numpy as jnp
from jax.experimental import pallas as pl
from jax.experimental.pallas import tpu as pltpu

IN_F, HID, OUT = 5547, 25, 5

HP = 32          # hidden 25 -> 32 (sublane-aligned rows for W2; zero padding exact)
OP = 128         # output 5 -> 128 so output stores are lane-dense (unmasked vst)
MAX_TB = 512     # max batch-tile rows
VMEM_LIMIT_BYTES = 40 * 1024 * 1024   # fits tb=512 f32 footprint (~29 MiB) on all gens


def _round_up(x, m):
    return (x + m - 1) // m * m


def _mlp_kernel(x_ref, w1_ref, b1_ref, w2_ref, b2_ref, o_ref):
    """Fused MLP for one batch tile: relu(x @ W1 + b1) @ W2 + b2."""
    h = jnp.dot(x_ref[...], w1_ref[...], preferred_element_type=jnp.float32)
    h = jnp.maximum(h + b1_ref[...], 0.0)
    o_ref[...] = (
        jnp.dot(h, w2_ref[...], preferred_element_type=jnp.float32) + b2_ref[...]
    ).astype(o_ref.dtype)


def prepare_params(w1, b1, w2, b2, *, stream_dtype=jnp.float32):
    """Pad/pack weights ONCE (hoisted out of the per-call path).

    W1 stays unpadded along K (5547) and only the hidden dim is padded to 32.
    `stream_dtype=jnp.bfloat16` enables bf16 streaming of W1 (and x) with f32
    accumulation — use only if the accuracy budget allows (~1e-3..1e-2 rel).
    """
    w1p = jnp.zeros((IN_F, HP), stream_dtype).at[:, :HID].set(w1.astype(stream_dtype))
    b1p = jnp.zeros((1, HP), jnp.float32).at[0, :HID].set(b1)
    w2p = jnp.zeros((HP, OP), jnp.float32).at[:HID, :OUT].set(w2)
    b2p = jnp.zeros((1, OP), jnp.float32).at[0, :OUT].set(b2)
    return w1p, b1p, w2p, b2p


def gnome_forward(x, params):
    """x: [B, 5547], params: output of prepare_params. Returns [B, 5] f32."""
    w1p, b1p, w2p, b2p = params
    B = x.shape[0]

    if x.dtype != w1p.dtype:
        # For the full HBM win with bf16 params, callers should supply x
        # already in bf16; this cast still captures the in-kernel MXU saving.
        x = x.astype(w1p.dtype)

    # Batch tiling: at least 2 grid steps once B > 16 (so both v7x TensorCores
    # get work via "parallel"), capped at 512 rows; multiple of 16 keeps the
    # sublane dim aligned for both f32 and bf16. No batch padding: the ragged
    # last tile's output stores are masked by Pallas.
    tb = max(16, min(MAX_TB, _round_up(pl.cdiv(B, 2), 16)))
    n_b = pl.cdiv(B, tb)

    out_padded = pl.pallas_call(
        _mlp_kernel,
        out_shape=jax.ShapeDtypeStruct((B, OP), jnp.float32),
        grid_spec=pltpu.PrefetchScalarGridSpec(
            num_scalar_prefetch=0,
            grid=(n_b,),
            in_specs=[
                # x tile: last dim == full array dim (5547) -> no K padding,
                # no per-call HBM copy; Mosaic masks the contraction tail.
                pl.BlockSpec((tb, IN_F), lambda b: (b, 0)),
                pl.BlockSpec((IN_F, HP), lambda b: (0, 0)),   # W1 (resident)
                pl.BlockSpec((1, HP), lambda b: (0, 0)),      # b1 (resident)
                pl.BlockSpec((HP, OP), lambda b: (0, 0)),     # W2 (resident)
                pl.BlockSpec((1, OP), lambda b: (0, 0)),      # b2 (resident)
            ],
            out_specs=pl.BlockSpec((tb, OP), lambda b: (b, 0)),
        ),
        compiler_params=pltpu.CompilerParams(
            dimension_semantics=("parallel",),   # batch tiles are independent
            vmem_limit_bytes=VMEM_LIMIT_BYTES,
        ),
    )(x, w1p, b1p, w2p, b2p)

    return out_padded[:, :OUT]


def _init_params(key):
    """Deterministic init mirroring torch.nn.Linear default U(-1/sqrt(fan_in), +)."""
    k1, k2, k3, k4 = jax.random.split(key, 4)
    s1 = 1.0 / jnp.sqrt(jnp.float32(IN_F))
    s2 = 1.0 / jnp.sqrt(jnp.float32(HID))
    w1 = jax.random.uniform(k1, (IN_F, HID), jnp.float32, -s1, s1)
    b1 = jax.random.uniform(k2, (HID,), jnp.float32, -s1, s1)
    w2 = jax.random.uniform(k3, (HID, OUT), jnp.float32, -s2, s2)
    b2 = jax.random.uniform(k4, (OUT,), jnp.float32, -s2, s2)
    return w1, b1, w2, b2


if __name__ == "__main__":
    key = jax.random.PRNGKey(0)
    kx, kp = jax.random.split(key)

    B = 2
    x = jax.random.normal(kx, (B, IN_F), jnp.float32)
    w1, b1, w2, b2 = _init_params(kp)

    # Pure-JAX reference for correctness.
    ref = jnp.maximum(x @ w1 + b1, 0.0) @ w2 + b2

    # --- f32 path (exact semantics of the PyTorch module) ---
    params_f32 = jax.tree_util.tree_map(
        jax.block_until_ready, prepare_params(w1, b1, w2, b2)
    )
    fwd = jax.jit(gnome_forward)
    out = jax.block_until_ready(fwd(x, params_f32))
    assert out.shape == (B, OUT)
    assert jnp.allclose(out, ref, atol=1e-4, rtol=1e-4), (out, ref)

    # --- optional bf16-streaming path (halved x/W1 HBM traffic; looser tol) ---
    params_bf16 = jax.tree_util.tree_map(
        jax.block_until_ready,
        prepare_params(w1, b1, w2, b2, stream_dtype=jnp.bfloat16),
    )
    out_bf16 = jax.block_until_ready(
        jax.jit(gnome_forward)(x.astype(jnp.bfloat16), params_bf16)
    )
    assert out_bf16.shape == (B, OUT)
    assert jnp.allclose(out_bf16, ref, atol=2e-2, rtol=2e-2), (out_bf16, ref)

    print("KERNEL_OK")
</pallas_src>

<mosaic_0001>
module attributes {stable_mosaic.version = 11 : i64} {
  func.func @_mlp_kernel(%arg0: i32, %arg1: memref<16x5547xf32, #tpu.memory_space<vmem>>, %arg2: memref<5547x32xf32, #tpu.memory_space<vmem>>, %arg3: memref<1x32xf32, #tpu.memory_space<vmem>>, %arg4: memref<32x128xf32, #tpu.memory_space<vmem>>, %arg5: memref<1x128xf32, #tpu.memory_space<vmem>>, %arg6: memref<16x128xf32, #tpu.memory_space<vmem>>) attributes {dimension_semantics = [#tpu.dimension_semantics<parallel>], iteration_bounds = array<i64: 1>, scalar_prefetch = 0 : i64, scratch_operands = 0 : i64, tpu.core_type = #tpu.core_type<tc>, window_params = [{transform_indices = @transform_0, window_bounds = array<i64: 16, 5547>}, {pipeline_mode = #tpu.pipeline_mode<synchronous>, transform_indices = @transform_1, window_bounds = array<i64: 5547, 32>}, {pipeline_mode = #tpu.pipeline_mode<synchronous>, transform_indices = @transform_2, window_bounds = array<i64: 1, 32>}, {pipeline_mode = #tpu.pipeline_mode<synchronous>, transform_indices = @transform_3, window_bounds = array<i64: 32, 128>}, {pipeline_mode = #tpu.pipeline_mode<synchronous>, transform_indices = @transform_4, window_bounds = array<i64: 1, 128>}, {transform_indices = @transform_5, window_bounds = array<i64: 16, 128>}]} {
    %c0 = arith.constant 0 : index
    %c0_0 = arith.constant 0 : index
    %0 = vector.load %arg1[%c0, %c0_0] : memref<16x5547xf32, #tpu.memory_space<vmem>>, vector<16x5547xf32>
    %c0_1 = arith.constant 0 : index
    %c0_2 = arith.constant 0 : index
    %1 = vector.load %arg2[%c0_1, %c0_2] : memref<5547x32xf32, #tpu.memory_space<vmem>>, vector<5547x32xf32>
    %cst = arith.constant dense<0.000000e+00> : vector<16x32xf32>
    %2 = tpu.matmul %0, %1, %cst {dimension_numbers = #tpu.dot_dimension_numbers<[1], [0], [0], [1], [0, 0, 1, 1], [], []>} : vector<16x5547xf32>, vector<5547x32xf32>, vector<16x32xf32> -> vector<16x32xf32>
    %c0_3 = arith.constant 0 : index
    %c0_4 = arith.constant 0 : index
    %3 = vector.load %arg3[%c0_3, %c0_4] : memref<1x32xf32, #tpu.memory_space<vmem>>, vector<1x32xf32>
    %4 = vector.broadcast %3 : vector<1x32xf32> to vector<16x32xf32>
    %5 = arith.addf %2, %4 : vector<16x32xf32>
    %cst_5 = arith.constant 0.000000e+00 : f32
    %6 = vector.broadcast %cst_5 : f32 to vector<16x32xf32>
    %7 = arith.maximumf %5, %6 : vector<16x32xf32>
    %c0_6 = arith.constant 0 : index
    %c0_7 = arith.constant 0 : index
    %8 = vector.load %arg4[%c0_6, %c0_7] : memref<32x128xf32, #tpu.memory_space<vmem>>, vector<32x128xf32>
    %cst_8 = arith.constant dense<0.000000e+00> : vector<16x128xf32>
    %9 = tpu.matmul %7, %8, %cst_8 {dimension_numbers = #tpu.dot_dimension_numbers<[1], [0], [0], [1], [0, 0, 1, 1], [], []>} : vector<16x32xf32>, vector<32x128xf32>, vector<16x128xf32> -> vector<16x128xf32>
    %c0_9 = arith.constant 0 : index
    %c0_10 = arith.constant 0 : index
    %10 = vector.load %arg5[%c0_9, %c0_10] : memref<1x128xf32, #tpu.memory_space<vmem>>, vector<1x128xf32>
    %11 = vector.broadcast %10 : vector<1x128xf32> to vector<16x128xf32>
    %12 = arith.addf %9, %11 : vector<16x128xf32>
    %c0_11 = arith.constant 0 : index
    %c0_12 = arith.constant 0 : index
    %13 = vector.load %arg6[%c0_11, %c0_12] : memref<16x128xf32, #tpu.memory_space<vmem>>, vector<16x128xf32>
    tpu.vector_store %arg6[%c0_11, %c0_12], %12 {strides = array<i32>} : memref<16x128xf32, #tpu.memory_space<vmem>>, vector<16x128xf32>,
    return
  }
  func.func @transform_0(%arg0: i32) -> (i32, i32) {
    %c0_i32 = arith.constant 0 : i32
    %c0_i32_0 = arith.constant 0 : i32
    return %arg0, %c0_i32 : i32, i32
  }
  func.func @transform_1(%arg0: i32) -> (i32, i32) {
    %c0_i32 = arith.constant 0 : i32
    %c0_i32_0 = arith.constant 0 : i32
    %c0_i32_1 = arith.constant 0 : i32
    return %c0_i32, %c0_i32_0 : i32, i32
  }
  func.func @transform_2(%arg0: i32) -> (i32, i32) {
    %c0_i32 = arith.constant 0 : i32
    %c0_i32_0 = arith.constant 0 : i32
    %c0_i32_1 = arith.constant 0 : i32
    return %c0_i32, %c0_i32_0 : i32, i32
  }
  func.func @transform_3(%arg0: i32) -> (i32, i32) {
    %c0_i32 = arith.constant 0 : i32
    %c0_i32_0 = arith.constant 0 : i32
    %c0_i32_1 = arith.constant 0 : i32
    return %c0_i32, %c0_i32_0 : i32, i32
  }
  func.func @transform_4(%arg0: i32) -> (i32, i32) {
    %c0_i32 = arith.constant 0 : i32
    %c0_i32_0 = arith.constant 0 : i32
    %c0_i32_1 = arith.constant 0 : i32
    return %c0_i32, %c0_i32_0 : i32, i32
  }
  func.func @transform_5(%arg0: i32) -> (i32, i32) {
    %c0_i32 = arith.constant 0 : i32
    %c0_i32_0 = arith.constant 0 : i32
    return %arg0, %c0_i32 : i32, i32
  }
}

</mosaic_0001>

<bundles_post_ra>
// kernel: gnome_forward.1
= control target key start
LH: loop header
LB: loop body
LE: loop exit
PB: predicated region body
PF: predicated region fallthrough
CT: control target
= control target key end

     0   :  { %10 = vsyncpa [#allocation3], 0  ;;  %v5246_v54 = vmov 1983009808   ;;  %v905_v56 = vlaneseq  ;;  %vm1776_vm0 = vcmask 351232   ;;  %vm1781_vm1 = vcmask 1042432   ;;  %s7955_s0 = inlined_call_operand.vmem [shape: f32[2,5547], index: 0, kind: input, shape index: {}]   ;;  %s7956_s1 = inlined_call_operand.vmem [shape: f32[5547,32], index: 1, kind: input, shape index: {}]   ;;  %s7957_s2 = inlined_call_operand.vmem [shape: f32[1,32], index: 2, kind: input, shape index: {}]   ;;  %s7958_s3 = inlined_call_operand.vmem [shape: f32[32,128], index: 3, kind: input, shape index: {}]   ;;  %s7959_s4 = inlined_call_operand.vmem [shape: f32[1,128], index: 4, kind: input, shape index: {}]   ;;  %s7960_s5 = inlined_call_operand.hbm [shape: f32[2,128], index: 5, kind: output, shape index: {}]  }
   0x1   :  { %v125_v0 = vld [vmem:[%s7956_s1 + $0x80] sm:$0xff]  ;;  %v126_v1 = vld [vmem:[%s7956_s1 + $0x88] sm:$0xff]  ;;  %v127_v12 = vld [vmem:[%s7956_s1 + $0x90] sm:$0xff]  ;;  %v903_v55 = vunpack.c.l.s4 %v5246_v54  ;;  %vm5248_vm2 = vmmov 1   ;;  %vm3448_vm4 = vcmask 261120  }
   0x2   :  { %v4370_v2 = vpack.c.bf16 %v126_v1, %v125_v0  ;;  %v157_v3 = vld [vmem:[%s7956_s1 + $0x180] sm:$0xff]  ;;  %v158_v4 = vld [vmem:[%s7956_s1 + $0x188] sm:$0xff]  ;;  %v128_v13 = vld [vmem:[%s7956_s1 + $0x98] sm:$0xff] }
   0x3   :  { %v109_v5 = vld [vmem:[%s7956_s1] sm:$0xff]  ;;  %v4402_v6 = vpack.c.bf16 %v158_v4, %v157_v3  ;;  %v110_v7 = vld [vmem:[%s7956_s1 + $0x8] sm:$0xff]  ;;  %v159_v14 = vld [vmem:[%s7956_s1 + $0x190] sm:$0xff]  ;;  %v4374_v15 = vpack.c.bf16 %v128_v13, %v127_v12 }
   0x4   :  { %v141_v8 = vld [vmem:[%s7956_s1 + $0x100] sm:$0xff]  ;;  %v142_v9 = vld [vmem:[%s7956_s1 + $0x108] sm:$0xff]  ;;  %4371 = vmatprep.subr.bf16.mxu0 %v4370_v2  ;;  %v4372_v10 = vpack.c.bf16 %v110_v7, %v109_v5  ;;  %v160_v16 = vld [vmem:[%s7956_s1 + $0x198] sm:$0xff]  ;;  %v906_v7 = vshrl.u32 %v905_v56, 7 }
   0x5   :  { %v4404_v11 = vpack.c.bf16 %v142_v9, %v141_v8  ;;  %4403 = vmatprep.subr.bf16.mxu1 %v4402_v6  ;;  %v111_v17 = vld [vmem:[%s7956_s1 + $0x10] sm:$0xff]  ;;  %v112_v18 = vld [vmem:[%s7956_s1 + $0x18] sm:$0xff]  ;;  %v4406_v19 = vpack.c.bf16 %v160_v16, %v159_v14  ;;  %v129_v23 = vld [vmem:[%s7956_s1 + $0xa0] sm:$0xff]  ;;  %v904_v6 = vunpack.c.0.s8 %v903_v55 }
   0x6   :  { %4373 = vmatpush3.bf16.msra.mxu0 %v4372_v10  ;;  %v4376_v20 = vpack.c.bf16 %v112_v18, %v111_v17  ;;  %v143_v21 = vld [vmem:[%s7956_s1 + $0x110] sm:$0xff]  ;;  %v144_v22 = vld [vmem:[%s7956_s1 + $0x118] sm:$0xff]  ;;  %v130_v25 = vld [vmem:[%s7956_s1 + $0xa8] sm:$0xff] }
   0x7   :  { %4405 = vmatpush3.bf16.msra.mxu1 %v4404_v11  ;;  %4375 = vmatprep.subr.bf16.mxu0 %v4374_v15  ;;  %v4408_v24 = vpack.c.bf16 %v144_v22, %v143_v21  ;;  %v161_v26 = vld [vmem:[%s7956_s1 + $0x1a0] sm:$0xff]  ;;  %v162_v27 = vld [vmem:[%s7956_s1 + $0x1a8] sm:$0xff]  ;;  %v4378_v28 = vpack.c.bf16 %v130_v25, %v129_v23  ;;  %v131_v34 = vld [vmem:[%s7956_s1 + $0xb0] sm:$0xff]  ;;  %v5462_v25 = vsub.s32 %v904_v6, %v906_v7 }
   0x8   :  { %4407 = vmatprep.subr.bf16.mxu1 %v4406_v19  ;;  %v4410_v29 = vpack.c.bf16 %v162_v27, %v161_v26  ;;  %v113_v30 = vld [vmem:[%s7956_s1 + $0x20] sm:$0xff]  ;;  %v114_v31 = vld [vmem:[%s7956_s1 + $0x28] sm:$0xff]  ;;  %v132_v35 = vld [vmem:[%s7956_s1 + $0xb8] sm:$0xff] }
   0x9   :  { %v145_v32 = vld [vmem:[%s7956_s1 + $0x120] sm:$0xff]  ;;  %v146_v33 = vld [vmem:[%s7956_s1 + $0x128] sm:$0xff]  ;;  %v4380_v36 = vpack.c.bf16 %v114_v31, %v113_v30  ;;  %v163_v38 = vld [vmem:[%s7956_s1 + $0x1b0] sm:$0xff]  ;;  %v4382_v41 = vpack.c.bf16 %v132_v35, %v131_v34 }
   0xa   :  { %4377 = vmatpush3.bf16.msra.mxu0 %v4376_v20  ;;  %v4412_v37 = vpack.c.bf16 %v146_v33, %v145_v32  ;;  %v164_v39 = vld [vmem:[%s7956_s1 + $0x1b8] sm:$0xff]  ;;  %v115_v40 = vld [vmem:[%s7956_s1 + $0x30] sm:$0xff]  ;;  %v133_v46 = vld [vmem:[%s7956_s1 + $0xc0] sm:$0xff] }
   0xb   :  { %4409 = vmatpush3.bf16.msra.mxu1 %v4408_v24  ;;  %4379 = vmatprep.subr.bf16.mxu0 %v4378_v28  ;;  %v4414_v42 = vpack.c.bf16 %v164_v39, %v163_v38  ;;  %v116_v43 = vld [vmem:[%s7956_s1 + $0x38] sm:$0xff]  ;;  %v147_v44 = vld [vmem:[%s7956_s1 + $0x130] sm:$0xff]  ;;  %v134_v47 = vld [vmem:[%s7956_s1 + $0xc8] sm:$0xff] }
   0xc   :  { %4411 = vmatprep.subr.bf16.mxu1 %v4410_v29  ;;  %v148_v45 = vld [vmem:[%s7956_s1 + $0x138] sm:$0xff]  ;;  %v165_v48 = vld [vmem:[%s7956_s1 + $0x1c0] sm:$0xff]  ;;  %v166_v49 = vld [vmem:[%s7956_s1 + $0x1c8] sm:$0xff]  ;;  %v4384_v50 = vpack.c.bf16 %v116_v43, %v115_v40  ;;  %v4386_v57 = vpack.c.bf16 %v134_v47, %v133_v46 }
   0xd   :  { %v4416_v51 = vpack.c.bf16 %v148_v45, %v147_v44  ;;  %v117_v52 = vld [vmem:[%s7956_s1 + $0x40] sm:$0xff]  ;;  %v118_v53 = vld [vmem:[%s7956_s1 + $0x48] sm:$0xff]  ;;  %v4418_v58 = vpack.c.bf16 %v166_v49, %v165_v48  ;;  %v135_v61 = vld [vmem:[%s7956_s1 + $0xd0] sm:$0xff] }
   0xe   :  { %4381 = vmatpush3.bf16.msra.mxu0 %v4380_v36  ;;  %v149_v59 = vld [vmem:[%s7956_s1 + $0x140] sm:$0xff]  ;;  %v150_v60 = vld [vmem:[%s7956_s1 + $0x148] sm:$0xff]  ;;  %v136_v62 = vld [vmem:[%s7956_s1 + $0xd8] sm:$0xff]  ;;  %v4388_v1 = vpack.c.bf16 %v118_v53, %v117_v52 }
   0xf   :  { %4413 = vmatpush3.bf16.msra.mxu1 %v4412_v37  ;;  %4383 = vmatprep.subr.bf16.mxu0 %v4382_v41  ;;  %v167_v63 = vld [vmem:[%s7956_s1 + $0x1d0] sm:$0xff]  ;;  %v168_v0 = vld [vmem:[%s7956_s1 + $0x1d8] sm:$0xff]  ;;  %v4420_v2 = vpack.c.bf16 %v150_v60, %v149_v59  ;;  %v4390_v8 = vpack.c.bf16 %v136_v62, %v135_v61  ;;  %v137_v11 = vld [vmem:[%s7956_s1 + $0xe0] sm:$0xff] }
  0x10   :  { %4415 = vmatprep.subr.bf16.mxu1 %v4414_v42  ;;  %v119_v3 = vld [vmem:[%s7956_s1 + $0x50] sm:$0xff]  ;;  %v120_v4 = vld [vmem:[%s7956_s1 + $0x58] sm:$0xff]  ;;  %v4422_v9 = vpack.c.bf16 %v168_v0, %v167_v63  ;;  %v138_v12 = vld [vmem:[%s7956_s1 + $0xe8] sm:$0xff] }
  0x11   :  { %v151_v5 = vld [vmem:[%s7956_s1 + $0x150] sm:$0xff]  ;;  %v152_v10 = vld [vmem:[%s7956_s1 + $0x158] sm:$0xff]  ;;  %v169_v13 = vld [vmem:[%s7956_s1 + $0x1e0] sm:$0xff]  ;;  %v4392_v19 = vpack.c.bf16 %v120_v4, %v119_v3  ;;  %v4394_v26 = vpack.c.bf16 %v138_v12, %v137_v11 }
  0x12   :  { %4385 = vmatpush3.bf16.msra.mxu0 %v4384_v50  ;;  %v170_v14 = vld [vmem:[%s7956_s1 + $0x1e8] sm:$0xff]  ;;  %v121_v15 = vld [vmem:[%s7956_s1 + $0x60] sm:$0xff]  ;;  %v4424_v20 = vpack.c.bf16 %v152_v10, %v151_v5  ;;  %v139_v21 = vld [vmem:[%s7956_s1 + $0xf0] sm:$0xff] }
  0x13   :  { %4417 = vmatpush3.bf16.msra.mxu1 %v4416_v51  ;;  %4387 = vmatprep.subr.bf16.mxu0 %v4386_v57  ;;  %v122_v16 = vld [vmem:[%s7956_s1 + $0x68] sm:$0xff]  ;;  %v153_v17 = vld [vmem:[%s7956_s1 + $0x160] sm:$0xff]  ;;  %v140_v22 = vld [vmem:[%s7956_s1 + $0xf8] sm:$0xff]  ;;  %v4426_v27 = vpack.c.bf16 %v170_v14, %v169_v13 }
  0x14   :  { %4419 = vmatprep.subr.bf16.mxu1 %v4418_v58  ;;  %v154_v18 = vld [vmem:[%s7956_s1 + $0x168] sm:$0xff]  ;;  %v171_v23 = vld [vmem:[%s7956_s1 + $0x1f0] sm:$0xff]  ;;  %v172_v24 = vld [vmem:[%s7956_s1 + $0x1f8] sm:$0xff]  ;;  %v4396_v31 = vpack.c.bf16 %v122_v16, %v121_v15  ;;  %v4398_v39 = vpack.c.bf16 %v140_v22, %v139_v21 }
  0x15   :  { %v5090_v28 = vld [vmem:[%s7955_s0] ss:$88 sps:$4 sm:$0xff]   ;;  %v5092_v29 = vld [vmem:[%s7955_s0 + $0xb0] ss:$88 sps:$4 sm:$0xff]   ;;  %v5094_v30 = vld [vmem:[%s7955_s0 + $0x4] ss:$88 sps:$4 sm:$0xff]   ;;  %v4428_v32 = vpack.c.bf16 %v154_v18, %v153_v17  ;;  %v4430_v40 = vpack.c.bf16 %v172_v24, %v171_v23 }
  0x16   :  { %4389 = vmatpush3.bf16.msra.mxu0 %v4388_v1  ;;  %v5095_v33 = vld [vmem:[%s7955_s0 + $0xb4] ss:$88 sps:$4 sm:$0xff]   ;;  %v124_v35 = vld [vmem:[%s7956_s1 + $0x78] sm:$0xff]  ;;  %v908_v36 = vrot.slane %v5090_v28, %v5462_v25  ;;  %v922_v37 = vrot.slane %v5092_v29, %v5462_v25  ;;  %v915_v38 = vrot.slane %v5094_v30, %v5462_v25  ;;  %v189_v44 = vld [vmem:[%s7956_s1 + $0x280] sm:$0xff] }
  0x17   :  { %4421 = vmatpush3.bf16.msra.mxu1 %v4420_v2  ;;  %4391 = vmatprep.subr.bf16.mxu0 %v4390_v8  ;;  %v123_v34 = vld [vmem:[%s7956_s1 + $0x70] sm:$0xff]  ;;  %v156_v42 = vld [vmem:[%s7956_s1 + $0x178] sm:$0xff]  ;;  %v929_v43 = vrot.slane %v5095_v33, %v5462_v25  ;;  %v190_v46 = vld [vmem:[%s7956_s1 + $0x288] sm:$0xff] }
  0x18   :  { %4423 = vmatprep.subr.bf16.mxu1 %v4422_v9  ;;  %v155_v41 = vld [vmem:[%s7956_s1 + $0x170] sm:$0xff]  ;;  %v931_v45 = vcombine.high %v908_v36, %v922_v37  ;;  %v221_v47 = vld [vmem:[%s7956_s1 + $0x380] sm:$0xff]  ;;  %v222_v48 = vld [vmem:[%s7956_s1 + $0x388] sm:$0xff]  ;;  %v4400_v50 = vpack.c.bf16 %v124_v35, %v123_v34  ;;  %v4434_v54 = vpack.c.bf16 %v190_v46, %v189_v44  ;;  %v930_v62 = vcombine.low %v908_v36, %v922_v37 }
  0x19   :  { %v933_v49 = vcombine.high %v915_v38, %v929_v43  ;;  %v4432_v51 = vpack.c.bf16 %v156_v42, %v155_v41  ;;  %v173_v52 = vld [vmem:[%s7956_s1 + $0x200] sm:$0xff]  ;;  %v174_v53 = vld [vmem:[%s7956_s1 + $0x208] sm:$0xff]  ;;  %v4466_v55 = vpack.c.bf16 %v222_v48, %v221_v47  ;;  %v191_v58 = vld [vmem:[%s7956_s1 + $0x290] sm:$0xff]  ;;  %v932_v63 = vcombine.low %v915_v38, %v929_v43 }
  0x1a   :  { %4393 = vmatpush3.bf16.msra.mxu0 %v4392_v19  ;;  %v205_v56 = vld [vmem:[%s7956_s1 + $0x300] sm:$0xff]  ;;  %v206_v57 = vld [vmem:[%s7956_s1 + $0x308] sm:$0xff]  ;;  %1849 = vmatprep.mubr.f32.mxu0 %v931_v45  ;;  %v192_v59 = vld [vmem:[%s7956_s1 + $0x298] sm:$0xff]  ;;  %v4436_v0 = vpack.c.bf16 %v174_v53, %v173_v52 }
  0x1b   :  { %4425 = vmatpush3.bf16.msra.mxu1 %v4424_v20  ;;  %4395 = vmatprep.subr.bf16.mxu0 %v4394_v26  ;;  %v223_v60 = vld [vmem:[%s7956_s1 + $0x390] sm:$0xff]  ;;  %v224_v61 = vld [vmem:[%s7956_s1 + $0x398] sm:$0xff]  ;;  %v4468_v1 = vpack.c.bf16 %v206_v57, %v205_v56  ;;  %v4438_v4 = vpack.c.bf16 %v192_v59, %v191_v58  ;;  %v193_v8 = vld [vmem:[%s7956_s1 + $0x2a0] sm:$0xff] }
  0x1c   :  { %4427 = vmatprep.subr.bf16.mxu1 %v4426_v27  ;;  %1924 = vmatprep.mubr.f32.mxu1 %v933_v49  ;;  %v175_v2 = vld [vmem:[%s7956_s1 + $0x210] sm:$0xff]  ;;  %v176_v3 = vld [vmem:[%s7956_s1 + $0x218] sm:$0xff]  ;;  %v4470_v5 = vpack.c.bf16 %v224_v61, %v223_v60  ;;  %v194_v9 = vld [vmem:[%s7956_s1 + $0x2a8] sm:$0xff] }
  0x1d   :  { %v207_v6 = vld [vmem:[%s7956_s1 + $0x310] sm:$0xff]  ;;  %v208_v7 = vld [vmem:[%s7956_s1 + $0x318] sm:$0xff]  ;;  %v225_v10 = vld [vmem:[%s7956_s1 + $0x3a0] sm:$0xff]  ;;  %v4440_v12 = vpack.c.bf16 %v176_v3, %v175_v2  ;;  %v4442_v17 = vpack.c.bf16 %v194_v9, %v193_v8 }
  0x1e   :  { %4397 = vmatpush3.bf16.msra.mxu0 %v4396_v31  ;;  %v226_v11 = vld [vmem:[%s7956_s1 + $0x3a8] sm:$0xff]  ;;  %v4472_v13 = vpack.c.bf16 %v208_v7, %v207_v6  ;;  %v177_v14 = vld [vmem:[%s7956_s1 + $0x220] sm:$0xff]  ;;  %v195_v20 = vld [vmem:[%s7956_s1 + $0x2b0] sm:$0xff] }
  0x1f   :  { %4429 = vmatpush3.bf16.msra.mxu1 %v4428_v32  ;;  %4399 = vmatprep.subr.bf16.mxu0 %v4398_v39  ;;  %v178_v15 = vld [vmem:[%s7956_s1 + $0x228] sm:$0xff]  ;;  %v209_v16 = vld [vmem:[%s7956_s1 + $0x320] sm:$0xff]  ;;  %v4474_v18 = vpack.c.bf16 %v226_v11, %v225_v10  ;;  %v196_v21 = vld [vmem:[%s7956_s1 + $0x2b8] sm:$0xff] }
  0x20   :  { %4431 = vmatprep.subr.bf16.mxu1 %v4430_v40  ;;  %v210_v19 = vld [vmem:[%s7956_s1 + $0x328] sm:$0xff]  ;;  %v227_v22 = vld [vmem:[%s7956_s1 + $0x3b0] sm:$0xff]  ;;  %v228_v23 = vld [vmem:[%s7956_s1 + $0x3b8] sm:$0xff]  ;;  %v4444_v29 = vpack.c.bf16 %v178_v15, %v177_v14  ;;  %v4446_v34 = vpack.c.bf16 %v196_v21, %v195_v20 }
  0x21   :  { %v179_v24 = vld [vmem:[%s7956_s1 + $0x230] sm:$0xff]  ;;  %v180_v26 = vld [vmem:[%s7956_s1 + $0x238] sm:$0xff]  ;;  %v4476_v30 = vpack.c.bf16 %v210_v19, %v209_v16  ;;  %v197_v31 = vld [vmem:[%s7956_s1 + $0x2c0] sm:$0xff]  ;;  %v4478_v35 = vpack.c.bf16 %v228_v23, %v227_v22 }
  0x22   :  { %4401 = vmatpush3.bf16.msra.mxu0 %v4400_v50  ;;  %v211_v27 = vld [vmem:[%s7956_s1 + $0x330] sm:$0xff]  ;;  %v212_v28 = vld [vmem:[%s7956_s1 + $0x338] sm:$0xff]  ;;  %v198_v32 = vld [vmem:[%s7956_s1 + $0x2c8] sm:$0xff]  ;;  %v4448_v39 = vpack.c.bf16 %v180_v26, %v179_v24 }
  0x23   :  { %4433 = vmatpush3.bf16.msra.mxu1 %v4432_v51  ;;  %4435 = vmatprep.subr.bf16.mxu0 %v4434_v54  ;;  %v229_v33 = vld [vmem:[%s7956_s1 + $0x3c0] sm:$0xff]  ;;  %v230_v36 = vld [vmem:[%s7956_s1 + $0x3c8] sm:$0xff]  ;;  %v4480_v41 = vpack.c.bf16 %v212_v28, %v211_v27  ;;  %v4450_v47 = vpack.c.bf16 %v198_v32, %v197_v31  ;;  %v199_v51 = vld [vmem:[%s7956_s1 + $0x2d0] sm:$0xff] }
  0x24   :  { %4467 = vmatprep.subr.bf16.mxu1 %v4466_v55  ;;  %v5096_v37 = vld [vmem:[%s7955_s0 + $0x160] ss:$88 sps:$4 sm:$0xff]   ;;  %v5098_v38 = vld [vmem:[%s7955_s0 + $0x210] ss:$88 sps:$4 sm:$0xff]   ;;  %v5100_v45 = vld [vmem:[%s7955_s0 + $0x164] ss:$88 sps:$4 sm:$0xff]   ;;  %v4482_v48 = vpack.c.bf16 %v230_v36, %v229_v33 }
  0x25   :  { %1850 = vmatmul.mubr.f32.vlgmr.msra.gmra.mrb[0].mxu0 %v930_v62  ;;  %v181_v40 = vld [vmem:[%s7956_s1 + $0x240] sm:$0xff]  ;;  %v182_v42 = vld [vmem:[%s7956_s1 + $0x248] sm:$0xff]  ;;  %v1304_v43 = vrot.slane %v5096_v37, %v5462_v25  ;;  %v1318_v44 = vrot.slane %v5098_v38, %v5462_v25  ;;  %v200_v52 = vld [vmem:[%s7956_s1 + $0x2d8] sm:$0xff]  ;;  %v1311_v56 = vrot.slane %v5100_v45, %v5462_v25 }
  0x26   :  { %1925 = vmatmul.mubr.f32.vlgmr.msra.gmra.mrb[0].mxu1 %v932_v63  ;;  %4437 = vmatpush3.bf16.msra.mxu0 %v4436_v0  ;;  %v5101_v46 = vld [vmem:[%s7955_s0 + $0x214] ss:$88 sps:$4 sm:$0xff]   ;;  %v213_v49 = vld [vmem:[%s7956_s1 + $0x340] sm:$0xff]  ;;  %v232_v54 = vld [vmem:[%s7956_s1 + $0x3d8] sm:$0xff]  ;;  %v4452_v58 = vpack.c.bf16 %v182_v42, %v181_v40 }
  0x27   :  { %4469 = vmatpush3.bf16.msra.mxu1 %v4468_v1  ;;  %4439 = vmatprep.subr.bf16.mxu0 %v4438_v4  ;;  %v214_v50 = vld [vmem:[%s7956_s1 + $0x348] sm:$0xff]  ;;  %v231_v53 = vld [vmem:[%s7956_s1 + $0x3d0] sm:$0xff]  ;;  %v1327_v55 = vcombine.high %v1304_v43, %v1318_v44  ;;  %v1325_v57 = vrot.slane %v5101_v46, %v5462_v25  ;;  %v184_v60 = vld [vmem:[%s7956_s1 + $0x258] sm:$0xff]  ;;  %v1326_v63 = vcombine.low %v1304_v43, %v1318_v44 }
  0x28   :  { %4471 = vmatprep.subr.bf16.mxu1 %v4470_v5  ;;  %v183_v59 = vld [vmem:[%s7956_s1 + $0x250] sm:$0xff]  ;;  %v216_v62 = vld [vmem:[%s7956_s1 + $0x358] sm:$0xff]  ;;  %v4484_v0 = vpack.c.bf16 %v214_v50, %v213_v49  ;;  %v201_v1 = vld [vmem:[%s7956_s1 + $0x2e0] sm:$0xff]  ;;  %v4454_v5 = vpack.c.bf16 %v200_v52, %v199_v51  ;;  %v4486_v6 = vpack.c.bf16 %v232_v54, %v231_v53 }
  0x29   :  { %v215_v61 = vld [vmem:[%s7956_s1 + $0x350] sm:$0xff]  ;;  %v1329_v2 = vcombine.high %v1311_v56, %v1325_v57  ;;  %v1328_v3 = vcombine.low %v1311_v56, %v1325_v57  ;;  %v5102_v4 = vld [vmem:[%s7955_s0 + $0x8] ss:$88 sps:$4 sm:$0xff]   ;;  %v5106_v8 = vld [vmem:[%s7955_s0 + $0xc] ss:$88 sps:$4 sm:$0xff]   ;;  %1854 = vmatprep.mubr.f32.mxu0 %v1327_v55  ;;  %v4456_v20 = vpack.c.bf16 %v184_v60, %v183_v59 }
  0x2a   :  { %4441 = vmatpush3.bf16.msra.mxu0 %v4440_v12  ;;  %v5104_v7 = vld [vmem:[%s7955_s0 + $0xb8] ss:$88 sps:$4 sm:$0xff]   ;;  %v5107_v9 = vld [vmem:[%s7955_s0 + $0xbc] ss:$88 sps:$4 sm:$0xff]   ;;  %v202_v10 = vld [vmem:[%s7956_s1 + $0x2e8] sm:$0xff]  ;;  %v4488_v21 = vpack.c.bf16 %v216_v62, %v215_v61 }
  0x2b   :  { %4473 = vmatpush3.bf16.msra.mxu1 %v4472_v13  ;;  %4443 = vmatprep.subr.bf16.mxu0 %v4442_v17  ;;  %v233_v11 = vld [vmem:[%s7956_s1 + $0x3e0] sm:$0xff]  ;;  %v234_v12 = vld [vmem:[%s7956_s1 + $0x3e8] sm:$0xff]  ;;  %v5677_v13 = vrot.slane %v5102_v4, %v5462_v25  ;;  %v5689_v17 = vrot.slane %v5104_v7, %v5462_v25  ;;  %v5695_v19 = vrot.slane %v5107_v9, %v5462_v25  ;;  %v203_v23 = vld [vmem:[%s7956_s1 + $0x2f0] sm:$0xff] }
  0x2c   :  { %4475 = vmatprep.subr.bf16.mxu1 %v4474_v18  ;;  %1929 = vmatprep.mubr.f32.mxu1 %v1329_v2  ;;  %v185_v14 = vld [vmem:[%s7956_s1 + $0x260] sm:$0xff]  ;;  %v186_v15 = vld [vmem:[%s7956_s1 + $0x268] sm:$0xff]  ;;  %v5692_v18 = vrot.slane %v5106_v8, %v5462_v25  ;;  %v4458_v24 = vpack.c.bf16 %v202_v10, %v201_v1  ;;  %v4490_v26 = vpack.c.bf16 %v234_v12, %v233_v11  ;;  %v204_v28 = vld [vmem:[%s7956_s1 + $0x2f8] sm:$0xff] }
  0x2d   :  { %v217_v16 = vld [vmem:[%s7956_s1 + $0x360] sm:$0xff]  ;;  %1855 = vmatmul.mubr.f32.gmra.mrb[2].mxu0 %v1326_v63  ;;  %1930 = vmatmul.mubr.f32.gmra.mrb[2].mxu1 %v1328_v3  ;;  %v218_v22 = vld [vmem:[%s7956_s1 + $0x368] sm:$0xff]  ;;  %v967_v27 = vcombine.high %v5677_v13, %v5689_v17  ;;  %v187_v32 = vld [vmem:[%s7956_s1 + $0x270] sm:$0xff]  ;;  %v4462_v40 = vpack.c.bf16 %v204_v28, %v203_v23  ;;  %v966_v62 = vcombine.low %v5677_v13, %v5689_v17 }
  0x2e   :  { %4445 = vmatpush3.bf16.msra.mxu0 %v4444_v29  ;;  %v235_v29 = vld [vmem:[%s7956_s1 + $0x3f0] sm:$0xff]  ;;  %v969_v31 = vcombine.high %v5692_v18, %v5695_v19  ;;  %v188_v33 = vld [vmem:[%s7956_s1 + $0x278] sm:$0xff]  ;;  %v4492_v36 = vpack.c.bf16 %v218_v22, %v217_v16  ;;  %v253_v38 = vld [vmem:[%s7956_s1 + $0x480] sm:$0xff]  ;;  %v968_v63 = vcombine.low %v5692_v18, %v5695_v19 }
  0x2f   :  { %4477 = vmatpush3.bf16.msra.mxu1 %v4476_v30  ;;  %4447 = vmatprep.subr.bf16.mxu0 %v4446_v34  ;;  %v236_v30 = vld [vmem:[%s7956_s1 + $0x3f8] sm:$0xff]  ;;  %v219_v34 = vld [vmem:[%s7956_s1 + $0x370] sm:$0xff]  ;;  %v285_v42 = vld [vmem:[%s7956_s1 + $0x580] sm:$0xff] }
  0x30   :  { %4479 = vmatprep.subr.bf16.mxu1 %v4478_v35  ;;  %1999 = vmatprep.mubr.f32.mxu0 %v967_v27  ;;  %v4460_v35 = vpack.c.bf16 %v186_v15, %v185_v14  ;;  %v220_v37 = vld [vmem:[%s7956_s1 + $0x378] sm:$0xff]  ;;  %v5108_v43 = vld [vmem:[%s7955_s0 + $0x168] ss:$88 sps:$4 sm:$0xff]   ;;  %v5112_v46 = vld [vmem:[%s7955_s0 + $0x16c] ss:$88 sps:$4 sm:$0xff]  }
  0x31   :  { %v5110_v44 = vld [vmem:[%s7955_s0 + $0x218] ss:$88 sps:$4 sm:$0xff]   ;;  %2074 = vmatprep.mubr.f32.mxu1 %v969_v31  ;;  %v286_v45 = vld [vmem:[%s7956_s1 + $0x588] sm:$0xff]  ;;  %v4496_v49 = vpack.c.bf16 %v220_v37, %v219_v34  ;;  %v237_v51 = vld [vmem:[%s7956_s1 + $0x400] sm:$0xff]  ;;  %v1340_v56 = vrot.slane %v5108_v43, %v5462_v25  ;;  %v1347_v60 = vrot.slane %v5112_v46, %v5462_v25 }
  0x32   :  { %4449 = vmatpush3.bf16.msra.mxu0 %v4448_v39  ;;  %v254_v39 = vld [vmem:[%s7956_s1 + $0x488] sm:$0xff]  ;;  %v4530_v52 = vpack.c.bf16 %v286_v45, %v285_v42  ;;  %v269_v54 = vld [vmem:[%s7956_s1 + $0x500] sm:$0xff]  ;;  %v1354_v57 = vrot.slane %v5110_v44, %v5462_v25  ;;  %v256_v59 = vld [vmem:[%s7956_s1 + $0x498] sm:$0xff] }
  0x33   :  { %4481 = vmatpush3.bf16.msra.mxu1 %v4480_v41  ;;  %4451 = vmatprep.subr.bf16.mxu0 %v4450_v47  ;;  %v4494_v41 = vpack.c.bf16 %v236_v30, %v235_v29  ;;  %v5113_v47 = vld [vmem:[%s7955_s0 + $0x21c] ss:$88 sps:$4 sm:$0xff]   ;;  %v4498_v50 = vpack.c.bf16 %v254_v39, %v253_v38  ;;  %v238_v53 = vld [vmem:[%s7956_s1 + $0x408] sm:$0xff]  ;;  %v257_v10 = vld [vmem:[%s7956_s1 + $0x4a0] sm:$0xff] }
  0x34   :  { %4483 = vmatprep.subr.bf16.mxu1 %v4482_v48  ;;  %v4464_v48 = vpack.c.bf16 %v188_v33, %v187_v32  ;;  %v270_v55 = vld [vmem:[%s7956_s1 + $0x508] sm:$0xff]  ;;  %v1361_v61 = vrot.slane %v5113_v47, %v5462_v25  ;;  %v288_v1 = vld [vmem:[%s7956_s1 + $0x598] sm:$0xff]  ;;  %v4500_v2 = vpack.c.bf16 %v238_v53, %v237_v51  ;;  %v239_v4 = vld [vmem:[%s7956_s1 + $0x410] sm:$0xff]  ;;  %v1362_v16 = vcombine.low %v1340_v56, %v1354_v57 }
  0x35   :  { %v4532_v3 = vpack.c.bf16 %v270_v55, %v269_v54  ;;  %v271_v8 = vld [vmem:[%s7956_s1 + $0x510] sm:$0xff]  ;;  %v272_v9 = vld [vmem:[%s7956_s1 + $0x518] sm:$0xff]  ;;  %v258_v13 = vld [vmem:[%s7956_s1 + $0x4a8] sm:$0xff] }
  0x36   :  { %4453 = vmatpush3.bf16.msra.mxu0 %v4452_v58  ;;  %v255_v58 = vld [vmem:[%s7956_s1 + $0x490] sm:$0xff]  ;;  %v1365_v12 = vcombine.high %v1347_v60, %v1361_v61  ;;  %v289_v14 = vld [vmem:[%s7956_s1 + $0x5a0] sm:$0xff]  ;;  %v290_v15 = vld [vmem:[%s7956_s1 + $0x5a8] sm:$0xff]  ;;  %v1364_v17 = vcombine.low %v1347_v60, %v1361_v61  ;;  %v4536_v19 = vpack.c.bf16 %v272_v9, %v271_v8  ;;  %v4506_v22 = vpack.c.bf16 %v258_v13, %v257_v10 }
  0x37   :  { %4485 = vmatpush3.bf16.msra.mxu1 %v4484_v0  ;;  %4455 = vmatprep.subr.bf16.mxu0 %v4454_v5  ;;  %v287_v0 = vld [vmem:[%s7956_s1 + $0x590] sm:$0xff]  ;;  %v240_v5 = vld [vmem:[%s7956_s1 + $0x418] sm:$0xff]  ;;  %v4502_v7 = vpack.c.bf16 %v256_v59, %v255_v58  ;;  %v4538_v23 = vpack.c.bf16 %v290_v15, %v289_v14  ;;  %v261_v37 = vld [vmem:[%s7956_s1 + $0x4c0] sm:$0xff] }
  0x38   :  { %4487 = vmatprep.subr.bf16.mxu1 %v4486_v6  ;;  %v1363_v6 = vcombine.high %v1340_v56, %v1354_v57  ;;  %v4534_v11 = vpack.c.bf16 %v288_v1, %v287_v0  ;;  %v4504_v18 = vpack.c.bf16 %v240_v5, %v239_v4  ;;  %v259_v27 = vld [vmem:[%s7956_s1 + $0x4b0] sm:$0xff]  ;;  %v260_v28 = vld [vmem:[%s7956_s1 + $0x4b8] sm:$0xff]  ;;  %v294_v42 = vld [vmem:[%s7956_s1 + $0x5c8] sm:$0xff] }
  0x39   :  { %v291_v29 = vld [vmem:[%s7956_s1 + $0x5b0] sm:$0xff]  ;;  %v292_v30 = vld [vmem:[%s7956_s1 + $0x5b8] sm:$0xff]  ;;  %v4510_v38 = vpack.c.bf16 %v260_v28, %v259_v27  ;;  %v245_v43 = vld [vmem:[%s7956_s1 + $0x440] sm:$0xff] }
  0x3a   :  { %4457 = vmatpush3.bf16.msra.mxu0 %v4456_v20  ;;  %v241_v20 = vld [vmem:[%s7956_s1 + $0x420] sm:$0xff]  ;;  %v243_v31 = vld [vmem:[%s7956_s1 + $0x430] sm:$0xff]  ;;  %v244_v32 = vld [vmem:[%s7956_s1 + $0x438] sm:$0xff]  ;;  %v4542_v39 = vpack.c.bf16 %v292_v30, %v291_v29 }
  0x3b   :  { %4489 = vmatpush3.bf16.msra.mxu1 %v4488_v21  ;;  %4459 = vmatprep.subr.bf16.mxu0 %v4458_v24  ;;  %v242_v21 = vld [vmem:[%s7956_s1 + $0x428] sm:$0xff]  ;;  %v273_v24 = vld [vmem:[%s7956_s1 + $0x520] sm:$0xff]  ;;  %v4512_v46 = vpack.c.bf16 %v244_v32, %v243_v31  ;;  %v263_v55 = vld [vmem:[%s7956_s1 + $0x4d0] sm:$0xff] }
  0x3c   :  { %4491 = vmatprep.subr.bf16.mxu1 %v4490_v26  ;;  %v274_v26 = vld [vmem:[%s7956_s1 + $0x528] sm:$0xff]  ;;  %v4508_v33 = vpack.c.bf16 %v242_v21, %v241_v20  ;;  %v5116_v45 = vld [vmem:[%s7955_s0 + $0xc0] ss:$88 sps:$4 sm:$0xff]   ;;  %v5119_v51 = vld [vmem:[%s7955_s0 + $0xc4] ss:$88 sps:$4 sm:$0xff]  }
  0x3d   :  { %v4540_v34 = vpack.c.bf16 %v274_v26, %v273_v24  ;;  %v5114_v44 = vld [vmem:[%s7955_s0 + $0x10] ss:$88 sps:$4 sm:$0xff]   ;;  %v277_v53 = vld [vmem:[%s7956_s1 + $0x540] sm:$0xff]  ;;  %v5887_v57 = vrot.slane %v5116_v45, %v5462_v25  ;;  %v264_v58 = vld [vmem:[%s7956_s1 + $0x4d8] sm:$0xff] }
  0x3e   :  { %4461 = vmatpush3.bf16.msra.mxu0 %v4460_v35  ;;  %v275_v35 = vld [vmem:[%s7956_s1 + $0x530] sm:$0xff]  ;;  %v278_v54 = vld [vmem:[%s7956_s1 + $0x548] sm:$0xff]  ;;  %v5884_v56 = vrot.slane %v5114_v44, %v5462_v25  ;;  %v296_v60 = vld [vmem:[%s7956_s1 + $0x5d8] sm:$0xff]  ;;  %v4518_v5 = vpack.c.bf16 %v264_v58, %v263_v55 }
  0x3f   :  { %4493 = vmatpush3.bf16.msra.mxu1 %v4492_v36  ;;  %4463 = vmatprep.subr.bf16.mxu0 %v4462_v40  ;;  %v276_v36 = vld [vmem:[%s7956_s1 + $0x538] sm:$0xff]  ;;  %v262_v40 = vld [vmem:[%s7956_s1 + $0x4c8] sm:$0xff]  ;;  %v295_v59 = vld [vmem:[%s7956_s1 + $0x5d0] sm:$0xff] }
  0x40   :  { %4495 = vmatprep.subr.bf16.mxu1 %v4494_v41  ;;  %v293_v41 = vld [vmem:[%s7956_s1 + $0x5c0] sm:$0xff]  ;;  %v4544_v47 = vpack.c.bf16 %v276_v36, %v275_v35  ;;  %v1003_v0 = vcombine.high %v5884_v56, %v5887_v57  ;;  %v280_v8 = vld [vmem:[%s7956_s1 + $0x558] sm:$0xff]  ;;  %v266_v10 = vld [vmem:[%s7956_s1 + $0x4e8] sm:$0xff]  ;;  %v1002_v58 = vcombine.low %v5884_v56, %v5887_v57 }
  0x41   :  { %v265_v9 = vld [vmem:[%s7956_s1 + $0x4e0] sm:$0xff]  ;;  %v282_v20 = vld [vmem:[%s7956_s1 + $0x568] sm:$0xff]  ;;  %v267_v21 = vld [vmem:[%s7956_s1 + $0x4f0] sm:$0xff] }
  0x42   :  { %4465 = vmatpush3.bf16.msra.mxu0 %v4464_v48  ;;  %v4514_v48 = vpack.c.bf16 %v262_v40, %v261_v37  ;;  %v249_v15 = vld [vmem:[%s7956_s1 + $0x460] sm:$0xff]  ;;  %v300_v24 = vld [vmem:[%s7956_s1 + $0x5f8] sm:$0xff]  ;;  %v251_v26 = vld [vmem:[%s7956_s1 + $0x470] sm:$0xff] }
  0x43   :  { %4497 = vmatpush3.bf16.msra.mxu1 %v4496_v49  ;;  %4499 = vmatprep.subr.bf16.mxu0 %v4498_v50  ;;  %v246_v49 = vld [vmem:[%s7956_s1 + $0x448] sm:$0xff]  ;;  %v252_v27 = vld [vmem:[%s7956_s1 + $0x478] sm:$0xff]  ;;  %v283_v28 = vld [vmem:[%s7956_s1 + $0x570] sm:$0xff] }
  0x44   :  { %4531 = vmatprep.subr.bf16.mxu1 %v4530_v52  ;;  %v5118_v50 = vld [vmem:[%s7955_s0 + $0x14] ss:$88 sps:$4 sm:$0xff]   ;;  %v4546_v52 = vpack.c.bf16 %v294_v42, %v293_v41  ;;  %v4516_v1 = vpack.c.bf16 %v246_v49, %v245_v43  ;;  %v284_v31 = vld [vmem:[%s7956_s1 + $0x578] sm:$0xff]  ;;  %v317_v32 = vld [vmem:[%s7956_s1 + $0x680] sm:$0xff]  ;;  %v4528_v42 = vpack.c.bf16 %v252_v27, %v251_v26 }
  0x45   :  { %2000 = vmatmul.mubr.f32.vlgmr.msra.gmra.mrb[4].mxu0 %v966_v62  ;;  %v5899_v61 = vrot.slane %v5118_v50, %v5462_v25  ;;  %v5902_v62 = vrot.slane %v5119_v51, %v5462_v25  ;;  %v349_v36 = vld [vmem:[%s7956_s1 + $0x780] sm:$0xff]  ;;  %v5120_v37 = vld [vmem:[%s7955_s0 + $0x170] ss:$88 sps:$4 sm:$0xff]   ;;  %v5124_v40 = vld [vmem:[%s7955_s0 + $0x174] ss:$88 sps:$4 sm:$0xff]   ;;  %v4560_v43 = vpack.c.bf16 %v284_v31, %v283_v28 }
  0x46   :  { %2075 = vmatmul.mubr.f32.vlgmr.msra.gmra.mrb[4].mxu1 %v968_v63  ;;  %4501 = vmatpush3.bf16.msra.mxu0 %v4500_v2  ;;  %v247_v63 = vld [vmem:[%s7956_s1 + $0x450] sm:$0xff]  ;;  %v4548_v2 = vpack.c.bf16 %v278_v54, %v277_v53  ;;  %v5125_v41 = vld [vmem:[%s7955_s0 + $0x224] ss:$88 sps:$4 sm:$0xff]   ;;  %v334_v49 = vld [vmem:[%s7956_s1 + $0x708] sm:$0xff]  ;;  %v1376_v50 = vrot.slane %v5120_v37, %v5462_v25  ;;  %v1383_v54 = vrot.slane %v5124_v40, %v5462_v25 }
  0x47   :  { %4533 = vmatpush3.bf16.msra.mxu1 %v4532_v3  ;;  %2004 = vmatprep.mubr.f32.mxu0 %v1363_v6  ;;  %v248_v3 = vld [vmem:[%s7956_s1 + $0x458] sm:$0xff]  ;;  %v1005_v4 = vcombine.high %v5899_v61, %v5902_v62  ;;  %v4550_v6 = vpack.c.bf16 %v296_v60, %v295_v59  ;;  %v301_v45 = vld [vmem:[%s7956_s1 + $0x600] sm:$0xff]  ;;  %v1397_v55 = vrot.slane %v5125_v41, %v5462_v25  ;;  %v351_v60 = vld [vmem:[%s7956_s1 + $0x790] sm:$0xff] }
  0x48   :  { %4503 = vmatprep.subr.bf16.mxu0 %v4502_v7  ;;  %4535 = vmatprep.subr.bf16.mxu1 %v4534_v11  ;;  %v279_v7 = vld [vmem:[%s7956_s1 + $0x550] sm:$0xff]  ;;  %v297_v11 = vld [vmem:[%s7956_s1 + $0x5e0] sm:$0xff]  ;;  %v4520_v13 = vpack.c.bf16 %v248_v3, %v247_v63  ;;  %v320_v53 = vld [vmem:[%s7956_s1 + $0x698] sm:$0xff]  ;;  %v1004_v59 = vcombine.low %v5899_v61, %v5902_v62 }
  0x49   :  { %2079 = vmatprep.mubr.f32.mxu1 %v1365_v12  ;;  %2005 = vmatmul.mubr.f32.gmra.mrb[6].mxu0 %v1362_v16  ;;  %v298_v12 = vld [vmem:[%s7956_s1 + $0x5e8] sm:$0xff]  ;;  %v4552_v14 = vpack.c.bf16 %v280_v8, %v279_v7  ;;  %v352_v63 = vld [vmem:[%s7956_s1 + $0x798] sm:$0xff]  ;;  %v335_v57 = vld [vmem:[%s7956_s1 + $0x710] sm:$0xff]  ;;  %v1401_v7 = vcombine.high %v1383_v54, %v1397_v55 }
  0x4a   :  { %2080 = vmatmul.mubr.f32.gmra.mrb[6].mxu1 %v1364_v17  ;;  %4505 = vmatpush3.bf16.msra.mxu0 %v4504_v18  ;;  %v250_v16 = vld [vmem:[%s7956_s1 + $0x468] sm:$0xff]  ;;  %v4522_v17 = vpack.c.bf16 %v266_v10, %v265_v9  ;;  %v4554_v18 = vpack.c.bf16 %v298_v12, %v297_v11  ;;  %v304_v56 = vld [vmem:[%s7956_s1 + $0x618] sm:$0xff]  ;;  %v353_v8 = vld [vmem:[%s7956_s1 + $0x7a0] sm:$0xff]  ;;  %v1400_v12 = vcombine.low %v1383_v54, %v1397_v55 }
  0x4b   :  { %4537 = vmatpush3.bf16.msra.mxu1 %v4536_v19  ;;  %4507 = vmatprep.subr.bf16.mxu0 %v4506_v22  ;;  %v281_v19 = vld [vmem:[%s7956_s1 + $0x560] sm:$0xff]  ;;  %v268_v22 = vld [vmem:[%s7956_s1 + $0x4f8] sm:$0xff]  ;;  %v4524_v29 = vpack.c.bf16 %v250_v16, %v249_v15  ;;  %v354_v9 = vld [vmem:[%s7956_s1 + $0x7a8] sm:$0xff] }
  0x4c   :  { %4539 = vmatprep.subr.bf16.mxu1 %v4538_v23  ;;  %2149 = vmatprep.mubr.f32.mxu0 %v1003_v0  ;;  %v299_v23 = vld [vmem:[%s7956_s1 + $0x5f0] sm:$0xff]  ;;  %v4556_v30 = vpack.c.bf16 %v282_v20, %v281_v19  ;;  %v336_v3 = vld [vmem:[%s7956_s1 + $0x718] sm:$0xff]  ;;  %v305_v10 = vld [vmem:[%s7956_s1 + $0x620] sm:$0xff] }
  0x4d   :  { %2224 = vmatprep.mubr.f32.mxu1 %v1005_v4  ;;  %v4558_v35 = vpack.c.bf16 %v300_v24, %v299_v23  ;;  %v321_v4 = vld [vmem:[%s7956_s1 + $0x6a0] sm:$0xff]  ;;  %v338_v15 = vld [vmem:[%s7956_s1 + $0x728] sm:$0xff]  ;;  %v324_v19 = vld [vmem:[%s7956_s1 + $0x6b8] sm:$0xff]  ;;  %v4602_v23 = vpack.c.bf16 %v354_v9, %v353_v8 }
  0x4e   :  { %4509 = vmatpush3.bf16.msra.mxu0 %v4508_v33  ;;  %v318_v33 = vld [vmem:[%s7956_s1 + $0x688] sm:$0xff]  ;;  %v355_v20 = vld [vmem:[%s7956_s1 + $0x7b0] sm:$0xff]  ;;  %v308_v31 = vld [vmem:[%s7956_s1 + $0x638] sm:$0xff] }
  0x4f   :  { %4541 = vmatpush3.bf16.msra.mxu1 %v4540_v34  ;;  %4511 = vmatprep.subr.bf16.mxu0 %v4510_v38  ;;  %v4526_v34 = vpack.c.bf16 %v268_v22, %v267_v21  ;;  %v5122_v38 = vld [vmem:[%s7955_s0 + $0x220] ss:$88 sps:$4 sm:$0xff]   ;;  %v4562_v44 = vpack.c.bf16 %v318_v33, %v317_v32  ;;  %v5130_v27 = vld [vmem:[%s7955_s0 + $0x1c] ss:$88 sps:$4 sm:$0xff]   ;;  %v5131_v32 = vld [vmem:[%s7955_s0 + $0xcc] ss:$88 sps:$4 sm:$0xff]  }
  0x50   :  { %4543 = vmatprep.subr.bf16.mxu1 %v4542_v39  ;;  %v350_v39 = vld [vmem:[%s7956_s1 + $0x788] sm:$0xff]  ;;  %v1390_v51 = vrot.slane %v5122_v38, %v5462_v25  ;;  %v356_v21 = vld [vmem:[%s7956_s1 + $0x7b8] sm:$0xff]  ;;  %v339_v33 = vld [vmem:[%s7956_s1 + $0x730] sm:$0xff]  ;;  %v6106_v38 = vrot.slane %v5130_v27, %v5462_v25 }
  0x51   :  { %v5126_v24 = vld [vmem:[%s7955_s0 + $0x18] ss:$88 sps:$4 sm:$0xff]   ;;  %v5128_v26 = vld [vmem:[%s7955_s0 + $0xc8] ss:$88 sps:$4 sm:$0xff]   ;;  %v4606_v40 = vpack.c.bf16 %v356_v21, %v355_v20  ;;  %vm5074_vm3 = vmpackc.low %vm1781_vm1, %vm5248_vm2 }
  0x52   :  { %4513 = vmatpush3.bf16.msra.mxu0 %v4512_v46  ;;  %v4594_v46 = vpack.c.bf16 %v350_v39, %v349_v36  ;;  %v1399_v61 = vcombine.high %v1376_v50, %v1390_v51  ;;  %v1398_v11 = vcombine.low %v1376_v50, %v1390_v51  ;;  %v6100_v36 = vrot.slane %v5126_v24, %v5462_v25  ;;  %v326_v41 = vld [vmem:[%s7956_s1 + $0x6c8] sm:$0xff]  ;;  %v327_v55 = vld [vmem:[%s7956_s1 + $0x6d0] sm:$0xff]  ;;  %v313_v9 = vld [vmem:[%s7956_s1 + $0x660] sm:$0xff] }
  0x53   :  { %4545 = vmatpush3.bf16.msra.mxu1 %v4544_v47  ;;  %4515 = vmatprep.subr.bf16.mxu0 %v4514_v48  ;;  %v302_v47 = vld [vmem:[%s7956_s1 + $0x608] sm:$0xff]  ;;  %v333_v48 = vld [vmem:[%s7956_s1 + $0x700] sm:$0xff]  ;;  %v6103_v37 = vrot.slane %v5128_v26, %v5462_v25  ;;  %v316_v20 = vld [vmem:[%s7956_s1 + $0x678] sm:$0xff] }
  0x54   :  { %4547 = vmatprep.subr.bf16.mxu1 %v4546_v52  ;;  %v319_v52 = vld [vmem:[%s7956_s1 + $0x690] sm:$0xff]  ;;  %v4564_v0 = vpack.c.bf16 %v302_v47, %v301_v45  ;;  %v310_v50 = vld [vmem:[%s7956_s1 + $0x648] sm:$0xff]  ;;  %v348_v24 = vld [vmem:[%s7956_s1 + $0x778] sm:$0xff] }
  0x55   :  { %v4566_v62 = vpack.c.bf16 %v320_v53, %v319_v52  ;;  %v1039_v45 = vcombine.high %v6100_v36, %v6103_v37  ;;  %v341_v53 = vld [vmem:[%s7956_s1 + $0x740] sm:$0xff]  ;;  %v342_v54 = vld [vmem:[%s7956_s1 + $0x748] sm:$0xff]  ;;  %v347_v21 = vld [vmem:[%s7956_s1 + $0x770] sm:$0xff] }
  0x56   :  { %4517 = vmatpush3.bf16.msra.mxu0 %v4516_v1  ;;  %v4596_v1 = vpack.c.bf16 %v334_v49, %v333_v48  ;;  %v309_v49 = vld [vmem:[%s7956_s1 + $0x640] sm:$0xff]  ;;  %v382_v27 = vld [vmem:[%s7956_s1 + $0x888] sm:$0xff] }
  0x57   :  { %4549 = vmatpush3.bf16.msra.mxu1 %v4548_v2  ;;  %4519 = vmatprep.subr.bf16.mxu0 %v4518_v5  ;;  %v303_v2 = vld [vmem:[%s7956_s1 + $0x610] sm:$0xff]  ;;  %v322_v5 = vld [vmem:[%s7956_s1 + $0x6a8] sm:$0xff]  ;;  %v381_v26 = vld [vmem:[%s7956_s1 + $0x880] sm:$0xff] }
  0x58   :  { %4551 = vmatprep.subr.bf16.mxu1 %v4550_v6  ;;  %v4598_v6 = vpack.c.bf16 %v352_v63, %v351_v60  ;;  %v4568_v16 = vpack.c.bf16 %v304_v56, %v303_v2  ;;  %v4570_v22 = vpack.c.bf16 %v322_v5, %v321_v4  ;;  %v360_v60 = vld [vmem:[%s7956_s1 + $0x7d8] sm:$0xff]  ;;  %v4580_v63 = vpack.c.bf16 %v310_v50, %v309_v49  ;;  %v330_v4 = vld [vmem:[%s7956_s1 + $0x6e8] sm:$0xff]  ;;  %v361_v5 = vld [vmem:[%s7956_s1 + $0x7e0] sm:$0xff] }
  0x59   :  { %v312_v2 = vld [vmem:[%s7956_s1 + $0x658] sm:$0xff]  ;;  %v383_v50 = vld [vmem:[%s7956_s1 + $0x890] sm:$0xff] }
  0x5a   :  { %4521 = vmatpush3.bf16.msra.mxu0 %v4520_v13  ;;  %v306_v13 = vld [vmem:[%s7956_s1 + $0x628] sm:$0xff] }
  0x5b   :  { %4553 = vmatpush3.bf16.msra.mxu1 %v4552_v14  ;;  %4523 = vmatprep.subr.bf16.mxu0 %v4522_v17  ;;  %v337_v14 = vld [vmem:[%s7956_s1 + $0x720] sm:$0xff]  ;;  %v4600_v17 = vpack.c.bf16 %v336_v3, %v335_v57  ;;  %v4572_v28 = vpack.c.bf16 %v306_v13, %v305_v10  ;;  %v314_v10 = vld [vmem:[%s7956_s1 + $0x668] sm:$0xff] }
  0x5c   :  { %4555 = vmatprep.subr.bf16.mxu1 %v4554_v18  ;;  %v323_v18 = vld [vmem:[%s7956_s1 + $0x6b0] sm:$0xff]  ;;  %v329_v3 = vld [vmem:[%s7956_s1 + $0x6e0] sm:$0xff] }
  0x5d   :  { %v4574_v39 = vpack.c.bf16 %v324_v19, %v323_v18  ;;  %v345_v13 = vld [vmem:[%s7956_s1 + $0x760] sm:$0xff]  ;;  %v364_v18 = vld [vmem:[%s7956_s1 + $0x7f8] sm:$0xff]  ;;  %v315_v19 = vld [vmem:[%s7956_s1 + $0x670] sm:$0xff] }
  0x5e   :  { %4525 = vmatpush3.bf16.msra.mxu0 %v4524_v29  ;;  %v4604_v29 = vpack.c.bf16 %v338_v15, %v337_v14  ;;  %v346_v14 = vld [vmem:[%s7956_s1 + $0x768] sm:$0xff]  ;;  %v331_v15 = vld [vmem:[%s7956_s1 + $0x6f0] sm:$0xff] }
  0x5f   :  { %4557 = vmatpush3.bf16.msra.mxu1 %v4556_v30  ;;  %4527 = vmatprep.subr.bf16.mxu0 %v4526_v34  ;;  %v307_v30 = vld [vmem:[%s7956_s1 + $0x630] sm:$0xff]  ;;  %v340_v34 = vld [vmem:[%s7956_s1 + $0x738] sm:$0xff] }
  0x60   :  { %4559 = vmatprep.subr.bf16.mxu1 %v4558_v35  ;;  %v325_v35 = vld [vmem:[%s7956_s1 + $0x6c0] sm:$0xff]  ;;  %v4576_v47 = vpack.c.bf16 %v308_v31, %v307_v30  ;;  %v4608_v48 = vpack.c.bf16 %v340_v34, %v339_v33  ;;  %v5132_v31 = vld [vmem:[%s7955_s0 + $0x178] ss:$88 sps:$4 sm:$0xff]   ;;  %v414_v33 = vld [vmem:[%s7956_s1 + $0x988] sm:$0xff] }
  0x61   :  { %v4578_v51 = vpack.c.bf16 %v326_v41, %v325_v35  ;;  %v413_v30 = vld [vmem:[%s7956_s1 + $0x980] sm:$0xff]  ;;  %v5136_v34 = vld [vmem:[%s7955_s0 + $0x17c] ss:$88 sps:$4 sm:$0xff]   ;;  %v4626_v41 = vpack.c.bf16 %v382_v27, %v381_v26 }
  0x62   :  { %4529 = vmatpush3.bf16.msra.mxu0 %v4528_v42  ;;  %v357_v42 = vld [vmem:[%s7956_s1 + $0x7c0] sm:$0xff]  ;;  %v420_v26 = vld [vmem:[%s7956_s1 + $0x9b8] sm:$0xff] }
  0x63   :  { %4561 = vmatpush3.bf16.msra.mxu1 %v4560_v43  ;;  %4563 = vmatprep.subr.bf16.mxu0 %v4562_v44  ;;  %v358_v43 = vld [vmem:[%s7956_s1 + $0x7c8] sm:$0xff]  ;;  %v6118_v44 = vrot.slane %v5131_v32, %v5462_v25 }
  0x64   :  { %4595 = vmatprep.subr.bf16.mxu1 %v4594_v46  ;;  %v4610_v52 = vpack.c.bf16 %v358_v43, %v357_v42  ;;  %v5134_v32 = vld [vmem:[%s7955_s0 + $0x228] ss:$88 sps:$4 sm:$0xff]   ;;  %v5137_v35 = vld [vmem:[%s7955_s0 + $0x22c] ss:$88 sps:$4 sm:$0xff]  }
  0x65   :  { %2150 = vmatmul.mubr.f32.vlgmr.msra.gmra.mrb[8].mxu0 %v1002_v58  ;;  %v1041_v46 = vcombine.high %v6106_v38, %v6118_v44  ;;  %v328_v58 = vld [vmem:[%s7956_s1 + $0x6d8] sm:$0xff]  ;;  %v365_v42 = vld [vmem:[%s7956_s1 + $0x800] sm:$0xff]  ;;  %v366_v43 = vld [vmem:[%s7956_s1 + $0x808] sm:$0xff]  ;;  %v1426_v49 = vrot.slane %v5134_v32, %v5462_v25 }
  0x66   :  { %2225 = vmatmul.mubr.f32.vlgmr.msra.gmra.mrb[8].mxu1 %v1004_v59  ;;  %4565 = vmatpush3.bf16.msra.mxu0 %v4564_v0  ;;  %v359_v59 = vld [vmem:[%s7956_s1 + $0x7d0] sm:$0xff]  ;;  %v4612_v0 = vpack.c.bf16 %v342_v54, %v341_v53  ;;  %v4582_v56 = vpack.c.bf16 %v328_v58, %v327_v55  ;;  %v416_v53 = vld [vmem:[%s7956_s1 + $0x998] sm:$0xff]  ;;  %v1419_v54 = vrot.slane %v5136_v34, %v5462_v25 }
  0x67   :  { %4597 = vmatpush3.bf16.msra.mxu1 %v4596_v1  ;;  %2154 = vmatprep.mubr.f32.mxu0 %v1399_v61  ;;  %v311_v1 = vld [vmem:[%s7956_s1 + $0x650] sm:$0xff]  ;;  %v4614_v57 = vpack.c.bf16 %v360_v60, %v359_v59  ;;  %v1433_v55 = vrot.slane %v5137_v35, %v5462_v25  ;;  %v1038_v58 = vcombine.low %v6100_v36, %v6103_v37  ;;  %v372_v32 = vld [vmem:[%s7956_s1 + $0x838] sm:$0xff] }
  0x68   :  { %4567 = vmatprep.subr.bf16.mxu0 %v4566_v62  ;;  %4599 = vmatprep.subr.bf16.mxu1 %v4598_v6  ;;  %v343_v61 = vld [vmem:[%s7956_s1 + $0x750] sm:$0xff]  ;;  %v344_v62 = vld [vmem:[%s7956_s1 + $0x758] sm:$0xff]  ;;  %v362_v6 = vld [vmem:[%s7956_s1 + $0x7e8] sm:$0xff]  ;;  %v1040_v59 = vcombine.low %v6106_v38, %v6118_v44  ;;  %v4628_v36 = vpack.c.bf16 %v366_v43, %v365_v42 }
  0x69   :  { %2229 = vmatprep.mubr.f32.mxu1 %v1401_v7  ;;  %2155 = vmatmul.mubr.f32.gmra.mrb[10].mxu0 %v1398_v11  ;;  %v4584_v7 = vpack.c.bf16 %v312_v2, %v311_v1  ;;  %v4616_v8 = vpack.c.bf16 %v344_v62, %v343_v61  ;;  %v4586_v11 = vpack.c.bf16 %v330_v4, %v329_v3  ;;  %v367_v60 = vld [vmem:[%s7956_s1 + $0x810] sm:$0xff]  ;;  %v400_v1 = vld [vmem:[%s7956_s1 + $0x918] sm:$0xff]  ;;  %v385_v38 = vld [vmem:[%s7956_s1 + $0x8a0] sm:$0xff] }
  0x6a   :  { %2230 = vmatmul.mubr.f32.gmra.mrb[10].mxu1 %v1400_v12  ;;  %4569 = vmatpush3.bf16.msra.mxu0 %v4568_v16  ;;  %v4618_v12 = vpack.c.bf16 %v362_v6, %v361_v5  ;;  %v332_v16 = vld [vmem:[%s7956_s1 + $0x6f8] sm:$0xff]  ;;  %v5140_v61 = vld [vmem:[%s7955_s0 + $0xd0] ss:$88 sps:$4 sm:$0xff]   ;;  %v5143_v3 = vld [vmem:[%s7955_s0 + $0xd4] ss:$88 sps:$4 sm:$0xff]   ;;  %v1437_v5 = vcombine.high %v1419_v54, %v1433_v55  ;;  %v1436_v6 = vcombine.low %v1419_v54, %v1433_v55 }
  0x6b   :  { %4601 = vmatpush3.bf16.msra.mxu1 %v4600_v17  ;;  %4571 = vmatprep.subr.bf16.mxu0 %v4570_v22  ;;  %v363_v17 = vld [vmem:[%s7956_s1 + $0x7f0] sm:$0xff]  ;;  %v4588_v22 = vpack.c.bf16 %v314_v10, %v313_v9  ;;  %v5138_v44 = vld [vmem:[%s7955_s0 + $0x20] ss:$88 sps:$4 sm:$0xff]   ;;  %v5142_v62 = vld [vmem:[%s7955_s0 + $0x24] ss:$88 sps:$4 sm:$0xff]  }
  0x6c   :  { %4603 = vmatprep.subr.bf16.mxu1 %v4602_v23  ;;  %2299 = vmatprep.mubr.f32.mxu0 %v1039_v45  ;;  %v4620_v23 = vpack.c.bf16 %v346_v14, %v345_v13  ;;  %v4658_v45 = vpack.c.bf16 %v414_v33, %v413_v30  ;;  %v418_v9 = vld [vmem:[%s7956_s1 + $0x9a8] sm:$0xff]  ;;  %v6301_v10 = vrot.slane %v5138_v44, %v5462_v25  ;;  %v401_v13 = vld [vmem:[%s7956_s1 + $0x920] sm:$0xff]  ;;  %v403_v35 = vld [vmem:[%s7956_s1 + $0x930] sm:$0xff] }
  0x6d   :  { %2374 = vmatprep.mubr.f32.mxu1 %v1041_v46  ;;  %v397_v46 = vld [vmem:[%s7956_s1 + $0x900] sm:$0xff]  ;;  %v6313_v14 = vrot.slane %v5140_v61, %v5462_v25  ;;  %v422_v43 = vld [vmem:[%s7956_s1 + $0x9c8] sm:$0xff]  ;;  %v392_v54 = vld [vmem:[%s7956_s1 + $0x8d8] sm:$0xff] }
  0x6e   :  { %4573 = vmatpush3.bf16.msra.mxu0 %v4572_v28  ;;  %v4590_v28 = vpack.c.bf16 %v332_v16, %v331_v15  ;;  %v6316_v15 = vrot.slane %v5142_v62, %v5462_v25  ;;  %v6319_v16 = vrot.slane %v5143_v3, %v5462_v25  ;;  %v421_v42 = vld [vmem:[%s7956_s1 + $0x9c0] sm:$0xff]  ;;  %v423_v55 = vld [vmem:[%s7956_s1 + $0x9d0] sm:$0xff]  ;;  %v378_v62 = vld [vmem:[%s7956_s1 + $0x868] sm:$0xff] }
  0x6f   :  { %4605 = vmatpush3.bf16.msra.mxu1 %v4604_v29  ;;  %4575 = vmatprep.subr.bf16.mxu0 %v4574_v39  ;;  %v4622_v29 = vpack.c.bf16 %v364_v18, %v363_v17  ;;  %v4592_v39 = vpack.c.bf16 %v316_v20, %v315_v19  ;;  %v402_v19 = vld [vmem:[%s7956_s1 + $0x928] sm:$0xff]  ;;  %v387_v20 = vld [vmem:[%s7956_s1 + $0x8b0] sm:$0xff]  ;;  %v1075_v27 = vcombine.high %v6301_v10, %v6313_v14  ;;  %v393_v44 = vld [vmem:[%s7956_s1 + $0x8e0] sm:$0xff] }
  0x70   :  { %4607 = vmatprep.subr.bf16.mxu1 %v4606_v40  ;;  %v4624_v40 = vpack.c.bf16 %v348_v24, %v347_v21  ;;  %v419_v24 = vld [vmem:[%s7956_s1 + $0x9b0] sm:$0xff]  ;;  %v4668_v30 = vpack.c.bf16 %v402_v19, %v401_v13  ;;  %v377_v61 = vld [vmem:[%s7956_s1 + $0x860] sm:$0xff]  ;;  %v428_v13 = vld [vmem:[%s7956_s1 + $0x9f8] sm:$0xff] }
  0x71   :  { %v4670_v34 = vpack.c.bf16 %v420_v26, %v419_v24  ;;  %v411_v19 = vld [vmem:[%s7956_s1 + $0x970] sm:$0xff]  ;;  %v477_v26 = vld [vmem:[%s7956_s1 + $0xb80] sm:$0xff] }
  0x72   :  { %4577 = vmatpush3.bf16.msra.mxu0 %v4576_v47  ;;  %v398_v47 = vld [vmem:[%s7956_s1 + $0x908] sm:$0xff] }
  0x73   :  { %4609 = vmatpush3.bf16.msra.mxu1 %v4608_v48  ;;  %4579 = vmatprep.subr.bf16.mxu0 %v4578_v51  ;;  %v1412_v48 = vrot.slane %v5132_v31, %v5462_v25  ;;  %v384_v51 = vld [vmem:[%s7956_s1 + $0x898] sm:$0xff]  ;;  %v4660_v37 = vpack.c.bf16 %v398_v47, %v397_v46  ;;  %v371_v31 = vld [vmem:[%s7956_s1 + $0x830] sm:$0xff]  ;;  %v373_v47 = vld [vmem:[%s7956_s1 + $0x840] sm:$0xff] }
  0x74   :  { %4611 = vmatprep.subr.bf16.mxu1 %v4610_v52  ;;  %v415_v52 = vld [vmem:[%s7956_s1 + $0x990] sm:$0xff] }
  0x75   :  { %v1435_v2 = vcombine.high %v1412_v48, %v1426_v49  ;;  %v1434_v4 = vcombine.low %v1412_v48, %v1426_v49  ;;  %v374_v48 = vld [vmem:[%s7956_s1 + $0x848] sm:$0xff] }
  0x76   :  { %4581 = vmatpush3.bf16.msra.mxu0 %v4580_v63  ;;  %v368_v63 = vld [vmem:[%s7956_s1 + $0x818] sm:$0xff] }
  0x77   :  { %4613 = vmatpush3.bf16.msra.mxu1 %v4612_v0  ;;  %4583 = vmatprep.subr.bf16.mxu0 %v4582_v56  ;;  %v399_v0 = vld [vmem:[%s7956_s1 + $0x910] sm:$0xff]  ;;  %v4630_v56 = vpack.c.bf16 %v384_v51, %v383_v50  ;;  %v4632_v17 = vpack.c.bf16 %v368_v63, %v367_v60  ;;  %v4674_v50 = vpack.c.bf16 %v422_v43, %v421_v42  ;;  %v405_v51 = vld [vmem:[%s7956_s1 + $0x940] sm:$0xff] }
  0x78   :  { %4615 = vmatprep.subr.bf16.mxu1 %v4614_v57  ;;  %v4662_v57 = vpack.c.bf16 %v416_v53, %v415_v52  ;;  %v4664_v18 = vpack.c.bf16 %v400_v1, %v399_v0  ;;  %v406_v52 = vld [vmem:[%s7956_s1 + $0x948] sm:$0xff]  ;;  %v391_v53 = vld [vmem:[%s7956_s1 + $0x8d0] sm:$0xff]  ;;  %v376_v0 = vld [vmem:[%s7956_s1 + $0x858] sm:$0xff] }
  0x79   :  { %v4676_v60 = vpack.c.bf16 %v406_v52, %v405_v51  ;;  %v375_v63 = vld [vmem:[%s7956_s1 + $0x850] sm:$0xff]  ;;  %v4646_v1 = vpack.c.bf16 %v392_v54, %v391_v53  ;;  %v480_v51 = vld [vmem:[%s7956_s1 + $0xb98] sm:$0xff]  ;;  %v5150_v54 = vld [vmem:[%s7955_s0 + $0x28] ss:$88 sps:$4 sm:$0xff]  }
  0x7a   :  { %4585 = vmatpush3.bf16.msra.mxu0 %v4584_v7  ;;  %v386_v7 = vld [vmem:[%s7956_s1 + $0x8a8] sm:$0xff]  ;;  %v4648_v3 = vpack.c.bf16 %v376_v0, %v375_v63  ;;  %v1076_v63 = vcombine.low %v6316_v15, %v6319_v16  ;;  %v431_v0 = vld [vmem:[%s7956_s1 + $0xa10] sm:$0xff] }
  0x7b   :  { %4617 = vmatpush3.bf16.msra.mxu1 %v4616_v8  ;;  %4587 = vmatprep.subr.bf16.mxu0 %v4586_v11  ;;  %v417_v8 = vld [vmem:[%s7956_s1 + $0x9a0] sm:$0xff]  ;;  %v4634_v21 = vpack.c.bf16 %v386_v7, %v385_v38  ;;  %v408_v38 = vld [vmem:[%s7956_s1 + $0x958] sm:$0xff]  ;;  %v395_v7 = vld [vmem:[%s7956_s1 + $0x8f0] sm:$0xff] }
  0x7c   :  { %4619 = vmatprep.subr.bf16.mxu1 %v4618_v12  ;;  %v369_v11 = vld [vmem:[%s7956_s1 + $0x820] sm:$0xff]  ;;  %v370_v12 = vld [vmem:[%s7956_s1 + $0x828] sm:$0xff] }
  0x7e   :  { %4589 = vmatpush3.bf16.msra.mxu0 %v4588_v22  ;;  %v4666_v22 = vpack.c.bf16 %v418_v9, %v417_v8 }
  0x7f   :  { %4621 = vmatpush3.bf16.msra.mxu1 %v4620_v23  ;;  %4591 = vmatprep.subr.bf16.mxu0 %v4590_v28  ;;  %v388_v23 = vld [vmem:[%s7956_s1 + $0x8b8] sm:$0xff]  ;;  %v1077_v28 = vcombine.high %v6316_v15, %v6319_v16  ;;  %v463_v15 = vld [vmem:[%s7956_s1 + $0xb10] sm:$0xff] }
  0x80   :  { %4623 = vmatprep.subr.bf16.mxu1 %v4622_v29  ;;  %v4636_v29 = vpack.c.bf16 %v370_v12, %v369_v11  ;;  %v4638_v33 = vpack.c.bf16 %v388_v23, %v387_v20  ;;  %v396_v11 = vld [vmem:[%s7956_s1 + $0x8f8] sm:$0xff]  ;;  %v427_v12 = vld [vmem:[%s7956_s1 + $0x9f0] sm:$0xff]  ;;  %v4652_v23 = vpack.c.bf16 %v378_v62, %v377_v61  ;;  %v482_v61 = vld [vmem:[%s7956_s1 + $0xba8] sm:$0xff]  ;;  %v6541_v62 = vrot.slane %v5150_v54, %v5462_v25 }
  0x81   :  { %v412_v20 = vld [vmem:[%s7956_s1 + $0x978] sm:$0xff] }
  0x82   :  { %4593 = vmatpush3.bf16.msra.mxu0 %v4592_v39  ;;  %v404_v39 = vld [vmem:[%s7956_s1 + $0x938] sm:$0xff] }
  0x83   :  { %4625 = vmatpush3.bf16.msra.mxu1 %v4624_v40  ;;  %4627 = vmatprep.subr.bf16.mxu0 %v4626_v41  ;;  %v389_v40 = vld [vmem:[%s7956_s1 + $0x8c0] sm:$0xff]  ;;  %v390_v41 = vld [vmem:[%s7956_s1 + $0x8c8] sm:$0xff]  ;;  %v4672_v46 = vpack.c.bf16 %v404_v39, %v403_v35  ;;  %v4688_v35 = vpack.c.bf16 %v412_v20, %v411_v19  ;;  %v464_v16 = vld [vmem:[%s7956_s1 + $0xb18] sm:$0xff] }
  0x84   :  { %4659 = vmatprep.subr.bf16.mxu1 %v4658_v45  ;;  %v4640_v45 = vpack.c.bf16 %v372_v32, %v371_v31  ;;  %v4642_v49 = vpack.c.bf16 %v390_v41, %v389_v40  ;;  %v5146_v31 = vld [vmem:[%s7955_s0 + $0x230] ss:$88 sps:$4 sm:$0xff]   ;;  %v5148_v32 = vld [vmem:[%s7955_s0 + $0x184] ss:$88 sps:$4 sm:$0xff]  }
  0x85   :  { %2300 = vmatmul.mubr.f32.vlgmr.msra.gmra.mrb[12].mxu0 %v1038_v58  ;;  %v424_v58 = vld [vmem:[%s7956_s1 + $0x9d8] sm:$0xff]  ;;  %v429_v39 = vld [vmem:[%s7956_s1 + $0xa00] sm:$0xff]  ;;  %v430_v40 = vld [vmem:[%s7956_s1 + $0xa08] sm:$0xff]  ;;  %v1455_v52 = vrot.slane %v5148_v32, %v5462_v25 }
  0x86   :  { %2375 = vmatmul.mubr.f32.vlgmr.msra.gmra.mrb[12].mxu1 %v1040_v59  ;;  %4629 = vmatpush3.bf16.msra.mxu0 %v4628_v36  ;;  %v4644_v59 = vpack.c.bf16 %v374_v48, %v373_v47  ;;  %v4678_v36 = vpack.c.bf16 %v424_v58, %v423_v55  ;;  %v461_v41 = vld [vmem:[%s7956_s1 + $0xb00] sm:$0xff]  ;;  %v447_v47 = vld [vmem:[%s7956_s1 + $0xa90] sm:$0xff]  ;;  %v448_v48 = vld [vmem:[%s7956_s1 + $0xa98] sm:$0xff] }
  0x87   :  { %4661 = vmatpush3.bf16.msra.mxu1 %v4660_v37  ;;  %2304 = vmatprep.mubr.f32.mxu0 %v1435_v2  ;;  %v407_v37 = vld [vmem:[%s7956_s1 + $0x950] sm:$0xff]  ;;  %v394_v2 = vld [vmem:[%s7956_s1 + $0x8e8] sm:$0xff]  ;;  %v488_v54 = vld [vmem:[%s7956_s1 + $0xbd8] sm:$0xff] }
  0x88   :  { %4631 = vmatprep.subr.bf16.mxu0 %v4630_v56  ;;  %4663 = vmatprep.subr.bf16.mxu1 %v4662_v57  ;;  %v425_v56 = vld [vmem:[%s7956_s1 + $0x9e0] sm:$0xff]  ;;  %v426_v57 = vld [vmem:[%s7956_s1 + $0x9e8] sm:$0xff]  ;;  %v4650_v8 = vpack.c.bf16 %v394_v2, %v393_v44  ;;  %v5152_v55 = vld [vmem:[%s7955_s0 + $0xd8] ss:$88 sps:$4 sm:$0xff]  }
  0x89   :  { %2379 = vmatprep.mubr.f32.mxu1 %v1437_v5  ;;  %2305 = vmatmul.mubr.f32.gmra.mrb[14].mxu0 %v1434_v4  ;;  %v4680_v4 = vpack.c.bf16 %v408_v38, %v407_v37  ;;  %v409_v5 = vld [vmem:[%s7956_s1 + $0x960] sm:$0xff]  ;;  %v4682_v9 = vpack.c.bf16 %v426_v57, %v425_v56  ;;  %v4694_v37 = vpack.c.bf16 %v448_v48, %v447_v47  ;;  %v432_v38 = vld [vmem:[%s7956_s1 + $0xa18] sm:$0xff]  ;;  %v450_v56 = vld [vmem:[%s7956_s1 + $0xaa8] sm:$0xff] }
  0x8a   :  { %2380 = vmatmul.mubr.f32.gmra.mrb[14].mxu1 %v1436_v6  ;;  %4633 = vmatpush3.bf16.msra.mxu0 %v4632_v17  ;;  %v410_v6 = vld [vmem:[%s7956_s1 + $0x968] sm:$0xff]  ;;  %v379_v17 = vld [vmem:[%s7956_s1 + $0x870] sm:$0xff]  ;;  %v449_v2 = vld [vmem:[%s7956_s1 + $0xaa0] sm:$0xff] }
  0x8b   :  { %4665 = vmatpush3.bf16.msra.mxu1 %v4664_v18  ;;  %4635 = vmatprep.subr.bf16.mxu0 %v4634_v21  ;;  %v380_v18 = vld [vmem:[%s7956_s1 + $0x878] sm:$0xff]  ;;  %v445_v21 = vld [vmem:[%s7956_s1 + $0xa80] sm:$0xff]  ;;  %v4684_v24 = vpack.c.bf16 %v410_v6, %v409_v5  ;;  %v466_v19 = vld [vmem:[%s7956_s1 + $0xb28] sm:$0xff] }
  0x8c   :  { %4667 = vmatprep.subr.bf16.mxu1 %v4666_v22  ;;  %2449 = vmatprep.mubr.f32.mxu0 %v1075_v27  ;;  %v446_v22 = vld [vmem:[%s7956_s1 + $0xa88] sm:$0xff]  ;;  %v481_v57 = vld [vmem:[%s7956_s1 + $0xba0] sm:$0xff]  ;;  %v451_v20 = vld [vmem:[%s7956_s1 + $0xab0] sm:$0xff] }
  0x8d   :  { %2524 = vmatprep.mubr.f32.mxu1 %v1077_v28  ;;  %v478_v27 = vld [vmem:[%s7956_s1 + $0xb88] sm:$0xff]  ;;  %v5144_v28 = vld [vmem:[%s7955_s0 + $0x180] ss:$88 sps:$4 sm:$0xff]   ;;  %v4690_v42 = vpack.c.bf16 %v446_v22, %v445_v21  ;;  %v483_v22 = vld [vmem:[%s7956_s1 + $0xbb0] sm:$0xff] }
  0x8e   :  { %4637 = vmatpush3.bf16.msra.mxu0 %v4636_v29  ;;  %v4654_v29 = vpack.c.bf16 %v396_v11, %v395_v7  ;;  %v4722_v43 = vpack.c.bf16 %v478_v27, %v477_v26  ;;  %v5154_v58 = vld [vmem:[%s7955_s0 + $0x2c] ss:$88 sps:$4 sm:$0xff]   ;;  %v452_v21 = vld [vmem:[%s7956_s1 + $0xab8] sm:$0xff] }
  0x8f   :  { %4669 = vmatpush3.bf16.msra.mxu1 %v4668_v30  ;;  %4639 = vmatprep.subr.bf16.mxu0 %v4638_v33  ;;  %v4686_v30 = vpack.c.bf16 %v428_v13, %v427_v12  ;;  %v5149_v33 = vld [vmem:[%s7955_s0 + $0x234] ss:$88 sps:$4 sm:$0xff]   ;;  %v433_v11 = vld [vmem:[%s7956_s1 + $0xa20] sm:$0xff]  ;;  %v4698_v13 = vpack.c.bf16 %v450_v56, %v449_v2 }
  0x90   :  { %4671 = vmatprep.subr.bf16.mxu1 %v4670_v34  ;;  %v4656_v34 = vpack.c.bf16 %v380_v18, %v379_v17  ;;  %v1469_v53 = vrot.slane %v5149_v33, %v5462_v25  ;;  %v434_v12 = vld [vmem:[%s7956_s1 + $0xa28] sm:$0xff]  ;;  %v4730_v17 = vpack.c.bf16 %v482_v61, %v481_v57  ;;  %v465_v18 = vld [vmem:[%s7956_s1 + $0xb20] sm:$0xff]  ;;  %v467_v33 = vld [vmem:[%s7956_s1 + $0xb30] sm:$0xff] }
  0x91   :  { %v4700_v27 = vpack.c.bf16 %v434_v12, %v433_v11  ;;  %v474_v2 = vld [vmem:[%s7956_s1 + $0xb68] sm:$0xff]  ;;  %v459_v61 = vld [vmem:[%s7956_s1 + $0xaf0] sm:$0xff] }
  0x92   :  { %4641 = vmatpush3.bf16.msra.mxu0 %v4640_v45  ;;  %v462_v45 = vld [vmem:[%s7956_s1 + $0xb08] sm:$0xff]  ;;  %v1472_v7 = vcombine.low %v1455_v52, %v1469_v53  ;;  %v443_v12 = vld [vmem:[%s7956_s1 + $0xa70] sm:$0xff] }
  0x93   :  { %4673 = vmatpush3.bf16.msra.mxu1 %v4672_v46  ;;  %4643 = vmatprep.subr.bf16.mxu0 %v4642_v49  ;;  %v1448_v46 = vrot.slane %v5144_v28, %v5462_v25  ;;  %v1462_v49 = vrot.slane %v5146_v31, %v5462_v25  ;;  %v4732_v28 = vpack.c.bf16 %v466_v19, %v465_v18  ;;  %v476_v18 = vld [vmem:[%s7956_s1 + $0xb78] sm:$0xff]  ;;  %v509_v19 = vld [vmem:[%s7956_s1 + $0xc80] sm:$0xff] }
  0x94   :  { %4675 = vmatprep.subr.bf16.mxu1 %v4674_v50  ;;  %v479_v50 = vld [vmem:[%s7956_s1 + $0xb90] sm:$0xff]  ;;  %v4702_v31 = vpack.c.bf16 %v452_v21, %v451_v20  ;;  %v510_v20 = vld [vmem:[%s7956_s1 + $0xc88] sm:$0xff] }
  0x95   :  { %v1471_v44 = vcombine.high %v1448_v46, %v1462_v49  ;;  %v1470_v6 = vcombine.low %v1448_v46, %v1462_v49  ;;  %v438_v46 = vld [vmem:[%s7956_s1 + $0xa48] sm:$0xff]  ;;  %v469_v49 = vld [vmem:[%s7956_s1 + $0xb40] sm:$0xff] }
  0x96   :  { %4645 = vmatpush3.bf16.msra.mxu0 %v4644_v59  ;;  %v5155_v59 = vld [vmem:[%s7955_s0 + $0xdc] ss:$88 sps:$4 sm:$0xff]  }
  0x97   :  { %4677 = vmatpush3.bf16.msra.mxu1 %v4676_v60  ;;  %4647 = vmatprep.subr.bf16.mxu0 %v4646_v1  ;;  %v1074_v60 = vcombine.low %v6301_v10, %v6313_v14  ;;  %v4692_v1 = vpack.c.bf16 %v430_v40, %v429_v39  ;;  %v4726_v10 = vpack.c.bf16 %v480_v51, %v479_v50  ;;  %v454_v39 = vld [vmem:[%s7956_s1 + $0xac8] sm:$0xff]  ;;  %v485_v40 = vld [vmem:[%s7956_s1 + $0xbc0] sm:$0xff]  ;;  %v455_v51 = vld [vmem:[%s7956_s1 + $0xad0] sm:$0xff] }
  0x98   :  { %4679 = vmatprep.subr.bf16.mxu1 %v4678_v36  ;;  %v4724_v36 = vpack.c.bf16 %v462_v45, %v461_v41  ;;  %v1473_v14 = vcombine.high %v1455_v52, %v1469_v53  ;;  %v6550_v5 = vrot.slane %v5155_v59, %v5462_v25  ;;  %v486_v41 = vld [vmem:[%s7956_s1 + $0xbc8] sm:$0xff]  ;;  %v437_v45 = vld [vmem:[%s7956_s1 + $0xa40] sm:$0xff]  ;;  %v456_v52 = vld [vmem:[%s7956_s1 + $0xad8] sm:$0xff] }
  0x99   :  { %v4738_v48 = vpack.c.bf16 %v486_v41, %v485_v40  ;;  %v470_v50 = vld [vmem:[%s7956_s1 + $0xb48] sm:$0xff]  ;;  %v487_v53 = vld [vmem:[%s7956_s1 + $0xbd0] sm:$0xff]  ;;  %v4754_v40 = vpack.c.bf16 %v510_v20, %v509_v19  ;;  %v516_v19 = vld [vmem:[%s7956_s1 + $0xcb8] sm:$0xff] }
  0x9a   :  { %4649 = vmatpush3.bf16.msra.mxu0 %v4648_v3  ;;  %v6544_v3 = vrot.slane %v5152_v55, %v5462_v25  ;;  %v4708_v55 = vpack.c.bf16 %v438_v46, %v437_v45  ;;  %v439_v59 = vld [vmem:[%s7956_s1 + $0xa50] sm:$0xff]  ;;  %v512_v46 = vld [vmem:[%s7956_s1 + $0xc98] sm:$0xff] }
  0x9b   :  { %4681 = vmatpush3.bf16.msra.mxu1 %v4680_v4  ;;  %4651 = vmatprep.subr.bf16.mxu0 %v4650_v8  ;;  %v6547_v4 = vrot.slane %v5154_v58, %v5462_v25  ;;  %v4696_v8 = vpack.c.bf16 %v432_v38, %v431_v0  ;;  %v4740_v58 = vpack.c.bf16 %v470_v50, %v469_v49  ;;  %v458_v38 = vld [vmem:[%s7956_s1 + $0xae8] sm:$0xff]  ;;  %v511_v45 = vld [vmem:[%s7956_s1 + $0xc90] sm:$0xff]  ;;  %v544_v49 = vld [vmem:[%s7956_s1 + $0xd98] sm:$0xff] }
  0x9c   :  { %4683 = vmatprep.subr.bf16.mxu1 %v4682_v9  ;;  %v4728_v9 = vpack.c.bf16 %v464_v16, %v463_v15  ;;  %v4742_v0 = vpack.c.bf16 %v488_v54, %v487_v53  ;;  %v442_v15 = vld [vmem:[%s7956_s1 + $0xa68] sm:$0xff]  ;;  %v473_v16 = vld [vmem:[%s7956_s1 + $0xb60] sm:$0xff]  ;;  %v547_v20 = vld [vmem:[%s7956_s1 + $0xdb0] sm:$0xff] }
  0x9d   :  { %v1113_v26 = vcombine.high %v6547_v4, %v6550_v5  ;;  %v5164_v53 = vld [vmem:[%s7955_s0 + $0xe0] ss:$88 sps:$4 sm:$0xff]   ;;  %v5166_v54 = vld [vmem:[%s7955_s0 + $0x34] ss:$88 sps:$4 sm:$0xff]  }
  0x9e   :  { %4653 = vmatpush3.bf16.msra.mxu0 %v4652_v23  ;;  %v484_v23 = vld [vmem:[%s7956_s1 + $0xbb8] sm:$0xff] }
  0x9f   :  { %4685 = vmatpush3.bf16.msra.mxu1 %v4684_v24  ;;  %4655 = vmatprep.subr.bf16.mxu0 %v4654_v29  ;;  %v1111_v24 = vcombine.high %v6541_v62, %v6544_v3  ;;  %v435_v29 = vld [vmem:[%s7956_s1 + $0xa30] sm:$0xff]  ;;  %v4734_v32 = vpack.c.bf16 %v484_v23, %v483_v22  ;;  %v4748_v22 = vpack.c.bf16 %v474_v2, %v473_v16  ;;  %v541_v23 = vld [vmem:[%s7956_s1 + $0xd80] sm:$0xff] }
  0xa0   :  { %4687 = vmatprep.subr.bf16.mxu1 %v4686_v30  ;;  %v436_v30 = vld [vmem:[%s7956_s1 + $0xa38] sm:$0xff]  ;;  %v6784_v16 = vrot.slane %v5164_v53, %v5462_v25  ;;  %v6787_v2 = vrot.slane %v5166_v54, %v5462_v25  ;;  %v503_v53 = vld [vmem:[%s7956_s1 + $0xc50] sm:$0xff] }
  0xa1   :  { %v504_v54 = vld [vmem:[%s7956_s1 + $0xc58] sm:$0xff] }
  0xa2   :  { %4657 = vmatpush3.bf16.msra.mxu0 %v4656_v34  ;;  %v468_v34 = vld [vmem:[%s7956_s1 + $0xb38] sm:$0xff] }
  0xa3   :  { %4689 = vmatpush3.bf16.msra.mxu1 %v4688_v35  ;;  %4691 = vmatprep.subr.bf16.mxu0 %v4690_v42  ;;  %v453_v35 = vld [vmem:[%s7956_s1 + $0xac0] sm:$0xff]  ;;  %v4704_v42 = vpack.c.bf16 %v436_v30, %v435_v29  ;;  %v5158_v29 = vld [vmem:[%s7955_s0 + $0x238] ss:$88 sps:$4 sm:$0xff]  }
  0xa4   :  { %4723 = vmatprep.subr.bf16.mxu1 %v4722_v43  ;;  %v4736_v43 = vpack.c.bf16 %v468_v34, %v467_v33  ;;  %v4706_v47 = vpack.c.bf16 %v454_v39, %v453_v35  ;;  %v5160_v30 = vld [vmem:[%s7955_s0 + $0x18c] ss:$88 sps:$4 sm:$0xff]  }
  0xa5   :  { %2450 = vmatmul.mubr.f32.vlgmr.msra.gmra.mrb[16].mxu0 %v1074_v60  ;;  %v440_v60 = vld [vmem:[%s7956_s1 + $0xa58] sm:$0xff]  ;;  %v493_v34 = vld [vmem:[%s7956_s1 + $0xc00] sm:$0xff]  ;;  %v494_v35 = vld [vmem:[%s7956_s1 + $0xc08] sm:$0xff]  ;;  %v1491_v50 = vrot.slane %v5160_v30, %v5462_v25 }
  0xa6   :  { %2525 = vmatmul.mubr.f32.vlgmr.msra.gmra.mrb[16].mxu1 %v1076_v63  ;;  %4693 = vmatpush3.bf16.msra.mxu0 %v4692_v1  ;;  %v4710_v63 = vpack.c.bf16 %v456_v52, %v455_v51  ;;  %v471_v1 = vld [vmem:[%s7956_s1 + $0xb50] sm:$0xff]  ;;  %v4712_v56 = vpack.c.bf16 %v440_v60, %v439_v59  ;;  %v525_v39 = vld [vmem:[%s7956_s1 + $0xd00] sm:$0xff]  ;;  %v1112_v59 = vcombine.low %v6547_v4, %v6550_v5  ;;  %v528_v5 = vld [vmem:[%s7956_s1 + $0xd18] sm:$0xff] }
  0xa7   :  { %4725 = vmatpush3.bf16.msra.mxu1 %v4724_v36  ;;  %2454 = vmatprep.mubr.f32.mxu0 %v1471_v44  ;;  %v472_v36 = vld [vmem:[%s7956_s1 + $0xb58] sm:$0xff]  ;;  %v489_v44 = vld [vmem:[%s7956_s1 + $0xbe0] sm:$0xff]  ;;  %v5162_v52 = vld [vmem:[%s7955_s0 + $0x30] ss:$88 sps:$4 sm:$0xff]   ;;  %v4756_v60 = vpack.c.bf16 %v494_v35, %v493_v34 }
  0xa8   :  { %4695 = vmatprep.subr.bf16.mxu0 %v4694_v37  ;;  %4727 = vmatprep.subr.bf16.mxu1 %v4726_v10  ;;  %v457_v37 = vld [vmem:[%s7956_s1 + $0xae0] sm:$0xff]  ;;  %v490_v10 = vld [vmem:[%s7956_s1 + $0xbe8] sm:$0xff]  ;;  %v4744_v57 = vpack.c.bf16 %v472_v36, %v471_v1  ;;  %v495_v1 = vld [vmem:[%s7956_s1 + $0xc10] sm:$0xff] }
  0xa9   :  { %2529 = vmatprep.mubr.f32.mxu1 %v1473_v14  ;;  %2455 = vmatmul.mubr.f32.gmra.mrb[18].mxu0 %v1470_v6  ;;  %v441_v14 = vld [vmem:[%s7956_s1 + $0xa60] sm:$0xff]  ;;  %v460_v6 = vld [vmem:[%s7956_s1 + $0xaf8] sm:$0xff]  ;;  %v4746_v11 = vpack.c.bf16 %v490_v10, %v489_v44  ;;  %v527_v4 = vld [vmem:[%s7956_s1 + $0xd10] sm:$0xff] }
  0xaa   :  { %2530 = vmatmul.mubr.f32.gmra.mrb[18].mxu1 %v1472_v7  ;;  %4697 = vmatpush3.bf16.msra.mxu0 %v4696_v8  ;;  %v491_v7 = vld [vmem:[%s7956_s1 + $0xbf0] sm:$0xff]  ;;  %v492_v8 = vld [vmem:[%s7956_s1 + $0xbf8] sm:$0xff]  ;;  %v4716_v21 = vpack.c.bf16 %v442_v15, %v441_v14  ;;  %v514_v44 = vld [vmem:[%s7956_s1 + $0xca8] sm:$0xff]  ;;  %v6781_v15 = vrot.slane %v5162_v52, %v5462_v25 }
  0xab   :  { %4729 = vmatpush3.bf16.msra.mxu1 %v4728_v9  ;;  %4699 = vmatprep.subr.bf16.mxu0 %v4698_v13  ;;  %v4714_v9 = vpack.c.bf16 %v458_v38, %v457_v37  ;;  %v444_v13 = vld [vmem:[%s7956_s1 + $0xa78] sm:$0xff]  ;;  %v513_v38 = vld [vmem:[%s7956_s1 + $0xca0] sm:$0xff]  ;;  %v546_v14 = vld [vmem:[%s7956_s1 + $0xda8] sm:$0xff] }
  0xac   :  { %4731 = vmatprep.subr.bf16.mxu1 %v4730_v17  ;;  %2599 = vmatprep.mubr.f32.mxu0 %v1111_v24  ;;  %v475_v17 = vld [vmem:[%s7956_s1 + $0xb70] sm:$0xff]  ;;  %v542_v24 = vld [vmem:[%s7956_s1 + $0xd88] sm:$0xff]  ;;  %v496_v36 = vld [vmem:[%s7956_s1 + $0xc18] sm:$0xff] }
  0xad   :  { %2674 = vmatprep.mubr.f32.mxu1 %v1113_v26  ;;  %v5156_v26 = vld [vmem:[%s7955_s0 + $0x188] ss:$88 sps:$4 sm:$0xff]   ;;  %v4752_v33 = vpack.c.bf16 %v476_v18, %v475_v17  ;;  %v4786_v41 = vpack.c.bf16 %v542_v24, %v541_v23  ;;  %v515_v18 = vld [vmem:[%s7956_s1 + $0xcb0] sm:$0xff]  ;;  %v552_v52 = vld [vmem:[%s7956_s1 + $0xdd8] sm:$0xff] }
  0xae   :  { %4701 = vmatpush3.bf16.msra.mxu0 %v4700_v27  ;;  %v4718_v27 = vpack.c.bf16 %v460_v6, %v459_v61  ;;  %v545_v10 = vld [vmem:[%s7956_s1 + $0xda0] sm:$0xff]  ;;  %v4760_v6 = vpack.c.bf16 %v496_v36, %v495_v1  ;;  %v530_v17 = vld [vmem:[%s7956_s1 + $0xd28] sm:$0xff] }
  0xaf   :  { %4733 = vmatpush3.bf16.msra.mxu1 %v4732_v28  ;;  %4703 = vmatprep.subr.bf16.mxu0 %v4702_v31  ;;  %v4750_v28 = vpack.c.bf16 %v492_v8, %v491_v7  ;;  %v5161_v31 = vld [vmem:[%s7955_s0 + $0x23c] ss:$88 sps:$4 sm:$0xff]   ;;  %v4792_v7 = vpack.c.bf16 %v528_v5, %v527_v4  ;;  %v497_v8 = vld [vmem:[%s7956_s1 + $0xc20] sm:$0xff]  ;;  %v518_v34 = vld [vmem:[%s7956_s1 + $0xcc8] sm:$0xff] }
  0xb0   :  { %4735 = vmatprep.subr.bf16.mxu1 %v4734_v32  ;;  %v4720_v32 = vpack.c.bf16 %v444_v13, %v443_v12  ;;  %v1505_v51 = vrot.slane %v5161_v31, %v5462_v25  ;;  %v4794_v12 = vpack.c.bf16 %v546_v14, %v545_v10  ;;  %v529_v13 = vld [vmem:[%s7956_s1 + $0xd20] sm:$0xff]  ;;  %v531_v31 = vld [vmem:[%s7956_s1 + $0xd30] sm:$0xff]  ;;  %v522_v36 = vld [vmem:[%s7956_s1 + $0xce8] sm:$0xff] }
  0xb1   :  { %v549_v35 = vld [vmem:[%s7956_s1 + $0xdc0] sm:$0xff]  ;;  %v506_v4 = vld [vmem:[%s7956_s1 + $0xc68] sm:$0xff]  ;;  %v523_v14 = vld [vmem:[%s7956_s1 + $0xcf0] sm:$0xff] }
  0xb2   :  { %4705 = vmatpush3.bf16.msra.mxu0 %v4704_v42  ;;  %v526_v42 = vld [vmem:[%s7956_s1 + $0xd08] sm:$0xff]  ;;  %v1508_v61 = vcombine.low %v1491_v50, %v1505_v51  ;;  %v521_v1 = vld [vmem:[%s7956_s1 + $0xce0] sm:$0xff] }
  0xb3   :  { %4737 = vmatpush3.bf16.msra.mxu1 %v4736_v43  ;;  %4707 = vmatprep.subr.bf16.mxu0 %v4706_v47  ;;  %v1484_v43 = vrot.slane %v5156_v26, %v5462_v25  ;;  %v1498_v47 = vrot.slane %v5158_v29, %v5462_v25  ;;  %v4796_v26 = vpack.c.bf16 %v530_v17, %v529_v13  ;;  %v537_v5 = vld [vmem:[%s7956_s1 + $0xd60] sm:$0xff]  ;;  %v540_v13 = vld [vmem:[%s7956_s1 + $0xd78] sm:$0xff] }
  0xb4   :  { %4739 = vmatprep.subr.bf16.mxu1 %v4738_v48  ;;  %v543_v48 = vld [vmem:[%s7956_s1 + $0xd90] sm:$0xff]  ;;  %v4766_v29 = vpack.c.bf16 %v516_v19, %v515_v18  ;;  %v573_v17 = vld [vmem:[%s7956_s1 + $0xe80] sm:$0xff]  ;;  %v574_v18 = vld [vmem:[%s7956_s1 + $0xe88] sm:$0xff] }
  0xb5   :  { %v1507_v37 = vcombine.high %v1484_v43, %v1498_v47 }
  0xb6   :  { %4709 = vmatpush3.bf16.msra.mxu0 %v4708_v55  ;;  %v5167_v55 = vld [vmem:[%s7955_s0 + $0xe4] ss:$88 sps:$4 sm:$0xff]  }
  0xb7   :  { %4741 = vmatpush3.bf16.msra.mxu1 %v4740_v58  ;;  %4711 = vmatprep.subr.bf16.mxu0 %v4710_v63  ;;  %v1110_v58 = vcombine.low %v6541_v62, %v6544_v3  ;;  %v4788_v63 = vpack.c.bf16 %v526_v42, %v525_v39  ;;  %v4790_v62 = vpack.c.bf16 %v544_v49, %v543_v48  ;;  %v550_v39 = vld [vmem:[%s7956_s1 + $0xdc8] sm:$0xff]  ;;  %v501_v42 = vld [vmem:[%s7956_s1 + $0xc40] sm:$0xff]  ;;  %v519_v49 = vld [vmem:[%s7956_s1 + $0xcd0] sm:$0xff] }
  0xb8   :  { %4743 = vmatprep.subr.bf16.mxu1 %v4742_v0  ;;  %v4758_v0 = vpack.c.bf16 %v512_v46, %v511_v45  ;;  %v1509_v3 = vcombine.high %v1491_v50, %v1505_v51  ;;  %v4802_v46 = vpack.c.bf16 %v550_v39, %v549_v35  ;;  %v534_v48 = vld [vmem:[%s7956_s1 + $0xd48] sm:$0xff]  ;;  %v520_v50 = vld [vmem:[%s7956_s1 + $0xcd8] sm:$0xff]  ;;  %v551_v51 = vld [vmem:[%s7956_s1 + $0xdd0] sm:$0xff]  ;;  %v4818_v35 = vpack.c.bf16 %v574_v18, %v573_v17 }
  0xb9   :  { %v580_v17 = vld [vmem:[%s7956_s1 + $0xeb8] sm:$0xff]  ;;  %v611_v18 = vld [vmem:[%s7956_s1 + $0xfb0] sm:$0xff] }
  0xba   :  { %4713 = vmatpush3.bf16.msra.mxu0 %v4712_v56  ;;  %v6790_v56 = vrot.slane %v5167_v55, %v5462_v25 }
  0xbb   :  { %4745 = vmatpush3.bf16.msra.mxu1 %v4744_v57  ;;  %4715 = vmatprep.subr.bf16.mxu0 %v4714_v9  ;;  %v1506_v57 = vcombine.low %v1484_v43, %v1498_v47  ;;  %v498_v9 = vld [vmem:[%s7956_s1 + $0xc28] sm:$0xff]  ;;  %v533_v47 = vld [vmem:[%s7956_s1 + $0xd40] sm:$0xff] }
  0xbc   :  { %4747 = vmatprep.subr.bf16.mxu1 %v4746_v11  ;;  %v4762_v11 = vpack.c.bf16 %v514_v44, %v513_v38  ;;  %v1149_v23 = vcombine.high %v6787_v2, %v6790_v56  ;;  %v4764_v24 = vpack.c.bf16 %v498_v9, %v497_v8  ;;  %v502_v43 = vld [vmem:[%s7956_s1 + $0xc48] sm:$0xff]  ;;  %v4776_v44 = vpack.c.bf16 %v504_v54, %v503_v53  ;;  %v507_v9 = vld [vmem:[%s7956_s1 + $0xc70] sm:$0xff] }
  0xbd   :  { %v4772_v55 = vpack.c.bf16 %v502_v43, %v501_v42  ;;  %v538_v38 = vld [vmem:[%s7956_s1 + $0xd68] sm:$0xff]  ;;  %v575_v42 = vld [vmem:[%s7956_s1 + $0xe90] sm:$0xff]  ;;  %v576_v43 = vld [vmem:[%s7956_s1 + $0xe98] sm:$0xff]  ;;  %v1146_v54 = vcombine.low %v6781_v15, %v6784_v16 }
  0xbe   :  { %4717 = vmatpush3.bf16.msra.mxu0 %v4716_v21  ;;  %v548_v21 = vld [vmem:[%s7956_s1 + $0xdb8] sm:$0xff]  ;;  %v5179_v53 = vld [vmem:[%s7955_s0 + $0xec] ss:$88 sps:$4 sm:$0xff]  }
  0xbf   :  { %4749 = vmatpush3.bf16.msra.mxu1 %v4748_v22  ;;  %4719 = vmatprep.subr.bf16.mxu0 %v4718_v27  ;;  %v1147_v22 = vcombine.high %v6781_v15, %v6784_v16  ;;  %v499_v27 = vld [vmem:[%s7956_s1 + $0xc30] sm:$0xff]  ;;  %v4798_v30 = vpack.c.bf16 %v548_v21, %v547_v20  ;;  %v4812_v20 = vpack.c.bf16 %v538_v38, %v537_v5  ;;  %v605_v21 = vld [vmem:[%s7956_s1 + $0xf80] sm:$0xff] }
  0xc0   :  { %4751 = vmatprep.subr.bf16.mxu1 %v4750_v28  ;;  %v500_v28 = vld [vmem:[%s7956_s1 + $0xc38] sm:$0xff] }
  0xc2   :  { %4721 = vmatpush3.bf16.msra.mxu0 %v4720_v32  ;;  %v532_v32 = vld [vmem:[%s7956_s1 + $0xd38] sm:$0xff] }
  0xc3   :  { %4753 = vmatpush3.bf16.msra.mxu1 %v4752_v33  ;;  %4755 = vmatprep.subr.bf16.mxu0 %v4754_v40  ;;  %v517_v33 = vld [vmem:[%s7956_s1 + $0xcc0] sm:$0xff]  ;;  %v4768_v40 = vpack.c.bf16 %v500_v28, %v499_v27  ;;  %v5172_v28 = vld [vmem:[%s7955_s0 + $0x194] ss:$88 sps:$4 sm:$0xff]  }
  0xc4   :  { %4787 = vmatprep.subr.bf16.mxu1 %v4786_v41  ;;  %v4800_v41 = vpack.c.bf16 %v532_v32, %v531_v31  ;;  %v4770_v45 = vpack.c.bf16 %v518_v34, %v517_v33  ;;  %v5170_v27 = vld [vmem:[%s7955_s0 + $0x240] ss:$88 sps:$4 sm:$0xff]   ;;  %v558_v33 = vld [vmem:[%s7956_s1 + $0xe08] sm:$0xff] }
  0xc5   :  { %2600 = vmatmul.mubr.f32.vlgmr.msra.gmra.mrb[20].mxu0 %v1110_v58  ;;  %v4804_v58 = vpack.c.bf16 %v534_v48, %v533_v47  ;;  %v557_v32 = vld [vmem:[%s7956_s1 + $0xe00] sm:$0xff]  ;;  %v608_v47 = vld [vmem:[%s7956_s1 + $0xf98] sm:$0xff]  ;;  %v1527_v48 = vrot.slane %v5172_v28, %v5462_v25 }
  0xc6   :  { %2675 = vmatmul.mubr.f32.vlgmr.msra.gmra.mrb[20].mxu1 %v1112_v59  ;;  %4757 = vmatpush3.bf16.msra.mxu0 %v4756_v60  ;;  %v4774_v59 = vpack.c.bf16 %v520_v50, %v519_v49  ;;  %v4806_v60 = vpack.c.bf16 %v552_v52, %v551_v51  ;;  %v589_v34 = vld [vmem:[%s7956_s1 + $0xf00] sm:$0xff]  ;;  %v5174_v50 = vld [vmem:[%s7955_s0 + $0x38] ss:$88 sps:$4 sm:$0xff]   ;;  %v5178_v52 = vld [vmem:[%s7955_s0 + $0x3c] ss:$88 sps:$4 sm:$0xff]  }
  0xc7   :  { %4789 = vmatpush3.bf16.msra.mxu1 %v4788_v63  ;;  %2604 = vmatprep.mubr.f32.mxu0 %v1507_v37  ;;  %v535_v63 = vld [vmem:[%s7956_s1 + $0xd50] sm:$0xff]  ;;  %v553_v37 = vld [vmem:[%s7956_s1 + $0xde0] sm:$0xff]  ;;  %v7027_v38 = vrot.slane %v5178_v52, %v5462_v25  ;;  %v596_v28 = vld [vmem:[%s7956_s1 + $0xf38] sm:$0xff] }
  0xc8   :  { %4759 = vmatprep.subr.bf16.mxu0 %v4758_v0  ;;  %4791 = vmatprep.subr.bf16.mxu1 %v4790_v62  ;;  %v536_v0 = vld [vmem:[%s7956_s1 + $0xd58] sm:$0xff]  ;;  %v554_v62 = vld [vmem:[%s7956_s1 + $0xde8] sm:$0xff] }
  0xc9   :  { %2679 = vmatprep.mubr.f32.mxu1 %v1509_v3  ;;  %2605 = vmatmul.mubr.f32.gmra.mrb[22].mxu0 %v1506_v57  ;;  %v505_v3 = vld [vmem:[%s7956_s1 + $0xc60] sm:$0xff]  ;;  %v4808_v10 = vpack.c.bf16 %v536_v0, %v535_v63  ;;  %v524_v57 = vld [vmem:[%s7956_s1 + $0xcf8] sm:$0xff]  ;;  %v4810_v8 = vpack.c.bf16 %v554_v62, %v553_v37  ;;  %v559_v63 = vld [vmem:[%s7956_s1 + $0xe10] sm:$0xff] }
  0xca   :  { %2680 = vmatmul.mubr.f32.gmra.mrb[22].mxu1 %v1508_v61  ;;  %4761 = vmatpush3.bf16.msra.mxu0 %v4760_v6  ;;  %v555_v61 = vld [vmem:[%s7956_s1 + $0xdf0] sm:$0xff]  ;;  %v556_v6 = vld [vmem:[%s7956_s1 + $0xdf8] sm:$0xff]  ;;  %v4780_v19 = vpack.c.bf16 %v506_v4, %v505_v3  ;;  %v5176_v51 = vld [vmem:[%s7955_s0 + $0xe8] ss:$88 sps:$4 sm:$0xff]   ;;  %v7021_v4 = vrot.slane %v5174_v50, %v5462_v25 }
  0xcb   :  { %4793 = vmatpush3.bf16.msra.mxu1 %v4792_v7  ;;  %4763 = vmatprep.subr.bf16.mxu0 %v4762_v11  ;;  %v4778_v7 = vpack.c.bf16 %v522_v36, %v521_v1  ;;  %v508_v11 = vld [vmem:[%s7956_s1 + $0xc78] sm:$0xff]  ;;  %v577_v36 = vld [vmem:[%s7956_s1 + $0xea0] sm:$0xff]  ;;  %v578_v37 = vld [vmem:[%s7956_s1 + $0xea8] sm:$0xff]  ;;  %v7024_v5 = vrot.slane %v5176_v51, %v5462_v25 }
  0xcc   :  { %4795 = vmatprep.subr.bf16.mxu1 %v4794_v12  ;;  %2749 = vmatprep.mubr.f32.mxu0 %v1147_v22  ;;  %v539_v12 = vld [vmem:[%s7956_s1 + $0xd70] sm:$0xff]  ;;  %v606_v22 = vld [vmem:[%s7956_s1 + $0xf88] sm:$0xff]  ;;  %v560_v0 = vld [vmem:[%s7956_s1 + $0xe18] sm:$0xff] }
  0xcd   :  { %2824 = vmatprep.mubr.f32.mxu1 %v1149_v23  ;;  %v5168_v23 = vld [vmem:[%s7955_s0 + $0x190] ss:$88 sps:$4 sm:$0xff]   ;;  %v4816_v31 = vpack.c.bf16 %v540_v13, %v539_v12  ;;  %v4850_v39 = vpack.c.bf16 %v606_v22, %v605_v21  ;;  %v609_v62 = vld [vmem:[%s7956_s1 + $0xfa0] sm:$0xff]  ;;  %v616_v50 = vld [vmem:[%s7956_s1 + $0xfd8] sm:$0xff] }
  0xce   :  { %4765 = vmatpush3.bf16.msra.mxu0 %v4764_v24  ;;  %v4782_v24 = vpack.c.bf16 %v524_v57, %v523_v14  ;;  %v610_v3 = vld [vmem:[%s7956_s1 + $0xfa8] sm:$0xff]  ;;  %v4824_v57 = vpack.c.bf16 %v560_v0, %v559_v63  ;;  %v579_v13 = vld [vmem:[%s7956_s1 + $0xeb0] sm:$0xff]  ;;  %v568_v52 = vld [vmem:[%s7956_s1 + $0xe58] sm:$0xff] }
  0xcf   :  { %4797 = vmatpush3.bf16.msra.mxu1 %v4796_v26  ;;  %4767 = vmatprep.subr.bf16.mxu0 %v4766_v29  ;;  %v4814_v26 = vpack.c.bf16 %v556_v6, %v555_v61  ;;  %v5173_v29 = vld [vmem:[%s7955_s0 + $0x244] ss:$88 sps:$4 sm:$0xff]   ;;  %v594_v12 = vld [vmem:[%s7956_s1 + $0xf28] sm:$0xff]  ;;  %v563_v22 = vld [vmem:[%s7956_s1 + $0xe30] sm:$0xff] }
  0xd0   :  { %4799 = vmatprep.subr.bf16.mxu1 %v4798_v30  ;;  %v4784_v30 = vpack.c.bf16 %v508_v11, %v507_v9  ;;  %v1541_v49 = vrot.slane %v5173_v29, %v5462_v25  ;;  %v561_v6 = vld [vmem:[%s7956_s1 + $0xe20] sm:$0xff]  ;;  %v4858_v9 = vpack.c.bf16 %v610_v3, %v609_v62  ;;  %v4830_v29 = vpack.c.bf16 %v580_v17, %v579_v13  ;;  %v567_v51 = vld [vmem:[%s7956_s1 + $0xe50] sm:$0xff]  ;;  %v586_v0 = vld [vmem:[%s7956_s1 + $0xee8] sm:$0xff] }
  0xd1   :  { %v593_v11 = vld [vmem:[%s7956_s1 + $0xf20] sm:$0xff]  ;;  %v602_v62 = vld [vmem:[%s7956_s1 + $0xf68] sm:$0xff]  ;;  %v587_v3 = vld [vmem:[%s7956_s1 + $0xef0] sm:$0xff] }
  0xd2   :  { %4769 = vmatpush3.bf16.msra.mxu0 %v4768_v40  ;;  %v590_v40 = vld [vmem:[%s7956_s1 + $0xf08] sm:$0xff]  ;;  %v1545_v16 = vcombine.high %v1527_v48, %v1541_v49  ;;  %v1544_v14 = vcombine.low %v1527_v48, %v1541_v49  ;;  %v584_v48 = vld [vmem:[%s7956_s1 + $0xed8] sm:$0xff]  ;;  %v615_v49 = vld [vmem:[%s7956_s1 + $0xfd0] sm:$0xff] }
  0xd3   :  { %4801 = vmatpush3.bf16.msra.mxu1 %v4800_v41  ;;  %4771 = vmatprep.subr.bf16.mxu0 %v4770_v45  ;;  %v1520_v41 = vrot.slane %v5168_v23, %v5462_v25  ;;  %v1534_v45 = vrot.slane %v5170_v27, %v5462_v25  ;;  %v595_v27 = vld [vmem:[%s7956_s1 + $0xf30] sm:$0xff]  ;;  %v585_v63 = vld [vmem:[%s7956_s1 + $0xee0] sm:$0xff] }
  0xd4   :  { %4803 = vmatprep.subr.bf16.mxu1 %v4802_v46  ;;  %v607_v46 = vld [vmem:[%s7956_s1 + $0xf90] sm:$0xff] }
  0xd5   :  { %v1543_v1 = vcombine.high %v1520_v41, %v1534_v45  ;;  %v4854_v15 = vpack.c.bf16 %v608_v47, %v607_v46  ;;  %v598_v46 = vld [vmem:[%s7956_s1 + $0xf48] sm:$0xff]  ;;  %v583_v47 = vld [vmem:[%s7956_s1 + $0xed0] sm:$0xff] }
  0xd6   :  { %4773 = vmatpush3.bf16.msra.mxu0 %v4772_v55  ;;  %v1148_v55 = vcombine.low %v6787_v2, %v6790_v56  ;;  %v591_v2 = vld [vmem:[%s7956_s1 + $0xf10] sm:$0xff]  ;;  %v592_v56 = vld [vmem:[%s7956_s1 + $0xf18] sm:$0xff] }
  0xd7   :  { %4805 = vmatpush3.bf16.msra.mxu1 %v4804_v58  ;;  %4775 = vmatprep.subr.bf16.mxu0 %v4774_v59  ;;  %v4820_v58 = vpack.c.bf16 %v558_v33, %v557_v32  ;;  %v4852_v59 = vpack.c.bf16 %v590_v40, %v589_v34  ;;  %v4856_v61 = vpack.c.bf16 %v592_v56, %v591_v2  ;;  %v582_v32 = vld [vmem:[%s7956_s1 + $0xec8] sm:$0xff]  ;;  %v613_v33 = vld [vmem:[%s7956_s1 + $0xfc0] sm:$0xff]  ;;  %v603_v13 = vld [vmem:[%s7956_s1 + $0xf70] sm:$0xff] }
  0xd8   :  { %4807 = vmatprep.subr.bf16.mxu1 %v4806_v60  ;;  %v4822_v60 = vpack.c.bf16 %v576_v43, %v575_v42  ;;  %v614_v34 = vld [vmem:[%s7956_s1 + $0xfc8] sm:$0xff]  ;;  %v565_v40 = vld [vmem:[%s7956_s1 + $0xe40] sm:$0xff]  ;;  %v4840_v56 = vpack.c.bf16 %v568_v52, %v567_v51  ;;  %v640_v51 = vld [vmem:[%s7956_s1 + $0x1098] sm:$0xff] }
  0xd9   :  { %v4866_v43 = vpack.c.bf16 %v614_v34, %v613_v33  ;;  %v570_v2 = vld [vmem:[%s7956_s1 + $0xe68] sm:$0xff]  ;;  %v5184_v33 = vld [vmem:[%s7955_s0 + $0x19c] ss:$88 sps:$4 sm:$0xff]  }
  0xda   :  { %4777 = vmatpush3.bf16.msra.mxu0 %v4776_v44  ;;  %v7030_v44 = vrot.slane %v5179_v53, %v5462_v25  ;;  %v5185_v34 = vld [vmem:[%s7955_s0 + $0x24c] ss:$88 sps:$4 sm:$0xff]  }
  0xdb   :  { %4809 = vmatpush3.bf16.msra.mxu1 %v4808_v10  ;;  %4779 = vmatprep.subr.bf16.mxu0 %v4778_v7  ;;  %v1542_v10 = vcombine.low %v1520_v41, %v1534_v45  ;;  %v562_v7 = vld [vmem:[%s7956_s1 + $0xe28] sm:$0xff]  ;;  %v597_v45 = vld [vmem:[%s7956_s1 + $0xf40] sm:$0xff] }
  0xdc   :  { %4811 = vmatprep.subr.bf16.mxu1 %v4810_v8  ;;  %v4826_v8 = vpack.c.bf16 %v578_v37, %v577_v36  ;;  %v1185_v21 = vcombine.high %v7027_v38, %v7030_v44  ;;  %v4828_v23 = vpack.c.bf16 %v562_v7, %v561_v6  ;;  %v566_v41 = vld [vmem:[%s7956_s1 + $0xe48] sm:$0xff]  ;;  %v601_v37 = vld [vmem:[%s7956_s1 + $0xf60] sm:$0xff]  ;;  %v619_v6 = vld [vmem:[%s7956_s1 + $0xff0] sm:$0xff] }
  0xdd   :  { %v4836_v53 = vpack.c.bf16 %v566_v41, %v565_v40  ;;  %v620_v7 = vld [vmem:[%s7956_s1 + $0xff8] sm:$0xff] }
  0xde   :  { %4781 = vmatpush3.bf16.msra.mxu0 %v4780_v19  ;;  %v612_v19 = vld [vmem:[%s7956_s1 + $0xfb8] sm:$0xff] }
  0xdf   :  { %4813 = vmatpush3.bf16.msra.mxu1 %v4812_v20  ;;  %4783 = vmatprep.subr.bf16.mxu0 %v4782_v24  ;;  %v1183_v20 = vcombine.high %v7021_v4, %v7024_v5  ;;  %v4860_v24 = vpack.c.bf16 %v594_v12, %v593_v11  ;;  %v571_v11 = vld [vmem:[%s7956_s1 + $0xe70] sm:$0xff]  ;;  %v572_v12 = vld [vmem:[%s7956_s1 + $0xe78] sm:$0xff] }
  0xe0   :  { %4815 = vmatprep.subr.bf16.mxu1 %v4814_v26  ;;  %v564_v26 = vld [vmem:[%s7956_s1 + $0xe38] sm:$0xff] }
  0xe2   :  { %4785 = vmatpush3.bf16.msra.mxu0 %v4784_v30  ;;  %v4862_v30 = vpack.c.bf16 %v612_v19, %v611_v18 }
  0xe3   :  { %4817 = vmatpush3.bf16.msra.mxu1 %v4816_v31  ;;  %4819 = vmatprep.subr.bf16.mxu0 %v4818_v35  ;;  %v581_v31 = vld [vmem:[%s7956_s1 + $0xec0] sm:$0xff]  ;;  %v4832_v35 = vpack.c.bf16 %v564_v26, %v563_v22  ;;  %v638_v22 = vld [vmem:[%s7956_s1 + $0x1088] sm:$0xff]  ;;  %v4876_v26 = vpack.c.bf16 %v602_v62, %v601_v37  ;;  %v624_v37 = vld [vmem:[%s7956_s1 + $0x1018] sm:$0xff] }
  0xe4   :  { %4851 = vmatprep.subr.bf16.mxu1 %v4850_v39  ;;  %v4864_v39 = vpack.c.bf16 %v596_v28, %v595_v27  ;;  %v4834_v42 = vpack.c.bf16 %v582_v32, %v581_v31  ;;  %v669_v27 = vld [vmem:[%s7956_s1 + $0x1180] sm:$0xff]  ;;  %v670_v28 = vld [vmem:[%s7956_s1 + $0x1188] sm:$0xff]  ;;  %v4878_v31 = vpack.c.bf16 %v620_v7, %v619_v6 }
  0xe5   :  { %2750 = vmatmul.mubr.f32.vlgmr.msra.gmra.mrb[24].mxu0 %v1146_v54  ;;  %v4868_v54 = vpack.c.bf16 %v598_v46, %v597_v45  ;;  %v5182_v32 = vld [vmem:[%s7955_s0 + $0x248] ss:$88 sps:$4 sm:$0xff]  }
  0xe6   :  { %2825 = vmatmul.mubr.f32.vlgmr.msra.gmra.mrb[24].mxu1 %v1148_v55  ;;  %4821 = vmatpush3.bf16.msra.mxu0 %v4820_v58  ;;  %v4838_v55 = vpack.c.bf16 %v584_v48, %v583_v47  ;;  %v4870_v58 = vpack.c.bf16 %v616_v50, %v615_v49  ;;  %v653_v45 = vld [vmem:[%s7956_s1 + $0x1100] sm:$0xff]  ;;  %v4914_v47 = vpack.c.bf16 %v670_v28, %v669_v27  ;;  %v654_v48 = vld [vmem:[%s7956_s1 + $0x1108] sm:$0xff]  ;;  %v639_v50 = vld [vmem:[%s7956_s1 + $0x1090] sm:$0xff] }
  0xe7   :  { %4853 = vmatpush3.bf16.msra.mxu1 %v4852_v59  ;;  %2754 = vmatprep.mubr.f32.mxu0 %v1543_v1  ;;  %v599_v59 = vld [vmem:[%s7956_s1 + $0xf50] sm:$0xff]  ;;  %v617_v1 = vld [vmem:[%s7956_s1 + $0xfe0] sm:$0xff]  ;;  %v1570_v52 = vrot.slane %v5182_v32, %v5462_v25  ;;  %v676_v28 = vld [vmem:[%s7956_s1 + $0x11b8] sm:$0xff] }
  0xe8   :  { %4823 = vmatprep.subr.bf16.mxu0 %v4822_v60  ;;  %4855 = vmatprep.subr.bf16.mxu1 %v4854_v15  ;;  %v600_v60 = vld [vmem:[%s7956_s1 + $0xf58] sm:$0xff]  ;;  %v618_v15 = vld [vmem:[%s7956_s1 + $0xfe8] sm:$0xff]  ;;  %v675_v27 = vld [vmem:[%s7956_s1 + $0x11b0] sm:$0xff] }
  0xe9   :  { %2829 = vmatprep.mubr.f32.mxu1 %v1545_v16  ;;  %2755 = vmatmul.mubr.f32.gmra.mrb[26].mxu0 %v1542_v10  ;;  %v569_v16 = vld [vmem:[%s7956_s1 + $0xe60] sm:$0xff]  ;;  %v4872_v36 = vpack.c.bf16 %v600_v60, %v599_v59  ;;  %v5188_v60 = vld [vmem:[%s7955_s0 + $0xf0] ss:$88 sps:$4 sm:$0xff]  }
  0xea   :  { %2830 = vmatmul.mubr.f32.gmra.mrb[26].mxu1 %v1544_v14  ;;  %4825 = vmatpush3.bf16.msra.mxu0 %v4824_v57  ;;  %v7150_v10 = vld [vmem:[%s7957_s2] ss:$0 sm:$0xff]  ;;  %v4842_v14 = vpack.c.bf16 %v586_v0, %v585_v63  ;;  %v4874_v57 = vpack.c.bf16 %v618_v15, %v617_v1  ;;  %v4844_v19 = vpack.c.bf16 %v570_v2, %v569_v16  ;;  %v5190_v63 = vld [vmem:[%s7955_s0 + $0x44] ss:$88 sps:$4 sm:$0xff]   ;;  %v5191_v0 = vld [vmem:[%s7955_s0 + $0xf4] ss:$88 sps:$4 sm:$0xff]  }
  0xeb   :  { %4857 = vmatpush3.bf16.msra.mxu1 %v4856_v61  ;;  %4827 = vmatprep.subr.bf16.mxu0 %v4826_v8  ;;  %v588_v61 = vld [vmem:[%s7956_s1 + $0xef8] sm:$0xff]  ;;  %v1182_v1 = vcombine.low %v7021_v4, %v7024_v5  ;;  %v1184_v15 = vcombine.low %v7027_v38, %v7030_v44  ;;  %v4916_v2 = vpack.c.bf16 %v654_v48, %v653_v45  ;;  %v655_v38 = vld [vmem:[%s7956_s1 + $0x1110] sm:$0xff]  ;;  %v645_v48 = vld [vmem:[%s7956_s1 + $0x10c0] sm:$0xff] }
  0xec   :  { %4859 = vmatprep.subr.bf16.mxu1 %v4858_v9  ;;  %2899 = vmatprep.mubr.f32.mxu0 %v1183_v20  ;;  %v604_v20 = vld [vmem:[%s7956_s1 + $0xf78] sm:$0xff]  ;;  %v7275_v7 = vrot.slane %v5188_v60, %v5462_v25  ;;  %v629_v60 = vld [vmem:[%s7956_s1 + $0x1040] sm:$0xff] }
  0xed   :  { %2974 = vmatprep.mubr.f32.mxu1 %v1185_v21  ;;  %v637_v21 = vld [vmem:[%s7956_s1 + $0x1080] sm:$0xff]  ;;  %v4880_v40 = vpack.c.bf16 %v604_v20, %v603_v13  ;;  %v656_v44 = vld [vmem:[%s7956_s1 + $0x1118] sm:$0xff] }
  0xee   :  { %4829 = vmatpush3.bf16.msra.mxu0 %v4828_v23  ;;  %v4882_v41 = vpack.c.bf16 %v638_v22, %v637_v21  ;;  %v5186_v59 = vld [vmem:[%s7955_s0 + $0x40] ss:$88 sps:$4 sm:$0xff]   ;;  %v4920_v20 = vpack.c.bf16 %v656_v44, %v655_v38  ;;  %v658_v21 = vld [vmem:[%s7956_s1 + $0x1128] sm:$0xff]  ;;  %v643_v22 = vld [vmem:[%s7956_s1 + $0x10b0] sm:$0xff] }
  0xef   :  { %4861 = vmatpush3.bf16.msra.mxu1 %v4860_v24  ;;  %4831 = vmatprep.subr.bf16.mxu0 %v4830_v29  ;;  %v5180_v29 = vld [vmem:[%s7955_s0 + $0x198] ss:$88 sps:$4 sm:$0xff]   ;;  %v7272_v6 = vrot.slane %v5186_v59, %v5462_v25  ;;  %v625_v13 = vld [vmem:[%s7956_s1 + $0x1020] sm:$0xff] }
  0xf0   :  { %4863 = vmatprep.subr.bf16.mxu1 %v4862_v30  ;;  %v4846_v30 = vpack.c.bf16 %v588_v61, %v587_v3  ;;  %v7213_v49 = vrot.slane %v5180_v29, %v5462_v25  ;;  %v641_v3 = vld [vmem:[%s7956_s1 + $0x10a0] sm:$0xff]  ;;  %v674_v61 = vld [vmem:[%s7956_s1 + $0x11a8] sm:$0xff] }
  0xf2   :  { %4833 = vmatpush3.bf16.msra.mxu0 %v4832_v35  ;;  %v1579_v4 = vcombine.high %v7213_v49, %v1570_v52 }
  0xf3   :  { %4865 = vmatpush3.bf16.msra.mxu1 %v4864_v39  ;;  %4835 = vmatprep.subr.bf16.mxu0 %v4834_v42  ;;  %v4848_v39 = vpack.c.bf16 %v572_v12, %v571_v11  ;;  %v621_v42 = vld [vmem:[%s7956_s1 + $0x1000] sm:$0xff]  ;;  %v1578_v11 = vcombine.low %v7213_v49, %v1570_v52 }
  0xf4   :  { %4867 = vmatprep.subr.bf16.mxu1 %v4866_v43  ;;  %v622_v43 = vld [vmem:[%s7956_s1 + $0x1008] sm:$0xff]  ;;  %v677_v52 = vld [vmem:[%s7956_s1 + $0x11c0] sm:$0xff] }
  0xf5   :  { %v4884_v16 = vpack.c.bf16 %v622_v43, %v621_v42  ;;  %v659_v42 = vld [vmem:[%s7956_s1 + $0x1130] sm:$0xff]  ;;  %v660_v43 = vld [vmem:[%s7956_s1 + $0x1138] sm:$0xff] }
  0xf6   :  { %4837 = vmatpush3.bf16.msra.mxu0 %v4836_v53  ;;  %v671_v53 = vld [vmem:[%s7956_s1 + $0x1190] sm:$0xff] }
  0xf7   :  { %4869 = vmatpush3.bf16.msra.mxu1 %v4868_v54  ;;  %4839 = vmatprep.subr.bf16.mxu0 %v4838_v55  ;;  %v672_v54 = vld [vmem:[%s7956_s1 + $0x1198] sm:$0xff]  ;;  %v1563_v55 = vrot.slane %v5184_v33, %v5462_v25 }
  0xf8   :  { %4871 = vmatprep.subr.bf16.mxu1 %v4870_v58  ;;  %v3587_v8 = vpop.f32.mrb[0].mxu0  ;;  %v1577_v58 = vrot.slane %v5185_v34, %v5462_v25  ;;  %v4918_v5 = vpack.c.bf16 %v672_v54, %v671_v53  ;;  %v627_v34 = vld [vmem:[%s7956_s1 + $0x1030] sm:$0xff]  ;;  %v678_v53 = vld [vmem:[%s7956_s1 + $0x11c8] sm:$0xff] }
  0xf9   :  { %v3625_v9 = vpop.f32.mrb[0].mxu1  ;;  %v3588_v17 = vpop.f32.mrb[1].mxu0 }
  0xfa   :  { %v3626_v18 = vpop.f32.mrb[1].mxu1  ;;  %v3589_v23 = vadd.f32 %v3588_v17, %v3587_v8  ;;  %4841 = vmatpush3.bf16.msra.mxu0 %v4840_v56  ;;  %v4886_v56 = vpack.c.bf16 %v640_v51, %v639_v50  ;;  %v1581_v62 = vcombine.high %v1563_v55, %v1577_v58  ;;  %v7278_v8 = vrot.slane %v5190_v63, %v5462_v25  ;;  %v626_v17 = vld [vmem:[%s7956_s1 + $0x1028] sm:$0xff] }
  0xfb   :  { %v3627_v24 = vadd.f32 %v3626_v18, %v3625_v9  ;;  %4873 = vmatpush3.bf16.msra.mxu1 %v4872_v36  ;;  %4843 = vmatprep.subr.bf16.mxu0 %v4842_v14  ;;  %v623_v36 = vld [vmem:[%s7956_s1 + $0x1010] sm:$0xff]  ;;  %v642_v14 = vld [vmem:[%s7956_s1 + $0x10a8] sm:$0xff]  ;;  %v7281_v9 = vrot.slane %v5191_v0, %v5462_v25  ;;  %v1580_v12 = vcombine.low %v1563_v55, %v1577_v58  ;;  %v657_v18 = vld [vmem:[%s7956_s1 + $0x1120] sm:$0xff] }
  0xfc   :  { %4875 = vmatprep.subr.bf16.mxu1 %v4874_v57  ;;  %v1852_v35 = vadd.f32 %v3589_v23, %v7150_v10  ;;  %v673_v57 = vld [vmem:[%s7956_s1 + $0x11a0] sm:$0xff]  ;;  %v644_v23 = vld [vmem:[%s7956_s1 + $0x10b8] sm:$0xff]  ;;  %v4892_v33 = vpack.c.bf16 %v626_v17, %v625_v13  ;;  %v4926_v50 = vpack.c.bf16 %v676_v28, %v675_v27  ;;  %v646_v51 = vld [vmem:[%s7956_s1 + $0x10c8] sm:$0xff]  ;;  %v4928_v58 = vpack.c.bf16 %v660_v43, %v659_v42 }
  0xfd   :  { %v1221_v32 = vcombine.high %v7278_v8, %v7281_v9  ;;  %v4894_v49 = vpack.c.bf16 %v644_v23, %v643_v22  ;;  %v630_v63 = vld [vmem:[%s7956_s1 + $0x1048] sm:$0xff]  ;;  %v4898_v0 = vpack.c.bf16 %v646_v51, %v645_v48  ;;  %v633_v13 = vld [vmem:[%s7956_s1 + $0x1060] sm:$0xff]  ;;  %v651_v22 = vld [vmem:[%s7956_s1 + $0x10f0] sm:$0xff] }
  0xfe   :  { %v7207_v46 = vadd.f32 %v3627_v24, %v1852_v35  ;;  %4845 = vmatpush3.bf16.msra.mxu0 %v4844_v19  ;;  %v4888_v19 = vpack.c.bf16 %v624_v37, %v623_v36  ;;  %v4890_v24 = vpack.c.bf16 %v642_v14, %v641_v3  ;;  %v628_v35 = vld [vmem:[%s7956_s1 + $0x1038] sm:$0xff]  ;;  %v4900_v37 = vpack.c.bf16 %v630_v63, %v629_v60  ;;  %v663_v3 = vld [vmem:[%s7956_s1 + $0x1150] sm:$0xff]  ;;  %v634_v17 = vld [vmem:[%s7956_s1 + $0x1068] sm:$0xff] }
  0xff   :  { %4877 = vmatpush3.bf16.msra.mxu1 %v4876_v26  ;;  %4847 = vmatprep.subr.bf16.mxu0 %v4846_v30  ;;  %v4922_v26 = vpack.c.bf16 %v674_v61, %v673_v57  ;;  %v4896_v55 = vpack.c.bf16 %v628_v35, %v627_v34  ;;  %v680_v36 = vld [vmem:[%s7956_s1 + $0x11d8] sm:$0xff]  ;;  %v649_v57 = vld [vmem:[%s7956_s1 + $0x10e0] sm:$0xff]  ;;  %v650_v61 = vld [vmem:[%s7956_s1 + $0x10e8] sm:$0xff] }
 0x100   :  { %4879 = vmatprep.subr.bf16.mxu1 %v4878_v31  ;;  %v3590_v29 = vpop.f32.mrb[2].mxu0  ;;  %v3628_v30 = vpop.f32.mrb[2].mxu1  ;;  %v1219_v31 = vcombine.high %v7272_v6, %v7275_v7  ;;  %v664_v14 = vld [vmem:[%s7956_s1 + $0x1158] sm:$0xff]  ;;  %v4906_v23 = vpack.c.bf16 %v650_v61, %v649_v57  ;;  %v683_v27 = vld [vmem:[%s7956_s1 + $0x11f0] sm:$0xff]  ;;  %v702_v48 = vld [vmem:[%s7956_s1 + $0x1288] sm:$0xff] }
 0x101   :  { %v684_v28 = vld [vmem:[%s7956_s1 + $0x11f8] sm:$0xff]  ;;  %v5198_v61 = vld [vmem:[%s7955_s0 + $0x48] ss:$88 sps:$4 sm:$0xff]  }
 0x102   :  { %4849 = vmatpush3.bf16.msra.mxu0 %v4848_v39  ;;  %v3591_v39 = vpop.f32.mrb[3].mxu0  ;;  %v5192_v42 = vld [vmem:[%s7955_s0 + $0x1a0] ss:$88 sps:$4 sm:$0xff]  }
 0x103   :  { %4881 = vmatpush3.bf16.msra.mxu1 %v4880_v40  ;;  %4883 = vmatprep.subr.bf16.mxu0 %v4882_v41  ;;  %v3629_v40 = vpop.f32.mrb[3].mxu1  ;;  %v4924_v41 = vpack.c.bf16 %v658_v21, %v657_v18  ;;  %v3592_v45 = vadd.f32 %v3591_v39, %v3590_v29  ;;  %v666_v21 = vld [vmem:[%s7956_s1 + $0x1168] sm:$0xff]  ;;  %v4908_v39 = vpack.c.bf16 %v634_v17, %v633_v13  ;;  %v736_v57 = vld [vmem:[%s7956_s1 + $0x1398] sm:$0xff] }
 0x104   :  { %4915 = vmatprep.subr.bf16.mxu1 %v4914_v47  ;;  %v3630_v47 = vadd.f32 %v3629_v40, %v3628_v30  ;;  %v668_v40 = vld [vmem:[%s7956_s1 + $0x1178] sm:$0xff] }
 0x105   :  { %2900 = vmatmul.mubr.f32.vlgmr.msra.gmra.mrb[28].mxu0 %v1182_v1  ;;  %v1857_v54 = vadd.f32 %v3592_v45, %v7150_v10  ;;  %v4930_v10 = vpack.c.bf16 %v678_v53, %v677_v52  ;;  %v661_v1 = vld [vmem:[%s7956_s1 + $0x1140] sm:$0xff]  ;;  %v4942_v52 = vpack.c.bf16 %v684_v28, %v683_v27  ;;  %v5194_v53 = vld [vmem:[%s7955_s0 + $0x250] ss:$88 sps:$4 sm:$0xff]  }
 0x106   :  { %2975 = vmatmul.mubr.f32.vlgmr.msra.gmra.mrb[28].mxu1 %v1184_v15  ;;  %4885 = vmatpush3.bf16.msra.mxu0 %v4884_v16  ;;  %v662_v15 = vld [vmem:[%s7956_s1 + $0x1148] sm:$0xff]  ;;  %v647_v16 = vld [vmem:[%s7956_s1 + $0x10d0] sm:$0xff] }
 0x107   :  { %4917 = vmatpush3.bf16.msra.mxu1 %v4916_v2  ;;  %2904 = vmatprep.mubr.f32.mxu0 %v1579_v4  ;;  %v7337_v59 = vadd.f32 %v3630_v47, %v1857_v54  ;;  %v648_v2 = vld [vmem:[%s7956_s1 + $0x10d8] sm:$0xff]  ;;  %v4932_v4 = vpack.c.bf16 %v662_v15, %v661_v1  ;;  %v686_v1 = vld [vmem:[%s7956_s1 + $0x1208] sm:$0xff]  ;;  %v687_v28 = vld [vmem:[%s7956_s1 + $0x1210] sm:$0xff] }
 0x108   :  { %4887 = vmatprep.subr.bf16.mxu0 %v4886_v56  ;;  %4919 = vmatprep.subr.bf16.mxu1 %v4918_v5  ;;  %v679_v56 = vld [vmem:[%s7956_s1 + $0x11d0] sm:$0xff]  ;;  %v4902_v38 = vpack.c.bf16 %v648_v2, %v647_v16  ;;  %v5196_v54 = vld [vmem:[%s7955_s0 + $0x1a4] ss:$88 sps:$4 sm:$0xff]  }
 0x109   :  { %2979 = vmatprep.mubr.f32.mxu1 %v1581_v62  ;;  %2905 = vmatmul.mubr.f32.gmra.mrb[30].mxu0 %v1578_v11  ;;  %v631_v5 = vld [vmem:[%s7956_s1 + $0x1050] sm:$0xff]  ;;  %v632_v62 = vld [vmem:[%s7956_s1 + $0x1058] sm:$0xff]  ;;  %v4934_v44 = vpack.c.bf16 %v680_v36, %v679_v56  ;;  %v681_v11 = vld [vmem:[%s7956_s1 + $0x11e0] sm:$0xff] }
 0x10a   :  { %2980 = vmatmul.mubr.f32.gmra.mrb[30].mxu1 %v1580_v12  ;;  %4889 = vmatpush3.bf16.msra.mxu0 %v4888_v19  ;;  %v682_v12 = vld [vmem:[%s7956_s1 + $0x11e8] sm:$0xff]  ;;  %v4904_v18 = vpack.c.bf16 %v632_v62, %v631_v5  ;;  %v4936_v19 = vpack.c.bf16 %v664_v14, %v663_v3  ;;  %v703_v5 = vld [vmem:[%s7956_s1 + $0x1290] sm:$0xff]  ;;  %v704_v62 = vld [vmem:[%s7956_s1 + $0x1298] sm:$0xff] }
 0x10b   :  { %4921 = vmatpush3.bf16.msra.mxu1 %v4920_v20  ;;  %4891 = vmatprep.subr.bf16.mxu0 %v4890_v24  ;;  %v665_v20 = vld [vmem:[%s7956_s1 + $0x1160] sm:$0xff]  ;;  %v4938_v24 = vpack.c.bf16 %v682_v12, %v681_v11  ;;  %v735_v14 = vld [vmem:[%s7956_s1 + $0x1390] sm:$0xff]  ;;  %v1606_v11 = vrot.slane %v5194_v53, %v5462_v25  ;;  %v1599_v12 = vrot.slane %v5196_v54, %v5462_v25  ;;  %v708_v54 = vld [vmem:[%s7956_s1 + $0x12b8] sm:$0xff] }
 0x10c   :  { %4923 = vmatprep.subr.bf16.mxu1 %v4922_v26  ;;  %3049 = vmatprep.mubr.f32.mxu0 %v1219_v31  ;;  %v652_v26 = vld [vmem:[%s7956_s1 + $0x10f8] sm:$0xff]  ;;  %v635_v31 = vld [vmem:[%s7956_s1 + $0x1070] sm:$0xff]  ;;  %v4940_v47 = vpack.c.bf16 %v666_v21, %v665_v20  ;;  %v1218_v21 = vcombine.low %v7272_v6, %v7275_v7  ;;  %v4950_v27 = vpack.c.bf16 %v704_v62, %v703_v5  ;;  %v742_v5 = vld [vmem:[%s7956_s1 + $0x13c8] sm:$0xff] }
 0x10d   :  { %3124 = vmatprep.mubr.f32.mxu1 %v1221_v32  ;;  %v636_v32 = vld [vmem:[%s7956_s1 + $0x1078] sm:$0xff]  ;;  %v4910_v51 = vpack.c.bf16 %v652_v26, %v651_v22  ;;  %v1220_v22 = vcombine.low %v7278_v8, %v7281_v9  ;;  %v4982_v7 = vpack.c.bf16 %v736_v57, %v735_v14  ;;  %v719_v9 = vld [vmem:[%s7956_s1 + $0x1310] sm:$0xff]  ;;  %v694_v14 = vld [vmem:[%s7956_s1 + $0x1248] sm:$0xff] }
 0x10e   :  { %4893 = vmatpush3.bf16.msra.mxu0 %v4892_v33  ;;  %v667_v33 = vld [vmem:[%s7956_s1 + $0x1170] sm:$0xff] }
 0x10f   :  { %4925 = vmatpush3.bf16.msra.mxu1 %v4924_v41  ;;  %4895 = vmatprep.subr.bf16.mxu0 %v4894_v49  ;;  %v701_v41 = vld [vmem:[%s7956_s1 + $0x1280] sm:$0xff]  ;;  %v4944_v2 = vpack.c.bf16 %v668_v40, %v667_v33  ;;  %v5200_v17 = vld [vmem:[%s7955_s0 + $0xf8] ss:$88 sps:$4 sm:$0xff]   ;;  %v738_v33 = vld [vmem:[%s7956_s1 + $0x13a8] sm:$0xff] }
 0x110   :  { %4927 = vmatprep.subr.bf16.mxu1 %v4926_v50  ;;  %v733_v49 = vld [vmem:[%s7956_s1 + $0x1380] sm:$0xff]  ;;  %v734_v50 = vld [vmem:[%s7956_s1 + $0x1388] sm:$0xff]  ;;  %v4946_v56 = vpack.c.bf16 %v702_v48, %v701_v41  ;;  %v707_v53 = vld [vmem:[%s7956_s1 + $0x12b0] sm:$0xff] }
 0x111   :  { %v4978_v36 = vpack.c.bf16 %v734_v50, %v733_v49  ;;  %v690_v48 = vld [vmem:[%s7956_s1 + $0x1228] sm:$0xff] }
 0x112   :  { %4897 = vmatpush3.bf16.msra.mxu0 %v4896_v55  ;;  %v5197_v55 = vld [vmem:[%s7955_s0 + $0x254] ss:$88 sps:$4 sm:$0xff]  }
 0x113   :  { %4929 = vmatpush3.bf16.msra.mxu1 %v4928_v58  ;;  %4899 = vmatprep.subr.bf16.mxu0 %v4898_v0  ;;  %v4912_v0 = vpack.c.bf16 %v636_v32, %v635_v31  ;;  %v1613_v13 = vrot.slane %v5197_v55, %v5462_v25  ;;  %v706_v31 = vld [vmem:[%s7956_s1 + $0x12a8] sm:$0xff]  ;;  %v737_v32 = vld [vmem:[%s7956_s1 + $0x13a0] sm:$0xff]  ;;  %v739_v55 = vld [vmem:[%s7956_s1 + $0x13b0] sm:$0xff] }
 0x114   :  { %4931 = vmatprep.subr.bf16.mxu1 %v4930_v10  ;;  %v685_v10 = vld [vmem:[%s7956_s1 + $0x1200] sm:$0xff]  ;;  %v4986_v50 = vpack.c.bf16 %v738_v33, %v737_v32  ;;  %v698_v32 = vld [vmem:[%s7956_s1 + $0x1268] sm:$0xff] }
 0x115   :  { %v1617_v8 = vcombine.high %v1599_v12, %v1613_v13  ;;  %v729_v33 = vld [vmem:[%s7956_s1 + $0x1360] sm:$0xff] }
 0x116   :  { %4901 = vmatpush3.bf16.msra.mxu0 %v4900_v37  ;;  %v718_v37 = vld [vmem:[%s7956_s1 + $0x1308] sm:$0xff] }
 0x117   :  { %4933 = vmatpush3.bf16.msra.mxu1 %v4932_v4  ;;  %4903 = vmatprep.subr.bf16.mxu0 %v4902_v38  ;;  %v7461_v4 = vrot.slane %v5192_v42, %v5462_v25  ;;  %v1616_v42 = vcombine.low %v1599_v12, %v1613_v13  ;;  %v726_v12 = vld [vmem:[%s7956_s1 + $0x1348] sm:$0xff]  ;;  %v711_v13 = vld [vmem:[%s7956_s1 + $0x12d0] sm:$0xff] }
 0x118   :  { %4935 = vmatprep.subr.bf16.mxu1 %v4934_v44  ;;  %v3663_v29 = vpop.f32.mrb[4].mxu0 }
 0x119   :  { %v3701_v30 = vpop.f32.mrb[4].mxu1  ;;  %v3664_v34 = vpop.f32.mrb[5].mxu0  ;;  %v1615_v6 = vcombine.high %v7461_v4, %v1606_v11  ;;  %v1614_v41 = vcombine.low %v7461_v4, %v1606_v11  ;;  %v741_v4 = vld [vmem:[%s7956_s1 + $0x13c0] sm:$0xff] }
 0x11a   :  { %v3702_v35 = vpop.f32.mrb[5].mxu1  ;;  %v3665_v43 = vadd.f32 %v3664_v34, %v3663_v29  ;;  %4905 = vmatpush3.bf16.msra.mxu0 %v4904_v18  ;;  %v5202_v18 = vld [vmem:[%s7955_s0 + $0x4c] ss:$88 sps:$4 sm:$0xff]   ;;  %v720_v29 = vld [vmem:[%s7956_s1 + $0x1318] sm:$0xff]  ;;  %v7525_v34 = vrot.slane %v5198_v61, %v5462_v25  ;;  %v4994_v61 = vpack.c.bf16 %v742_v5, %v741_v4 }
 0x11b   :  { %v3703_v45 = vadd.f32 %v3702_v35, %v3701_v30  ;;  %4937 = vmatpush3.bf16.msra.mxu1 %v4936_v19  ;;  %4907 = vmatprep.subr.bf16.mxu0 %v4906_v23  ;;  %v5203_v19 = vld [vmem:[%s7955_s0 + $0xfc] ss:$88 sps:$4 sm:$0xff]   ;;  %v4948_v23 = vpack.c.bf16 %v686_v1, %v685_v10  ;;  %v705_v30 = vld [vmem:[%s7956_s1 + $0x12a0] sm:$0xff]  ;;  %v7528_v35 = vrot.slane %v5200_v17, %v5462_v25 }
 0x11c   :  { %4939 = vmatprep.subr.bf16.mxu1 %v4938_v24  ;;  %v2002_v58 = vadd.f32 %v3665_v43, %v7207_v46  ;;  %v3666_v60 = vpop.f32.mrb[6].mxu0  ;;  %v717_v46 = vld [vmem:[%s7956_s1 + $0x1300] sm:$0xff]  ;;  %v7534_v40 = vrot.slane %v5203_v19, %v5462_v25  ;;  %v4954_v49 = vpack.c.bf16 %v706_v31, %v705_v30  ;;  %v691_v1 = vld [vmem:[%s7956_s1 + $0x1230] sm:$0xff]  ;;  %v712_v17 = vld [vmem:[%s7956_s1 + $0x12d8] sm:$0xff] }
 0x11d   :  { %v3704_v63 = vpop.f32.mrb[6].mxu1  ;;  %v3667_v15 = vpop.f32.mrb[7].mxu0  ;;  %v4980_v26 = vpack.c.bf16 %v718_v37, %v717_v46  ;;  %v709_v46 = vld [vmem:[%s7956_s1 + $0x12c0] sm:$0xff]  ;;  %v710_v37 = vld [vmem:[%s7956_s1 + $0x12c8] sm:$0xff]  ;;  %v744_v19 = vld [vmem:[%s7956_s1 + $0x13d8] sm:$0xff] }
 0x11e   :  { %v3705_v16 = vpop.f32.mrb[7].mxu1  ;;  %v7469_v38 = vadd.f32 %v3703_v45, %v2002_v58  ;;  %v3668_v44 = vadd.f32 %v3667_v15, %v3666_v60  ;;  %4909 = vmatpush3.bf16.msra.mxu0 %v4908_v39  ;;  %v7531_v39 = vrot.slane %v5202_v18, %v5462_v25  ;;  %v4984_v45 = vpack.c.bf16 %v720_v29, %v719_v9  ;;  %v740_v58 = vld [vmem:[%s7956_s1 + $0x13b8] sm:$0xff]  ;;  %v725_v11 = vld [vmem:[%s7956_s1 + $0x1340] sm:$0xff]  ;;  %v743_v18 = vld [vmem:[%s7956_s1 + $0x13d0] sm:$0xff] }
 0x11f   :  { %4941 = vmatpush3.bf16.msra.mxu1 %v4940_v47  ;;  %v3706_v3 = vadd.f32 %v3705_v16, %v3704_v63  ;;  %4911 = vmatprep.subr.bf16.mxu0 %v4910_v51  ;;  %v689_v47 = vld [vmem:[%s7956_s1 + $0x1220] sm:$0xff]  ;;  %v1255_v60 = vcombine.high %v7525_v34, %v7528_v35  ;;  %v692_v15 = vld [vmem:[%s7956_s1 + $0x1238] sm:$0xff]  ;;  %v4958_v16 = vpack.c.bf16 %v708_v54, %v707_v53  ;;  %v746_v9 = vld [vmem:[%s7956_s1 + $0x13e8] sm:$0xff] }
 0x120   :  { %4943 = vmatprep.subr.bf16.mxu1 %v4942_v52  ;;  %v2007_v20 = vadd.f32 %v3668_v44, %v7337_v59  ;;  %v688_v59 = vld [vmem:[%s7956_s1 + $0x1218] sm:$0xff]  ;;  %v721_v51 = vld [vmem:[%s7956_s1 + $0x1320] sm:$0xff]  ;;  %v722_v52 = vld [vmem:[%s7956_s1 + $0x1328] sm:$0xff]  ;;  %v1257_v63 = vcombine.high %v7531_v39, %v7534_v40  ;;  %v4960_v62 = vpack.c.bf16 %v692_v15, %v691_v1  ;;  %v4962_v57 = vpack.c.bf16 %v710_v37, %v709_v46 }
 0x121   :  { %v4952_v43 = vpack.c.bf16 %v688_v59, %v687_v28  ;;  %v4988_v10 = vpack.c.bf16 %v722_v52, %v721_v51  ;;  %v727_v28 = vld [vmem:[%s7956_s1 + $0x1350] sm:$0xff]  ;;  %v728_v59 = vld [vmem:[%s7956_s1 + $0x1358] sm:$0xff]  ;;  %v697_v31 = vld [vmem:[%s7956_s1 + $0x1260] sm:$0xff] }
 0x122   :  { %v7497_v24 = vadd.f32 %v3706_v3, %v2007_v20  ;;  %4913 = vmatpush3.bf16.msra.mxu0 %v4912_v0  ;;  %v4956_v0 = vpack.c.bf16 %v690_v48, %v689_v47  ;;  %v693_v3 = vld [vmem:[%s7956_s1 + $0x1240] sm:$0xff]  ;;  %v5000_v30 = vpack.c.bf16 %v728_v59, %v727_v28  ;;  %v716_v47 = vld [vmem:[%s7956_s1 + $0x12f8] sm:$0xff]  ;;  %v699_v52 = vld [vmem:[%s7956_s1 + $0x1270] sm:$0xff] }
 0x123   :  { %4945 = vmatpush3.bf16.msra.mxu1 %v4944_v2  ;;  %4947 = vmatprep.subr.bf16.mxu0 %v4946_v56  ;;  %v4990_v2 = vpack.c.bf16 %v740_v58, %v739_v55  ;;  %v723_v56 = vld [vmem:[%s7956_s1 + $0x1330] sm:$0xff]  ;;  %v4964_v20 = vpack.c.bf16 %v694_v14, %v693_v3  ;;  %v748_v51 = vld [vmem:[%s7956_s1 + $0x13f8] sm:$0xff]  ;;  %v4972_v55 = vpack.c.bf16 %v698_v32, %v697_v31  ;;  %v5208_v37 = vld [vmem:[%s7955_s0 + $0x1ac] ss:$88 sps:$4 sm:$0xff]  }
 0x124   :  { %4979 = vmatprep.subr.bf16.mxu1 %v4978_v36  ;;  %v724_v36 = vld [vmem:[%s7956_s1 + $0x1338] sm:$0xff]  ;;  %v5210_v59 = vld [vmem:[%s7955_s0 + $0x50] ss:$88 sps:$4 sm:$0xff]  }
 0x125   :  { %3050 = vmatmul.mubr.f32.vlgmr.msra.gmra.mrb[32].mxu0 %v1218_v21  ;;  %v4992_v44 = vpack.c.bf16 %v724_v36, %v723_v56  ;;  %v4996_v21 = vpack.c.bf16 %v726_v12, %v725_v11  ;;  %v700_v58 = vld [vmem:[%s7956_s1 + $0x1278] sm:$0xff]  ;;  %v749_v12 = vld [vmem:[%s7956_s1 + $0x1400] sm:$0xff] }
 0x126   :  { %3125 = vmatmul.mubr.f32.vlgmr.msra.gmra.mrb[32].mxu1 %v1220_v22  ;;  %4949 = vmatpush3.bf16.msra.mxu0 %v4948_v23  ;;  %v695_v22 = vld [vmem:[%s7956_s1 + $0x1250] sm:$0xff]  ;;  %v696_v23 = vld [vmem:[%s7956_s1 + $0x1258] sm:$0xff] }
 0x127   :  { %4981 = vmatpush3.bf16.msra.mxu1 %v4980_v26  ;;  %3054 = vmatprep.mubr.f32.mxu0 %v1615_v6  ;;  %v4966_v26 = vpack.c.bf16 %v712_v17, %v711_v13  ;;  %v713_v6 = vld [vmem:[%s7956_s1 + $0x12e0] sm:$0xff]  ;;  %v4968_v29 = vpack.c.bf16 %v696_v23, %v695_v22  ;;  %v732_v15 = vld [vmem:[%s7956_s1 + $0x1378] sm:$0xff]  ;;  %v767_v23 = vld [vmem:[%s7956_s1 + $0x1490] sm:$0xff] }
 0x128   :  { %4951 = vmatprep.subr.bf16.mxu0 %v4950_v27  ;;  %4983 = vmatprep.subr.bf16.mxu1 %v4982_v7  ;;  %v4998_v27 = vpack.c.bf16 %v744_v19, %v743_v18  ;;  %v714_v7 = vld [vmem:[%s7956_s1 + $0x12e8] sm:$0xff]  ;;  %v5206_v46 = vld [vmem:[%s7955_s0 + $0x258] ss:$88 sps:$4 sm:$0xff]   ;;  %v5209_v4 = vld [vmem:[%s7955_s0 + $0x25c] ss:$88 sps:$4 sm:$0xff]  }
 0x129   :  { %3129 = vmatprep.mubr.f32.mxu1 %v1617_v8  ;;  %3055 = vmatmul.mubr.f32.gmra.mrb[34].mxu0 %v1614_v41  ;;  %v745_v8 = vld [vmem:[%s7956_s1 + $0x13e0] sm:$0xff]  ;;  %v4970_v41 = vpack.c.bf16 %v714_v7, %v713_v6  ;;  %v750_v19 = vld [vmem:[%s7956_s1 + $0x1408] sm:$0xff]  ;;  %v1642_v22 = vrot.slane %v5206_v46, %v5462_v25  ;;  %v1649_v28 = vrot.slane %v5209_v4, %v5462_v25  ;;  %v755_v46 = vld [vmem:[%s7956_s1 + $0x1430] sm:$0xff] }
 0x12a   :  { %3130 = vmatmul.mubr.f32.gmra.mrb[34].mxu1 %v1616_v42  ;;  %4953 = vmatpush3.bf16.msra.mxu0 %v4952_v43  ;;  %v5002_v42 = vpack.c.bf16 %v746_v9, %v745_v8  ;;  %v730_v43 = vld [vmem:[%s7956_s1 + $0x1368] sm:$0xff]  ;;  %v5213_v8 = vld [vmem:[%s7955_s0 + $0x100] ss:$88 sps:$4 sm:$0xff]   ;;  %v5215_v9 = vld [vmem:[%s7955_s0 + $0x104] ss:$88 sps:$4 sm:$0xff]  }
 0x12b   :  { %4985 = vmatpush3.bf16.msra.mxu1 %v4984_v45  ;;  %4955 = vmatprep.subr.bf16.mxu0 %v4954_v49  ;;  %v715_v45 = vld [vmem:[%s7956_s1 + $0x12f0] sm:$0xff]  ;;  %v5004_v1 = vpack.c.bf16 %v730_v43, %v729_v33  ;;  %v784_v43 = vld [vmem:[%s7956_s1 + $0x1518] sm:$0xff] }
 0x12c   :  { %4987 = vmatprep.subr.bf16.mxu1 %v4986_v50  ;;  %3199 = vmatprep.mubr.f32.mxu0 %v1255_v60  ;;  %v747_v50 = vld [vmem:[%s7956_s1 + $0x13f0] sm:$0xff]  ;;  %v4974_v56 = vpack.c.bf16 %v716_v47, %v715_v45  ;;  %v769_v45 = vld [vmem:[%s7956_s1 + $0x14a0] sm:$0xff]  ;;  %v770_v47 = vld [vmem:[%s7956_s1 + $0x14a8] sm:$0xff] }
 0x12d   :  { %3274 = vmatprep.mubr.f32.mxu1 %v1257_v63  ;;  %v731_v60 = vld [vmem:[%s7956_s1 + $0x1370] sm:$0xff]  ;;  %v5204_v63 = vld [vmem:[%s7955_s0 + $0x1a8] ss:$88 sps:$4 sm:$0xff]   ;;  %v5006_v36 = vpack.c.bf16 %v748_v51, %v747_v50  ;;  %v7767_v51 = vrot.slane %v5215_v9, %v5462_v25  ;;  %v756_v4 = vld [vmem:[%s7956_s1 + $0x1438] sm:$0xff] }
 0x12e   :  { %4957 = vmatpush3.bf16.msra.mxu0 %v4956_v0  ;;  %v7696_v13 = vrot.slane %v5204_v63, %v5462_v25  ;;  %v5212_v7 = vld [vmem:[%s7955_s0 + $0x54] ss:$88 sps:$4 sm:$0xff]   ;;  %v761_v9 = vld [vmem:[%s7956_s1 + $0x1460] sm:$0xff] }
 0x12f   :  { %4989 = vmatpush3.bf16.msra.mxu1 %v4988_v10  ;;  %4959 = vmatprep.subr.bf16.mxu0 %v4958_v16  ;;  %v765_v16 = vld [vmem:[%s7956_s1 + $0x1480] sm:$0xff]  ;;  %v751_v33 = vld [vmem:[%s7956_s1 + $0x1410] sm:$0xff]  ;;  %v7764_v50 = vrot.slane %v5212_v7, %v5462_v25  ;;  %v754_v63 = vld [vmem:[%s7956_s1 + $0x1428] sm:$0xff] }
 0x130   :  { %4991 = vmatprep.subr.bf16.mxu1 %v4990_v2  ;;  %v766_v2 = vld [vmem:[%s7956_s1 + $0x1488] sm:$0xff] }
 0x131   :  { %v5010_v11 = vpack.c.bf16 %v766_v2, %v765_v16  ;;  %v1293_v2 = vcombine.high %v7764_v50, %v7767_v51 }
 0x132   :  { %4961 = vmatpush3.bf16.msra.mxu0 %v4960_v62 }
 0x133   :  { %4993 = vmatpush3.bf16.msra.mxu1 %v4992_v44  ;;  %4963 = vmatprep.subr.bf16.mxu0 %v4962_v57  ;;  %v4976_v57 = vpack.c.bf16 %v700_v58, %v699_v52  ;;  %v1650_v52 = vcombine.low %v7696_v13, %v1642_v22  ;;  %v753_v58 = vld [vmem:[%s7956_s1 + $0x1420] sm:$0xff] }
 0x134   :  { %4995 = vmatprep.subr.bf16.mxu1 %v4994_v61  ;;  %v5008_v61 = vpack.c.bf16 %v732_v15, %v731_v60  ;;  %v5018_v60 = vpack.c.bf16 %v770_v47, %v769_v45  ;;  %v772_v15 = vld [vmem:[%s7956_s1 + $0x14b8] sm:$0xff]  ;;  %v5216_v47 = vld [vmem:[%s7955_s0 + $0x1b0] ss:$88 sps:$4 sm:$0xff]  }
 0x136   :  { %4965 = vmatpush3.bf16.msra.mxu0 %v4964_v20  ;;  %v781_v20 = vld [vmem:[%s7956_s1 + $0x1500] sm:$0xff] }
 0x137   :  { %4997 = vmatpush3.bf16.msra.mxu1 %v4996_v21  ;;  %4967 = vmatprep.subr.bf16.mxu0 %v4966_v26  ;;  %v782_v21 = vld [vmem:[%s7956_s1 + $0x1508] sm:$0xff]  ;;  %v768_v26 = vld [vmem:[%s7956_s1 + $0x1498] sm:$0xff] }
 0x138   :  { %4999 = vmatprep.subr.bf16.mxu1 %v4998_v27  ;;  %v3739_v48 = vpop.f32.mrb[8].mxu0  ;;  %v1635_v27 = vrot.slane %v5208_v37, %v5462_v25  ;;  %v5043_v32 = vpack.c.bf16 %v782_v21, %v781_v20 }
 0x139   :  { %v3777_v49 = vpop.f32.mrb[8].mxu1  ;;  %v3740_v53 = vpop.f32.mrb[9].mxu0 }
 0x13a   :  { %v3778_v54 = vpop.f32.mrb[9].mxu1  ;;  %v3741_v0 = vadd.f32 %v3740_v53, %v3739_v48  ;;  %4969 = vmatpush3.bf16.msra.mxu0 %v4968_v29  ;;  %v1254_v29 = vcombine.low %v7525_v34, %v7528_v35  ;;  %v5014_v34 = vpack.c.bf16 %v768_v26, %v767_v23  ;;  %v1653_v35 = vcombine.high %v1635_v27, %v1649_v28  ;;  %v760_v26 = vld [vmem:[%s7956_s1 + $0x1458] sm:$0xff] }
 0x13b   :  { %v3779_v10 = vadd.f32 %v3778_v54, %v3777_v49  ;;  %5001 = vmatpush3.bf16.msra.mxu1 %v5000_v30  ;;  %4971 = vmatprep.subr.bf16.mxu0 %v4970_v41  ;;  %v1256_v30 = vcombine.low %v7531_v39, %v7534_v40  ;;  %v5247_v41 = vmov 0.0|0.0   ;;  %v752_v39 = vld [vmem:[%s7956_s1 + $0x1418] sm:$0xff]  ;;  %v783_v40 = vld [vmem:[%s7956_s1 + $0x1510] sm:$0xff]  ;;  %v7758_v48 = vrot.slane %v5210_v59, %v5462_v25  ;;  %v777_v59 = vld [vmem:[%s7956_s1 + $0x14e0] sm:$0xff] }
 0x13c   :  { %5003 = vmatprep.subr.bf16.mxu1 %v5002_v42  ;;  %v2152_v5 = vadd.f32 %v3741_v0, %v7469_v38  ;;  %v3742_v62 = vpop.f32.mrb[10].mxu0  ;;  %v1651_v42 = vcombine.high %v7696_v13, %v1642_v22  ;;  %v7761_v49 = vrot.slane %v5213_v8, %v5462_v25  ;;  %v1652_v53 = vcombine.low %v1635_v27, %v1649_v28  ;;  %v785_v0 = vld [vmem:[%s7956_s1 + $0x1520] sm:$0xff]  ;;  %v759_v22 = vld [vmem:[%s7956_s1 + $0x1450] sm:$0xff]  ;;  %v792_v28 = vld [vmem:[%s7956_s1 + $0x1558] sm:$0xff] }
 0x13d   :  { %v3780_v44 = vpop.f32.mrb[10].mxu1  ;;  %v3743_v3 = vpop.f32.mrb[11].mxu0  ;;  %v5016_v54 = vpack.c.bf16 %v752_v39, %v751_v33  ;;  %v789_v13 = vld [vmem:[%s7956_s1 + $0x1540] sm:$0xff]  ;;  %v791_v27 = vld [vmem:[%s7956_s1 + $0x1550] sm:$0xff]  ;;  %v5032_v7 = vpack.c.bf16 %v760_v26, %v759_v22 }
 0x13e   :  { %v3781_v14 = vpop.f32.mrb[11].mxu1  ;;  %v7698_v17 = vadd.f32 %v3779_v10, %v2152_v5  ;;  %v3744_v18 = vadd.f32 %v3743_v3, %v3742_v62  ;;  %4973 = vmatpush3.bf16.msra.mxu0 %v4972_v55  ;;  %v5046_v55 = vpack.c.bf16 %v784_v43, %v783_v40  ;;  %v786_v10 = vld [vmem:[%s7956_s1 + $0x1528] sm:$0xff]  ;;  %v1291_v16 = vcombine.high %v7758_v48, %v7761_v49  ;;  %v787_v5 = vld [vmem:[%s7956_s1 + $0x1530] sm:$0xff]  ;;  %v788_v62 = vld [vmem:[%s7956_s1 + $0x1538] sm:$0xff] }
 0x13f   :  { %5005 = vmatpush3.bf16.msra.mxu1 %v5004_v1  ;;  %v3782_v38 = vadd.f32 %v3781_v14, %v3780_v44  ;;  %4975 = vmatprep.subr.bf16.mxu0 %v4974_v56  ;;  %v771_v1 = vld [vmem:[%s7956_s1 + $0x14b0] sm:$0xff]  ;;  %v5020_v56 = vpack.c.bf16 %v754_v63, %v753_v58  ;;  %v773_v44 = vld [vmem:[%s7956_s1 + $0x14c0] sm:$0xff]  ;;  %v774_v3 = vld [vmem:[%s7956_s1 + $0x14c8] sm:$0xff]  ;;  %v5024_v14 = vpack.c.bf16 %v756_v4, %v755_v46 }
 0x140   :  { %5007 = vmatprep.subr.bf16.mxu1 %v5006_v36  ;;  %v2157_v6 = vadd.f32 %v3744_v18, %v7497_v24  ;;  %v5012_v24 = vpack.c.bf16 %v750_v19, %v749_v12  ;;  %v5049_v36 = vpack.c.bf16 %v786_v10, %v785_v0  ;;  %v5022_v37 = vpack.c.bf16 %v772_v15, %v771_v1  ;;  %v758_v12 = vld [vmem:[%s7956_s1 + $0x1448] sm:$0xff]  ;;  %v776_v19 = vld [vmem:[%s7956_s1 + $0x14d8] sm:$0xff]  ;;  %v763_v39 = vld [vmem:[%s7956_s1 + $0x1470] sm:$0xff] }
 0x141   :  { %v790_v18 = vld [vmem:[%s7956_s1 + $0x1548] sm:$0xff]  ;;  %v5058_v8 = vpack.c.bf16 %v792_v28, %v791_v27  ;;  %v764_v58 = vld [vmem:[%s7956_s1 + $0x1478] sm:$0xff]  ;;  %v1664_v46 = vrot.slane %v5216_v47, %v5462_v25 }
 0x142   :  { %v7735_v31 = vadd.f32 %v3782_v38, %v2157_v6  ;;  %4977 = vmatpush3.bf16.msra.mxu0 %v4976_v57  ;;  %v5052_v57 = vpack.c.bf16 %v788_v62, %v787_v5  ;;  %v775_v38 = vld [vmem:[%s7956_s1 + $0x14d0] sm:$0xff]  ;;  %v5055_v21 = vpack.c.bf16 %v790_v18, %v789_v13  ;;  %v778_v6 = vld [vmem:[%s7956_s1 + $0x14e8] sm:$0xff]  ;;  %v796_v63 = vld [vmem:[%s7956_s1 + $0x1578] sm:$0xff] }
 0x143   :  { %5009 = vmatpush3.bf16.msra.mxu1 %v5008_v61  ;;  %5011 = vmatprep.subr.bf16.mxu0 %v5010_v11  ;;  %v757_v61 = vld [vmem:[%s7956_s1 + $0x1440] sm:$0xff]  ;;  %v5026_v11 = vpack.c.bf16 %v774_v3, %v773_v44  ;;  %v5030_v23 = vpack.c.bf16 %v776_v19, %v775_v38  ;;  %v798_v44 = vld [vmem:[%s7956_s1 + $0x1588] sm:$0xff]  ;;  %v800_v13 = vld [vmem:[%s7956_s1 + $0x1598] sm:$0xff] }
 0x144   :  { %5042 = vmatprep.subr.bf16.mxu1 %v5247_v41  ;;  %v5028_v20 = vpack.c.bf16 %v758_v12, %v757_v61  ;;  %v799_v12 = vld [vmem:[%s7956_s1 + $0x1590] sm:$0xff]  ;;  %v801_v38 = vld [vmem:[%s7956_s1 + $0x15a0] sm:$0xff]  ;;  %v802_v19 = vld [vmem:[%s7956_s1 + $0x15a8] sm:$0x7] }
 0x145   :  { %3200 = vmatmul.mubr.f32.vlgmr.msra.gmra.mrb[36].mxu0 %v1254_v29  ;;  %v762_v29 = vld [vmem:[%s7956_s1 + $0x1468] sm:$0xff]  ;;  %v5070_v18 = vpack.c.bf16 %v800_v13, %v799_v12  ;;  %v3439_v13 = vld [vmem:[%s7958_s3 + $0x10] sm:$0xff] }
 0x146   :  { %3275 = vmatmul.mubr.f32.vlgmr.msra.gmra.mrb[36].mxu1 %v1256_v30  ;;  %5013 = vmatpush3.bf16.msra.mxu0 %v5012_v24  ;;  %v5034_v30 = vpack.c.bf16 %v778_v6, %v777_v59  ;;  %v793_v24 = vld [vmem:[%s7956_s1 + $0x1560] sm:$0xff]  ;;  %v5036_v45 = vpack.c.bf16 %v762_v29, %v761_v9 }
 0x147   :  { %5044 = vmatpush1.bf16.msra.mxu1 %v5043_v32  ;;  %3204 = vmatprep.mubr.f32.mxu0 %v1651_v42  ;;  %v794_v32 = vld [vmem:[%s7956_s1 + $0x1568] sm:$0xff] }
 0x148   :  { %5015 = vmatprep.subr.bf16.mxu0 %v5014_v34  ;;  %5045 = vmatprep.subr.bf16.mxu1 %v5247_v41  ;;  %v779_v34 = vld [vmem:[%s7956_s1 + $0x14f0] sm:$0xff] }
 0x149   :  { %3279 = vmatprep.mubr.f32.mxu1 %v1653_v35  ;;  %3205 = vmatmul.mubr.f32.gmra.mrb[38].mxu0 %v1650_v52  ;;  %v780_v35 = vld [vmem:[%s7956_s1 + $0x14f8] sm:$0xff] }
 0x14a   :  { %3280 = vmatmul.mubr.f32.gmra.mrb[38].mxu1 %v1652_v53  ;;  %5017 = vmatpush3.bf16.msra.mxu0 %v5016_v54  ;;  %v5219_v52 = vld [vmem:[%s7955_s0 + $0x260] ss:$88 sps:$4 sm:$0xff]   ;;  %v5038_v0 = vpack.c.bf16 %v780_v35, %v779_v34 }
 0x14b   :  { %5047 = vmatpush1.bf16.msra.mxu1 %v5046_v55  ;;  %5019 = vmatprep.subr.bf16.mxu0 %v5018_v60  ;;  %v5061_v55 = vpack.c.bf16 %v794_v32, %v793_v24  ;;  %v795_v60 = vld [vmem:[%s7956_s1 + $0x1570] sm:$0xff] }
 0x14c   :  { %5048 = vmatprep.subr.bf16.mxu1 %v5247_v41  ;;  %3349 = vmatprep.mubr.f32.mxu0 %v1291_v16 }
 0x14d   :  { %3550 = vmatprep.mubr.msk.f32.mxu1 %vm1776_vm0, %v1293_v2 }
 0x14e   :  { %5021 = vmatpush3.bf16.msra.mxu0 %v5020_v56  ;;  %v5040_v56 = vpack.c.bf16 %v764_v58, %v763_v39 }
 0x14f   :  { %5050 = vmatpush1.bf16.msra.mxu1 %v5049_v36  ;;  %5023 = vmatprep.subr.bf16.mxu0 %v5022_v37  ;;  %v5064_v36 = vpack.c.bf16 %v796_v63, %v795_v60  ;;  %v1678_v37 = vrot.slane %v5219_v52, %v5462_v25 }
 0x150   :  { %5051 = vmatprep.subr.bf16.mxu1 %v5247_v41 }
 0x152   :  { %5025 = vmatpush3.bf16.msra.mxu0 %v5024_v14  ;;  %v1290_v14 = vcombine.low %v7758_v48, %v7761_v49  ;;  %v5218_v48 = vld [vmem:[%s7955_s0 + $0x1b4] ss:$88 sps:$4 sm:$0xff]   ;;  %v5221_v49 = vld [vmem:[%s7955_s0 + $0x264] ss:$88 sps:$4 sm:$0xff]  }
 0x153   :  { %5053 = vmatpush1.bf16.msra.mxu1 %v5052_v57  ;;  %5027 = vmatprep.subr.bf16.mxu0 %v5026_v11  ;;  %v1687_v11 = vcombine.high %v1664_v46, %v1678_v37  ;;  %v1685_v22 = vrot.slane %v5221_v49, %v5462_v25 }
 0x154   :  { %5054 = vmatprep.subr.bf16.mxu1 %v5247_v41 }
 0x156   :  { %5029 = vmatpush3.bf16.msra.mxu0 %v5028_v20  ;;  %v5073_v20 = vpack.c.bf16 %v802_v19, %v801_v38 }
 0x157   :  { %5056 = vmatpush1.bf16.msra.mxu1 %v5055_v21  ;;  %5031 = vmatprep.subr.bf16.mxu0 %v5030_v23  ;;  %v1671_v21 = vrot.slane %v5218_v48, %v5462_v25  ;;  %v1292_v23 = vcombine.low %v7764_v50, %v7767_v51 }
 0x158   :  { %5057 = vmatprep.subr.bf16.mxu1 %v5247_v41  ;;  %v3815_v33 = vpop.f32.mrb[12].mxu0 }
 0x159   :  { %v3853_v42 = vpop.f32.mrb[12].mxu1  ;;  %v3816_v40 = vpop.f32.mrb[13].mxu0  ;;  %v1689_v26 = vcombine.high %v1671_v21, %v1685_v22  ;;  %v1688_v27 = vcombine.low %v1671_v21, %v1685_v22 }
 0x15a   :  { %v3854_v43 = vpop.f32.mrb[13].mxu1  ;;  %v3817_v53 = vadd.f32 %v3816_v40, %v3815_v33  ;;  %5033 = vmatpush3.bf16.msra.mxu0 %v5032_v7 }
 0x15b   :  { %v3855_v54 = vadd.f32 %v3854_v43, %v3853_v42  ;;  %5059 = vmatpush1.bf16.msra.mxu1 %v5058_v8  ;;  %5035 = vmatprep.subr.bf16.mxu0 %v5034_v30 }
 0x15c   :  { %5060 = vmatprep.subr.bf16.mxu1 %v5247_v41  ;;  %v2302_v10 = vadd.f32 %v3817_v53, %v7698_v17  ;;  %v3818_v1 = vpop.f32.mrb[14].mxu0  ;;  %v797_v17 = vld [vmem:[%s7956_s1 + $0x1580] sm:$0xff] }
 0x15d   :  { %v3856_v15 = vpop.f32.mrb[14].mxu1  ;;  %v3819_v16 = vpop.f32.mrb[15].mxu0  ;;  %v5067_v61 = vpack.c.bf16 %v798_v44, %v797_v17 }
 0x15e   :  { %v3857_v2 = vpop.f32.mrb[15].mxu1  ;;  %v2377_v4 = vadd.f32 %v3855_v54, %v2302_v10  ;;  %v3820_v5 = vadd.f32 %v3819_v16, %v3818_v1  ;;  %5037 = vmatpush3.bf16.msra.mxu0 %v5036_v45 }
 0x15f   :  { %5062 = vmatpush1.bf16.msra.mxu1 %v5061_v55  ;;  %v3858_v62 = vadd.f32 %v3857_v2, %v3856_v15  ;;  %5039 = vmatprep.subr.bf16.mxu0 %v5038_v0 }
 0x160   :  { %5063 = vmatprep.subr.bf16.mxu1 %v5247_v41  ;;  %v2307_v3 = vadd.f32 %v3820_v5, %v7735_v31  ;;  %v1686_v31 = vcombine.low %v1664_v46, %v1678_v37 }
 0x162   :  { %v2382_v57 = vadd.f32 %v3858_v62, %v2307_v3  ;;  %5041 = vmatpush3.bf16.msra.mxu0 %v5040_v56 }
 0x163   :  { %5065 = vmatpush1.bf16.msra.mxu1 %v5064_v36 }
 0x164   :  { %5066 = vmatprep.subr.bf16.mxu1 %v5247_v41 }
 0x165   :  { %3350 = vmatmul.mubr.f32.vlgmr.msra.gmra.mrb[40].mxu0 %v1290_v14 }
 0x166   :  { %3354 = vmatprep.mubr.f32.mxu0 %v1687_v11  ;;  %v3438_v11 = vld [vmem:[%s7958_s3 + $0x8] sm:$0xff] }
 0x167   :  { %5068 = vmatpush1.bf16.msra.mxu1 %v5067_v61  ;;  %v3437_v61 = vld [vmem:[%s7958_s3] sm:$0xff] }
 0x168   :  { %5069 = vmatprep.subr.bf16.mxu1 %v5247_v41  ;;  %v5076_v12 = vpack.c.bf16 %v3438_v11, %v3437_v61 }
 0x169   :  { %3355 = vmatmul.mubr.f32.gmra.mrb[42].mxu0 %v1686_v31  ;;  %v3440_v31 = vld [vmem:[%s7958_s3 + $0x18] sm:$0xff] }
 0x16a   :  { %5077 = vmatprep.subr.bf16.mxu0 %v5076_v12  ;;  %v5080_v48 = vpack.c.bf16 %v3440_v31, %v3439_v13 }
 0x16b   :  { %5071 = vmatpush1.bf16.msra.mxu1 %v5070_v18  ;;  %5079 = vmatpush3.bf16.msra.mxu0 %v5076_v12 }
 0x16c   :  { %5072 = vmatprep.subr.bf16.mxu1 %v5247_v41  ;;  %5081 = vmatprep.subr.bf16.mxu0 %v5080_v48 }
 0x16f   :  { %5075 = vmatpush1.bf16.msk.msra.mxu1 %vm5074_vm3, %v5073_v20  ;;  %5083 = vmatpush3.bf16.msra.mxu0 %v5080_v48 }
 0x172   :  { %3425 = vmatmul.mubr.f32.vlgmr.msra.gmra.mrb[40].mxu1 %v1292_v23 }
 0x173   :  { %3551 = vmatprep.mubr.msk.f32.mxu1 %vm1776_vm0, %v1689_v26 }
 0x176   :  { %3430 = vmatmul.mubr.f32.gmra.mrb[42].mxu1 %v1688_v27 }
 0x178   :  { %v3891_v28 = vpop.f32.mrb[16].mxu0 }
 0x179   :  { %v3929_v59 = vpop.f32.mrb[16].mxu1  ;;  %v3892_v6 = vpop.f32.mrb[17].mxu0 }
 0x17a   :  { %v3930_v7 = vpop.f32.mrb[17].mxu1  ;;  %v3893_v8 = vadd.f32 %v3892_v6, %v3891_v28 }
 0x17b   :  { %v3931_v25 = vadd.f32 %v3930_v7, %v3929_v59 }
 0x17c   :  { %v2452_v9 = vadd.f32 %v3893_v8, %v2377_v4  ;;  %v3894_v41 = vpop.f32.mrb[18].mxu0 }
 0x17d   :  { %v3932_v29 = vpop.f32.mrb[18].mxu1  ;;  %v3895_v30 = vpop.f32.mrb[19].mxu0 }
 0x17e   :  { %v3933_v24 = vpop.f32.mrb[19].mxu1  ;;  %v2527_v32 = vadd.f32 %v3931_v25, %v2452_v9  ;;  %v3896_v50 = vadd.f32 %v3895_v30, %v3894_v41 }
 0x17f   :  { %v3934_v51 = vadd.f32 %v3933_v24, %v3932_v29 }
 0x180   :  { %v2457_v33 = vadd.f32 %v3896_v50, %v2382_v57 }
 0x182   :  { %v2532_v42 = vadd.f32 %v3934_v51, %v2457_v33 }
 0x198   :  { %v3967_v34 = vpop.f32.mrb[20].mxu0 }
 0x199   :  { %v4005_v35 = vpop.f32.mrb[20].mxu1  ;;  %v3968_v39 = vpop.f32.mrb[21].mxu0 }
 0x19a   :  { %v4006_v40 = vpop.f32.mrb[21].mxu1  ;;  %v3969_v43 = vadd.f32 %v3968_v39, %v3967_v34 }
 0x19b   :  { %v4007_v45 = vadd.f32 %v4006_v40, %v4005_v35 }
 0x19c   :  { %v2602_v47 = vadd.f32 %v3969_v43, %v2527_v32  ;;  %v3970_v52 = vpop.f32.mrb[22].mxu0 }
 0x19d   :  { %v4008_v53 = vpop.f32.mrb[22].mxu1  ;;  %v3971_v54 = vpop.f32.mrb[23].mxu0 }
 0x19e   :  { %v4009_v55 = vpop.f32.mrb[23].mxu1  ;;  %v2677_v58 = vadd.f32 %v4007_v45, %v2602_v47  ;;  %v3972_v60 = vadd.f32 %v3971_v54, %v3970_v52 }
 0x19f   :  { %v4010_v63 = vadd.f32 %v4009_v55, %v4008_v53 }
 0x1a0   :  { %v2607_v0 = vadd.f32 %v3972_v60, %v2532_v42 }
 0x1a2   :  { %v2682_v10 = vadd.f32 %v4010_v63, %v2607_v0 }
 0x1b8   :  { %v4043_v1 = vpop.f32.mrb[24].mxu0 }
 0x1b9   :  { %v4081_v15 = vpop.f32.mrb[24].mxu1  ;;  %v4044_v16 = vpop.f32.mrb[25].mxu0 }
 0x1ba   :  { %v4082_v2 = vpop.f32.mrb[25].mxu1  ;;  %v4045_v56 = vadd.f32 %v4044_v16, %v4043_v1 }
 0x1bb   :  { %v4083_v36 = vadd.f32 %v4082_v2, %v4081_v15 }
 0x1bc   :  { %v2752_v46 = vadd.f32 %v4045_v56, %v2677_v58  ;;  %v4046_v37 = vpop.f32.mrb[26].mxu0 }
 0x1bd   :  { %v4084_v4 = vpop.f32.mrb[26].mxu1  ;;  %v4047_v5 = vpop.f32.mrb[27].mxu0 }
 0x1be   :  { %v4085_v62 = vpop.f32.mrb[27].mxu1  ;;  %v2827_v17 = vadd.f32 %v4083_v36, %v2752_v46  ;;  %v4048_v44 = vadd.f32 %v4047_v5, %v4046_v37 }
 0x1bf   :  { %v4086_v3 = vadd.f32 %v4085_v62, %v4084_v4 }
 0x1c0   :  { %v2757_v14 = vadd.f32 %v4048_v44, %v2682_v10 }
 0x1c2   :  { %v2832_v57 = vadd.f32 %v4086_v3, %v2757_v14 }
 0x1d8   :  { %v4119_v49 = vpop.f32.mrb[28].mxu0 }
 0x1d9   :  { %v4157_v18 = vpop.f32.mrb[28].mxu1  ;;  %v4120_v38 = vpop.f32.mrb[29].mxu0 }
 0x1da   :  { %v4158_v19 = vpop.f32.mrb[29].mxu1  ;;  %v4121_v20 = vadd.f32 %v4120_v38, %v4119_v49  ;;  %v3552_v49 = vld [vmem:[%s7959_s4] ss:$0 sm:$0xff] }
 0x1db   :  { %v4159_v21 = vadd.f32 %v4158_v19, %v4157_v18 }
 0x1dc   :  { %v2902_v22 = vadd.f32 %v4121_v20, %v2827_v17  ;;  %v4122_v23 = vpop.f32.mrb[30].mxu0 }
 0x1dd   :  { %v4160_v26 = vpop.f32.mrb[30].mxu1  ;;  %v4123_v27 = vpop.f32.mrb[31].mxu0 }
 0x1de   :  { %v4161_v28 = vpop.f32.mrb[31].mxu1  ;;  %v2977_v59 = vadd.f32 %v4159_v21, %v2902_v22  ;;  %v4124_v6 = vadd.f32 %v4123_v27, %v4122_v23 }
 0x1df   :  { %v4162_v7 = vadd.f32 %v4161_v28, %v4160_v26 }
 0x1e0   :  { %v2907_v8 = vadd.f32 %v4124_v6, %v2832_v57 }
 0x1e2   :  { %v2982_v25 = vadd.f32 %v4162_v7, %v2907_v8 }
 0x1f8   :  { %v4195_v9 = vpop.f32.mrb[32].mxu0 }
 0x1f9   :  { %v4233_v41 = vpop.f32.mrb[32].mxu1  ;;  %v4196_v29 = vpop.f32.mrb[33].mxu0 }
 0x1fa   :  { %v4234_v30 = vpop.f32.mrb[33].mxu1  ;;  %v4197_v24 = vadd.f32 %v4196_v29, %v4195_v9 }
 0x1fb   :  { %v4235_v32 = vadd.f32 %v4234_v30, %v4233_v41 }
 0x1fc   :  { %v3052_v50 = vadd.f32 %v4197_v24, %v2977_v59  ;;  %v4198_v51 = vpop.f32.mrb[34].mxu0 }
 0x1fd   :  { %v4236_v33 = vpop.f32.mrb[34].mxu1  ;;  %v4199_v42 = vpop.f32.mrb[35].mxu0 }
 0x1fe   :  { %v4237_v34 = vpop.f32.mrb[35].mxu1  ;;  %v3127_v35 = vadd.f32 %v4235_v32, %v3052_v50  ;;  %v4200_v39 = vadd.f32 %v4199_v42, %v4198_v51 }
 0x1ff   :  { %v4238_v40 = vadd.f32 %v4237_v34, %v4236_v33 }
 0x200   :  { %v3057_v43 = vadd.f32 %v4200_v39, %v2982_v25 }
 0x202   :  { %v3132_v45 = vadd.f32 %v4238_v40, %v3057_v43 }
 0x218   :  { %v4271_v47 = vpop.f32.mrb[36].mxu0 }
 0x219   :  { %v4309_v52 = vpop.f32.mrb[36].mxu1  ;;  %v4272_v53 = vpop.f32.mrb[37].mxu0 }
 0x21a   :  { %v4310_v54 = vpop.f32.mrb[37].mxu1  ;;  %v4273_v55 = vadd.f32 %v4272_v53, %v4271_v47 }
 0x21b   :  { %v4311_v58 = vadd.f32 %v4310_v54, %v4309_v52 }
 0x21c   :  { %v3202_v60 = vadd.f32 %v4273_v55, %v3127_v35  ;;  %v4274_v63 = vpop.f32.mrb[38].mxu0 }
 0x21d   :  { %v4312_v0 = vpop.f32.mrb[38].mxu1  ;;  %v4275_v10 = vpop.f32.mrb[39].mxu0 }
 0x21e   :  { %v4313_v1 = vpop.f32.mrb[39].mxu1  ;;  %v3277_v15 = vadd.f32 %v4311_v58, %v3202_v60  ;;  %v4276_v16 = vadd.f32 %v4275_v10, %v4274_v63 }
 0x21f   :  { %v4314_v2 = vadd.f32 %v4313_v1, %v4312_v0 }
 0x220   :  { %v3207_v56 = vadd.f32 %v4276_v16, %v3132_v45 }
 0x222   :  { %v3282_v36 = vadd.f32 %v4314_v2, %v3207_v56 }
 0x238   :  { %v4347_v46 = vpop.f32.mrb[40].mxu0 }
 0x239   :  { %v4348_v37 = vpop.f32.mrb[41].mxu0 }
 0x23a   :  { %v4349_v4 = vadd.f32 %v4348_v37, %v4347_v46 }
 0x23c   :  { %v4350_v5 = vpop.f32.mrb[42].mxu0  ;;  %v3352_v62 = vadd.f32 %v4349_v4, %v3277_v15 }
 0x23d   :  { %v4351_v17 = vpop.f32.mrb[43].mxu0 }
 0x23e   :  { %v4352_v44 = vadd.f32 %v4351_v17, %v4350_v5 }
 0x240   :  { %v3357_v3 = vadd.f32 %v4352_v44, %v3282_v36 }
 0x245   :  { %v3426_v14 = vpop.f32.mrb[40].mxu1 }
 0x246   :  { %v3427_v57 = vadd.f32 %v3426_v14, %v3352_v62  ;;  %v3428_v61 = vpop.f32.mrb[41].mxu1 }
 0x248   :  { %v3435_v11 = vmax.f32 %v3427_v57, 0.0 }
 0x249   :  { %v3431_v12 = vpop.f32.mrb[42].mxu1 }
 0x24a   :  { %v3432_v13 = vadd.f32 %v3431_v12, %v3357_v3  ;;  %v3433_v31 = vpop.f32.mrb[43].mxu1  ;;  %4367 = vmatprep.mubr.msk.f32.mxu0 %vm3448_vm4, %v3435_v11 }
 0x24c   :  { %v3436_v48 = vmax.f32 %v3432_v13, 0.0 }
 0x24e   :  { %4368 = vmatmul.mubr.msk.f32.vlgmr.msra.gmra.mrb[44].mxu0 %vm3448_vm4, %v3436_v48 }
 0x321   :  { %v4369_v18 = vpop.f32.mrb[44].mxu0 }
 0x322   :  { %v3527_v38 = vadd.f32 %v4369_v18, %v3552_v49  ;;  %v3521_v19 = vpop.f32.mrb[45].mxu0 }
 0x323   :  { %v3522_v20 = vadd.f32 %v3552_v49, %v3521_v19 }
 0x324   :  { %3531 = vst [vmem:[#allocation2 + $0x8] sm:$0xff] %v3527_v38 }
 0x325   :  { %3530 = vst [vmem:[#allocation2] sm:$0xff] %v3522_v20 }
 0x326   :  { %3536 = vsyncadd [#allocation3], 224  ;;  %s5249_s24 = smov [#allocation2]  }
 0x327   :  { %s3537_s25 = sshll.u32 %s5249_s24, 4  ;;  %s3538_s25 = int_to_ptr.vmem [resolvable:$true] %s3537_s25 }
 0x328   :  { %s5222_s26 = scalar_lea.vmem %s3538_s25, 32  ;;  %s5226_s27 = scalar_lea.vmem %s3538_s25, 256 }
 0x329   :  { %p5223_p0 = scmp.ne.s32.totalorder %s3538_s25, %s5222_s26  ;;  %p5227_p1 = scmp.lt.s32.totalorder %s3538_s25, %s3538_s25 }
 0x32a   :  { %p5228_p2 = scmp.lt.s32.totalorder %s5226_s27, %s5222_s26 }
 0x32c   :  { %p5229_p3 = por %p5228_p2, %p5227_p1 }
 0x32e   :  { %p5230_p4 = pnand %p5229_p3, %p5223_p0 }
 0x330   :  { %5233 = shalt.err (!%p5230_p4)
}
 0x331   :  { %s5234_s29 = scalar_lea.hbm %s7960_s5, 32 }
 0x332   :  { %p5235_p5 = scmp.ne.s32.totalorder %s7960_s5, %s5234_s29  ;;  %p5238_p6 = scmp.lt.u32.totalorder %s5234_s29, %s7960_s5 }
 0x334   :  { %p5240_p7 = pnand %p5238_p6, %p5235_p5 }
 0x336   :  { %5243 = shalt.err (!%p5240_p7)
}
 0x337   :  { %s5250_s8 = smov 32   ;;  %s5251_s9 = smov 2  }
 0x338   :  { %3543 = dma.vmem_to_hbm [thread:$0]  %s3538_s25, 32, %s7960_s5, [#allocation3], %s5250_s8, %s5250_s8, %s5251_s9  }
 0x339   :  { %5244 = dma.done.wait [#allocation3], 256  }
 0x33a   :  { %5245 = vsyncadd [#allocation3], 4294967040 }
 0x33b   :  { %3547 = vsyncpa [#allocation3], 1 }

</bundles_post_ra>
